<compile_context>
chip_gen: v5e
topology: v5e:2x2
jax: 0.10.0
libtpu: 0.0.40
codegen_flags: <defaults>
</compile_context>

<pallas_src>
import functools

import jax
import jax.numpy as jnp
from jax.experimental import pallas as pl
from jax.experimental.pallas import tpu as pltpu  # noqa: F401  (kept for TPU-specific tuning hooks)

NUM_CLASSES = 361
NUM_CLASSES_PAD = 384      # head N padded to a lane-dense 3*128 (sliced back in wrapper)
IN_CHANS = 12
IN_CHANS_PAD = 16          # zero-pad stem input channels 12 -> 16

C_STEM, C_MB, C_EXP, C_SE, C_TR = 32, 64, 128, 8, 64
C_SE_PAD = 128             # SE hidden zero-padded (identical math, lane-aligned)
HEADS = 2
MLP_HID = 256
EPS = 1e-5


# ----------------------------------------------------------------------------
# small in-kernel helpers
# ----------------------------------------------------------------------------
def _apply_act(x, act):
    if act == "none":
        return x
    if act == "gelu":
        return jax.nn.gelu(x, approximate=True)
    if act == "sigmoid":
        return jax.nn.sigmoid(x)
    if act == "silu":
        return x * jax.nn.sigmoid(x)
    raise ValueError(act)


def _layernorm(x, g, b, eps):
    mu = jnp.mean(x, axis=-1, keepdims=True)
    var = jnp.mean(jnp.square(x - mu), axis=-1, keepdims=True)
    return (x - mu) * jax.lax.rsqrt(var + eps) * g + b


# ----------------------------------------------------------------------------
# Pallas kernels (all grid=() whole-array kernels: operands are a few 100 KB)
# ----------------------------------------------------------------------------
def _matmul_act_kernel(x_ref, w_ref, b_ref, o_ref, *, act):
    # bf16 x bf16 -> f32 accumulate, activation in epilogue
    acc = jnp.dot(x_ref[...], w_ref[...],
                  preferred_element_type=jnp.float32) + b_ref[...]
    o_ref[...] = _apply_act(acc, act).astype(o_ref.dtype)


def _stem2_expand_kernel(taps_ref, w2_ref, b2_ref, we_ref, be_ref,
                         x_out_ref, y_out_ref):
    # stem conv2 (taps folded into K) followed immediately by the MBConv
    # 1x1 expand (BN0 pre-norm + BN1 folded into we/be) + GELU.
    x = jnp.dot(taps_ref[...], w2_ref[...],
                preferred_element_type=jnp.float32) + b2_ref[...]
    x_out_ref[...] = x.astype(x_out_ref.dtype)
    y = jnp.dot(x.astype(jnp.bfloat16), we_ref[...],
                preferred_element_type=jnp.float32) + be_ref[...]
    y_out_ref[...] = jax.nn.gelu(y, approximate=True).astype(y_out_ref.dtype)


def _mbconv_tail_kernel(dwt_ref, dww_ref, dwb_ref,
                        sew1_ref, seb1_ref, sew2_ref, seb2_ref,
                        projw_ref, projb_ref,
                        poolt_ref, scw_ref, scb_ref,
                        o_ref, *, batch, lp, kk):
    # depthwise 3x3 s2 (+folded BN) + GELU — elementwise VPU accumulation
    acc = dwt_ref[0].astype(jnp.float32) * dww_ref[0]
    for t in range(1, kk):
        acc = acc + dwt_ref[t].astype(jnp.float32) * dww_ref[t]
    y = jax.nn.gelu(acc + dwb_ref[...], approximate=True)          # [B*Lp, C_EXP]
    c = y.shape[-1]
    # squeeze-excite: pool -> fc1+silu -> fc2+sigmoid (hidden zero-padded)
    y3 = y.reshape(batch, lp, c)
    pooled = jnp.mean(y3, axis=1)                                   # [B, C_EXP]
    h = jnp.dot(pooled.astype(jnp.bfloat16), sew1_ref[...],
                preferred_element_type=jnp.float32) + seb1_ref[...]
    h = h * jax.nn.sigmoid(h)                                       # silu
    g = jnp.dot(h.astype(jnp.bfloat16), sew2_ref[...],
                preferred_element_type=jnp.float32) + seb2_ref[...]
    gate = jax.nn.sigmoid(g)                                        # [B, C_EXP]
    yg = (y3 * gate[:, None, :]).reshape(batch * lp, c)
    # 1x1 project + (avgpool2x2 + 1x1) shortcut, fused
    main = jnp.dot(yg.astype(jnp.bfloat16), projw_ref[...],
                   preferred_element_type=jnp.float32) + projb_ref[...]
    sc = jnp.dot(poolt_ref[...], scw_ref[...],
                 preferred_element_type=jnp.float32) + scb_ref[...]
    o_ref[...] = (main + sc).astype(o_ref.dtype)


def _transformer_head_kernel(x_ref, aln_g_ref, aln_b_ref, qkvw_ref, qkvb_ref,
                             bias_ref, projw_ref, projb_ref,
                             mln_g_ref, mln_b_ref, fc1w_ref, fc1b_ref,
                             fc2w_ref, fc2b_ref, hln_g_ref, hln_b_ref,
                             headw_ref, headb_ref, o_ref,
                             *, batch, seq, dim, heads, eps):
    dh = dim // heads
    scale = dh ** -0.5
    x = x_ref[...].astype(jnp.float32)                              # [B*L, D]

    # --- relative self-attention (LN fused into qkv) -------------------------
    xn = _layernorm(x, aln_g_ref[...], aln_b_ref[...], eps)
    qkv = jnp.dot(xn.astype(jnp.bfloat16), qkvw_ref[...],
                  preferred_element_type=jnp.float32) + qkvb_ref[...]  # [B*L, 3D]
    pw = projw_ref[...]                                              # [D, D] bf16
    attn_acc = jnp.zeros((batch * seq, dim), jnp.float32)
    for h in range(heads):                                           # static unroll
        q = qkv[:, h * dh:(h + 1) * dh].reshape(batch, seq, dh)
        k = qkv[:, dim + h * dh: dim + (h + 1) * dh].reshape(batch, seq, dh)
        v = qkv[:, 2 * dim + h * dh: 2 * dim + (h + 1) * dh].reshape(batch, seq, dh)
        s = jnp.einsum("bqd,bkd->bqk",
                       q.astype(jnp.bfloat16), k.astype(jnp.bfloat16),
                       preferred_element_type=jnp.float32) * scale
        s = s + bias_ref[h]                                          # shared [L, L] bias
        s = s - jnp.max(s, axis=-1, keepdims=True)
        p = jnp.exp(s)
        p = p / jnp.sum(p, axis=-1, keepdims=True)                   # exact softmax
        o = jnp.einsum("bqk,bkd->bqd",
                       p.astype(jnp.bfloat16), v.astype(jnp.bfloat16),
                       preferred_element_type=jnp.float32)           # [B, L, Dh]
        # fold head-concat into the output projection (avoids in-kernel concat)
        attn_acc = attn_acc + jnp.dot(
            o.reshape(batch * seq, dh).astype(jnp.bfloat16),
            pw[h * dh:(h + 1) * dh, :],
            preferred_element_type=jnp.float32)
    x = attn_acc + projb_ref[...] + x                                # residual

    # --- MLP (LN fused into fc1, residual fused) -----------------------------
    xn = _layernorm(x, mln_g_ref[...], mln_b_ref[...], eps)
    hdn = jax.nn.gelu(jnp.dot(xn.astype(jnp.bfloat16), fc1w_ref[...],
                              preferred_element_type=jnp.float32) + fc1b_ref[...],
                      approximate=True)
    x = jnp.dot(hdn.astype(jnp.bfloat16), fc2w_ref[...],
                preferred_element_type=jnp.float32) + fc2b_ref[...] + x

    # --- global pool + LN + classifier head (N padded to 384 lanes) ----------
    pooled = jnp.mean(x.reshape(batch, seq, dim), axis=1)            # [B, D]
    pn = _layernorm(pooled, hln_g_ref[...], hln_b_ref[...], eps)
    logits = jnp.dot(pn.astype(jnp.bfloat16), headw_ref[...],
                     preferred_element_type=jnp.float32) + headb_ref[...]
    o_ref[...] = logits.astype(o_ref.dtype)


# ----------------------------------------------------------------------------
# Pallas wrappers (grid=(): single step, every operand whole-array in VMEM)
# ----------------------------------------------------------------------------
def pallas_matmul_act(x, w, b, act="none", out_dtype=jnp.bfloat16):
    M = x.shape[0]
    N = w.shape[1]
    return pl.pallas_call(
        functools.partial(_matmul_act_kernel, act=act),
        out_shape=jax.ShapeDtypeStruct((M, N), out_dtype),
    )(x, w, b)


def pallas_stem2_expand(taps, prep):
    M = taps.shape[0]
    return pl.pallas_call(
        _stem2_expand_kernel,
        out_shape=(jax.ShapeDtypeStruct((M, C_STEM), jnp.bfloat16),
                   jax.ShapeDtypeStruct((M, C_EXP), jnp.bfloat16)),
    )(taps, prep["stem_w2"], prep["stem_b2"], prep["mb_exp_w"], prep["mb_exp_b"])


def pallas_mbconv_tail(dw_taps, pool_taps, prep, *, batch, lp):
    return pl.pallas_call(
        functools.partial(_mbconv_tail_kernel, batch=batch, lp=lp,
                          kk=dw_taps.shape[0]),
        out_shape=jax.ShapeDtypeStruct((batch * lp, C_MB), jnp.bfloat16),
    )(dw_taps, prep["mb_dw_w"], prep["mb_dw_b"],
      prep["mb_se_w1"], prep["mb_se_b1"], prep["mb_se_w2"], prep["mb_se_b2"],
      prep["mb_proj_w"], prep["mb_proj_b"],
      pool_taps, prep["mb_sc_w"], prep["mb_sc_b"])


def pallas_transformer_head(x, prep, *, batch, seq, dim, heads):
    return pl.pallas_call(
        functools.partial(_transformer_head_kernel, batch=batch, seq=seq,
                          dim=dim, heads=heads, eps=EPS),
        out_shape=jax.ShapeDtypeStruct((batch, NUM_CLASSES_PAD), jnp.float32),
    )(x, prep["attn_ln_g"], prep["attn_ln_b"], prep["qkv_w"], prep["qkv_b"],
      prep["rel_bias"], prep["proj_w"], prep["proj_b"],
      prep["mlp_ln_g"], prep["mlp_ln_b"], prep["fc1_w"], prep["fc1_b"],
      prep["fc2_w"], prep["fc2_b"], prep["head_ln_g"], prep["head_ln_b"],
      prep["head_w"], prep["head_b"])


# ----------------------------------------------------------------------------
# glue: tap extraction (pure data movement) and relative-position bias
# ----------------------------------------------------------------------------
def conv_taps(x, k, stride, pad, *, stack=False):
    """x: [B,H,W,C] NHWC.
    stack=False -> [B*Ho*Wo, k*k*C]  (taps folded into the matmul K dimension)
    stack=True  -> [k*k, B*Ho*Wo, C] (for the depthwise elementwise kernel)
    """
    # TODO(synk): at full coatnet_1 resolution this tap extraction should move
    #             inside the kernel (streamed K grid axis / manual DMA) instead
    #             of materializing k*k output-sized slabs in HBM.
    B, H, W, C = x.shape
    xp = jnp.pad(x, ((0, 0), (pad, pad), (pad, pad), (0, 0))) if pad else x
    Ho = (H + 2 * pad - k) // stride + 1
    Wo = (W + 2 * pad - k) // stride + 1
    taps = []
    for i in range(k):
        for j in range(k):
            sl = jax.lax.slice(
                xp,
                (0, i, j, 0),
                (B, i + (Ho - 1) * stride + 1, j + (Wo - 1) * stride + 1, C),
                (1, stride, stride, 1),
            )
            taps.append(sl.reshape(B * Ho * Wo, C))
    if stack:
        return jnp.stack(taps, axis=0), Ho, Wo
    return jnp.concatenate(taps, axis=-1), Ho, Wo


def rel_pos_bias(table, Hs, Ws):
    ch, cw = jnp.meshgrid(jnp.arange(Hs), jnp.arange(Ws), indexing="ij")
    coords = jnp.stack([ch.reshape(-1), cw.reshape(-1)], axis=0)   # [2, L]
    rel = coords[:, :, None] - coords[:, None, :]
    idx = (rel[0] + Hs - 1) * (2 * Ws - 1) + (rel[1] + Ws - 1)     # [L, L]
    bias = table[idx]                                              # [L, L, heads]
    return jnp.transpose(bias, (2, 0, 1))                          # [heads, L, L]


def bn_fold(gamma, beta, eps=EPS):
    # eval-mode BN with running_mean=0, running_var=1 (fresh PyTorch BN).
    return gamma / jnp.sqrt(1.0 + eps), beta


# ----------------------------------------------------------------------------
# parameters (deterministic synthetic init) + one-time inference prep/folding
# ----------------------------------------------------------------------------
def init_params(key):
    keys = iter(jax.random.split(key, 64))

    def nrm(shape, std=0.05):
        return std * jax.random.normal(next(keys), shape, jnp.float32)

    p = {}
    # stem (first conv forced to 12 input channels, as in the PyTorch module)
    p["stem_w1"] = nrm((3, 3, IN_CHANS, C_STEM)); p["stem_b1"] = jnp.zeros((C_STEM,))
    p["stem_bn_g"] = jnp.ones((C_STEM,)); p["stem_bn_b"] = jnp.zeros((C_STEM,))
    p["stem_w2"] = nrm((3, 3, C_STEM, C_STEM)); p["stem_b2"] = jnp.zeros((C_STEM,))
    # MBConv stage (downsample, with squeeze-excite)
    p["mb_bn0_g"] = jnp.ones((C_STEM,)); p["mb_bn0_b"] = jnp.zeros((C_STEM,))
    p["mb_exp_w"] = nrm((C_STEM, C_EXP))
    p["mb_bn1_g"] = jnp.ones((C_EXP,)); p["mb_bn1_b"] = jnp.zeros((C_EXP,))
    p["mb_dw_w"] = nrm((3, 3, C_EXP))
    p["mb_bn2_g"] = jnp.ones((C_EXP,)); p["mb_bn2_b"] = jnp.zeros((C_EXP,))
    p["mb_se_w1"] = nrm((C_EXP, C_SE)); p["mb_se_b1"] = jnp.zeros((C_SE,))
    p["mb_se_w2"] = nrm((C_SE, C_EXP)); p["mb_se_b2"] = jnp.zeros((C_EXP,))
    p["mb_proj_w"] = nrm((C_EXP, C_MB)); p["mb_proj_b"] = jnp.zeros((C_MB,))
    p["mb_sc_w"] = nrm((C_STEM, C_MB)); p["mb_sc_b"] = jnp.zeros((C_MB,))
    # Transformer stage (relative self-attention + MLP)
    p["attn_ln_g"] = jnp.ones((C_TR,)); p["attn_ln_b"] = jnp.zeros((C_TR,))
    p["qkv_w"] = nrm((C_TR, 3 * C_TR)); p["qkv_b"] = jnp.zeros((3 * C_TR,))
    p["rel_table"] = nrm((7 * 7, HEADS), std=0.02)   # (2*4-1)^2 relative offsets
    p["proj_w"] = nrm((C_TR, C_TR)); p["proj_b"] = jnp.zeros((C_TR,))
    p["mlp_ln_g"] = jnp.ones((C_TR,)); p["mlp_ln_b"] = jnp.zeros((C_TR,))
    p["fc1_w"] = nrm((C_TR, MLP_HID)); p["fc1_b"] = jnp.zeros((MLP_HID,))
    p["fc2_w"] = nrm((MLP_HID, C_TR)); p["fc2_b"] = jnp.zeros((C_TR,))
    # head (forced to num_classes = 361, as in the PyTorch module)
    p["head_ln_g"] = jnp.ones((C_TR,)); p["head_ln_b"] = jnp.zeros((C_TR,))
    p["head_w"] = nrm((C_TR, NUM_CLASSES)); p["head_b"] = jnp.zeros((NUM_CLASSES,))
    return p


def prepare_params(p, Hs, Ws):
    """One-time folding: BN into weights, bf16 weight cast, pre-shaped f32 biases,
    tap weights reshaped for K-folded convs, head padded to 384 lanes."""
    assert p["rel_table"].shape[0] == (2 * Hs - 1) * (2 * Ws - 1), \
        "relative-position table does not match attention grid size"

    def b_row(v):
        return jnp.asarray(v).reshape(1, -1).astype(jnp.float32)

    prep = {}
    # stem conv1 + BN (+gelu in kernel epilogue); taps folded into K = 9*16
    s, sh = bn_fold(p["stem_bn_g"], p["stem_bn_b"])
    w1 = p["stem_w1"] * s                                            # [3,3,12,32]
    w1 = jnp.pad(w1, ((0, 0), (0, 0), (0, IN_CHANS_PAD - IN_CHANS), (0, 0)))
    prep["stem_w1"] = w1.reshape(9 * IN_CHANS_PAD, C_STEM).astype(jnp.bfloat16)
    prep["stem_b1"] = b_row(p["stem_b1"] * s + sh)
    # stem conv2; taps folded into K = 9*32
    prep["stem_w2"] = p["stem_w2"].reshape(9 * C_STEM, C_STEM).astype(jnp.bfloat16)
    prep["stem_b2"] = b_row(p["stem_b2"])
    # MBConv shortcut: 2x2 avgpool + 1x1 conv == 4-tap conv, 0.25*W per tap (K = 128)
    prep["mb_sc_w"] = jnp.concatenate([p["mb_sc_w"] * 0.25] * 4, axis=0).astype(jnp.bfloat16)
    prep["mb_sc_b"] = b_row(p["mb_sc_b"])
    # expand: BN0 (pre-norm) + 1x1 + BN1 folded, gelu in epilogue
    s0, sh0 = bn_fold(p["mb_bn0_g"], p["mb_bn0_b"])
    s1, sh1 = bn_fold(p["mb_bn1_g"], p["mb_bn1_b"])
    prep["mb_exp_w"] = ((s0[:, None] * p["mb_exp_w"]) * s1[None, :]).astype(jnp.bfloat16)
    prep["mb_exp_b"] = b_row((sh0 @ p["mb_exp_w"]) * s1 + sh1)
    # depthwise 3x3 + BN2 folded (fp32 VPU weights), gelu in epilogue
    s2, sh2 = bn_fold(p["mb_bn2_g"], p["mb_bn2_b"])
    prep["mb_dw_w"] = (p["mb_dw_w"].reshape(9, C_EXP) * s2[None, :]) \
        .reshape(9, 1, C_EXP).astype(jnp.float32)
    prep["mb_dw_b"] = b_row(sh2)
    # squeeze-excite: zero-pad the tiny hidden dim to 128 lanes (identical math)
    prep["mb_se_w1"] = jnp.pad(p["mb_se_w1"], ((0, 0), (0, C_SE_PAD - C_SE))).astype(jnp.bfloat16)
    prep["mb_se_b1"] = b_row(jnp.pad(p["mb_se_b1"], ((0, C_SE_PAD - C_SE),)))
    prep["mb_se_w2"] = jnp.pad(p["mb_se_w2"], ((0, C_SE_PAD - C_SE), (0, 0))).astype(jnp.bfloat16)
    prep["mb_se_b2"] = b_row(p["mb_se_b2"])
    prep["mb_proj_w"] = p["mb_proj_w"].astype(jnp.bfloat16)
    prep["mb_proj_b"] = b_row(p["mb_proj_b"])
    # transformer
    prep["attn_ln_g"] = b_row(p["attn_ln_g"]); prep["attn_ln_b"] = b_row(p["attn_ln_b"])
    prep["qkv_w"] = p["qkv_w"].astype(jnp.bfloat16); prep["qkv_b"] = b_row(p["qkv_b"])
    prep["rel_bias"] = rel_pos_bias(p["rel_table"], Hs, Ws).astype(jnp.float32)
    prep["proj_w"] = p["proj_w"].astype(jnp.bfloat16); prep["proj_b"] = b_row(p["proj_b"])
    prep["mlp_ln_g"] = b_row(p["mlp_ln_g"]); prep["mlp_ln_b"] = b_row(p["mlp_ln_b"])
    prep["fc1_w"] = p["fc1_w"].astype(jnp.bfloat16); prep["fc1_b"] = b_row(p["fc1_b"])
    prep["fc2_w"] = p["fc2_w"].astype(jnp.bfloat16); prep["fc2_b"] = b_row(p["fc2_b"])
    # head: N padded 361 -> 384 (lane-dense); wrapper slices logits[:, :361]
    prep["head_ln_g"] = b_row(p["head_ln_g"]); prep["head_ln_b"] = b_row(p["head_ln_b"])
    prep["head_w"] = jnp.pad(p["head_w"], ((0, 0), (0, NUM_CLASSES_PAD - NUM_CLASSES))
                             ).astype(jnp.bfloat16)
    prep["head_b"] = b_row(jnp.pad(p["head_b"], ((0, NUM_CLASSES_PAD - NUM_CLASSES),)))
    return prep


# ----------------------------------------------------------------------------
# model forward — exactly 4 pallas_calls
# ----------------------------------------------------------------------------
def coatnet_forward(prep, x_nchw):
    # accept PyTorch NCHW, compute in NHWC; tap slabs carried in bf16
    x = jnp.transpose(x_nchw.astype(jnp.float32), (0, 2, 3, 1))      # [B, H, W, 12]
    B = x.shape[0]
    x = jnp.pad(x, ((0, 0), (0, 0), (0, 0), (0, IN_CHANS_PAD - IN_CHANS))
                ).astype(jnp.bfloat16)

    # stem conv1: 3x3 s2 (12->32) + folded BN + GELU         (kernel 1)
    taps1, H1, W1 = conv_taps(x, 3, 2, 1)                            # [B*H1*W1, 144]
    s1 = pallas_matmul_act(taps1, prep["stem_w1"], prep["stem_b1"], act="gelu")

    # stem conv2 3x3 s1 + MBConv 1x1 expand (+BN folds, GELU) (kernel 2)
    taps2, _, _ = conv_taps(s1.reshape(B, H1, W1, C_STEM), 3, 1, 1)  # [B*H1*W1, 288]
    x_mb, y_exp = pallas_stem2_expand(taps2, prep)                   # [.,32], [.,128] bf16

    # MBConv tail: dwconv+BN+GELU -> SE -> gate -> project -> +shortcut (kernel 3)
    Ho, Wo = H1 // 2, W1 // 2
    Lp = Ho * Wo
    pool_taps, _, _ = conv_taps(x_mb.reshape(B, H1, W1, C_STEM), 2, 2, 0)        # [B*Lp, 128]
    dw_taps, _, _ = conv_taps(y_exp.reshape(B, H1, W1, C_EXP), 3, 2, 1, stack=True)  # [9,B*Lp,128]
    mb_out = pallas_mbconv_tail(dw_taps, pool_taps, prep, batch=B, lp=Lp)        # [B*Lp, 64]

    # transformer block (rel-attention + MLP) + pool + LN + head (kernel 4)
    logits = pallas_transformer_head(mb_out, prep, batch=B, seq=Lp,
                                     dim=C_TR, heads=HEADS)           # [B, 384]
    return logits[:, :NUM_CLASSES]


# ----------------------------------------------------------------------------
if __name__ == "__main__":
    key = jax.random.PRNGKey(0)
    k_param, k_in = jax.random.split(key)
    params = init_params(k_param)
    x = jax.random.normal(k_in, (2, IN_CHANS, 16, 16), jnp.float32)   # NCHW input

    # 16x16 input -> stem s2 -> 8x8 -> MBConv s2 -> 4x4 attention grid
    prep = prepare_params(params, Hs=4, Ws=4)

    fwd = jax.jit(coatnet_forward)
    logits = jax.block_until_ready(fwd(prep, x))

    assert logits.shape == (2, NUM_CLASSES), logits.shape
    assert bool(jnp.all(jnp.isfinite(logits)))
    print("KERNEL_OK")
</pallas_src>

<mosaic_0001>
module attributes {stable_mosaic.version = 11 : i64} {
  func.func @_matmul_act_kernel(%arg0: memref<128x144xbf16, #tpu.memory_space<vmem>>, %arg1: memref<144x32xbf16, #tpu.memory_space<vmem>>, %arg2: memref<1x32xf32, #tpu.memory_space<vmem>>, %arg3: memref<128x32xbf16, #tpu.memory_space<vmem>>) attributes {dimension_semantics = [], scalar_prefetch = 0 : i64, scratch_operands = 0 : i64, tpu.core_type = #tpu.core_type<tc>} {
    %c0 = arith.constant 0 : index
    %c0_0 = arith.constant 0 : index
    %0 = vector.load %arg0[%c0, %c0_0] : memref<128x144xbf16, #tpu.memory_space<vmem>>, vector<128x144xbf16>
    %c0_1 = arith.constant 0 : index
    %c0_2 = arith.constant 0 : index
    %1 = vector.load %arg1[%c0_1, %c0_2] : memref<144x32xbf16, #tpu.memory_space<vmem>>, vector<144x32xbf16>
    %cst = arith.constant dense<0.000000e+00> : vector<128x32xf32>
    %2 = tpu.matmul %0, %1, %cst {dimension_numbers = #tpu.dot_dimension_numbers<[1], [0], [0], [1], [0, 0, 1, 1], [], []>} : vector<128x144xbf16>, vector<144x32xbf16>, vector<128x32xf32> -> vector<128x32xf32>
    %c0_3 = arith.constant 0 : index
    %c0_4 = arith.constant 0 : index
    %3 = vector.load %arg2[%c0_3, %c0_4] : memref<1x32xf32, #tpu.memory_space<vmem>>, vector<1x32xf32>
    %4 = vector.broadcast %3 : vector<1x32xf32> to vector<128x32xf32>
    %5 = arith.addf %2, %4 : vector<128x32xf32>
    %6 = arith.mulf %5, %5 : vector<128x32xf32>
    %7 = arith.mulf %5, %6 : vector<128x32xf32>
    %cst_5 = arith.constant 4.471500e-02 : f32
    %8 = vector.broadcast %cst_5 : f32 to vector<128x32xf32>
    %9 = arith.mulf %8, %7 : vector<128x32xf32>
    %10 = arith.addf %5, %9 : vector<128x32xf32>
    %cst_6 = arith.constant 0.797884583 : f32
    %11 = vector.broadcast %cst_6 : f32 to vector<128x32xf32>
    %12 = arith.mulf %11, %10 : vector<128x32xf32>
    %13 = math.tanh %12 : vector<128x32xf32>
    %cst_7 = arith.constant 1.000000e+00 : f32
    %14 = vector.broadcast %cst_7 : f32 to vector<128x32xf32>
    %15 = arith.addf %14, %13 : vector<128x32xf32>
    %cst_8 = arith.constant 5.000000e-01 : f32
    %16 = vector.broadcast %cst_8 : f32 to vector<128x32xf32>
    %17 = arith.mulf %16, %15 : vector<128x32xf32>
    %18 = arith.mulf %5, %17 : vector<128x32xf32>
    %19 = arith.truncf %18 : vector<128x32xf32> to vector<128x32xbf16>
    %c0_9 = arith.constant 0 : index
    %c0_10 = arith.constant 0 : index
    %20 = vector.load %arg3[%c0_9, %c0_10] : memref<128x32xbf16, #tpu.memory_space<vmem>>, vector<128x32xbf16>
    tpu.vector_store %arg3[%c0_9, %c0_10], %19 {strides = array<i32>} : memref<128x32xbf16, #tpu.memory_space<vmem>>, vector<128x32xbf16>,
    return
  }
}

module attributes {stable_mosaic.version = 11 : i64} {
  func.func @_stem2_expand_kernel(%arg0: memref<128x288xbf16, #tpu.memory_space<vmem>>, %arg1: memref<288x32xbf16, #tpu.memory_space<vmem>>, %arg2: memref<1x32xf32, #tpu.memory_space<vmem>>, %arg3: memref<32x128xbf16, #tpu.memory_space<vmem>>, %arg4: memref<1x128xf32, #tpu.memory_space<vmem>>, %arg5: memref<128x32xbf16, #tpu.memory_space<vmem>>, %arg6: memref<128x128xbf16, #tpu.memory_space<vmem>>) attributes {dimension_semantics = [], scalar_prefetch = 0 : i64, scratch_operands = 0 : i64, tpu.core_type = #tpu.core_type<tc>} {
    %c0 = arith.constant 0 : index
    %c0_0 = arith.constant 0 : index
    %0 = vector.load %arg0[%c0, %c0_0] : memref<128x288xbf16, #tpu.memory_space<vmem>>, vector<128x288xbf16>
    %c0_1 = arith.constant 0 : index
    %c0_2 = arith.constant 0 : index
    %1 = vector.load %arg1[%c0_1, %c0_2] : memref<288x32xbf16, #tpu.memory_space<vmem>>, vector<288x32xbf16>
    %cst = arith.constant dense<0.000000e+00> : vector<128x32xf32>
    %2 = tpu.matmul %0, %1, %cst {dimension_numbers = #tpu.dot_dimension_numbers<[1], [0], [0], [1], [0, 0, 1, 1], [], []>} : vector<128x288xbf16>, vector<288x32xbf16>, vector<128x32xf32> -> vector<128x32xf32>
    %c0_3 = arith.constant 0 : index
    %c0_4 = arith.constant 0 : index
    %3 = vector.load %arg2[%c0_3, %c0_4] : memref<1x32xf32, #tpu.memory_space<vmem>>, vector<1x32xf32>
    %4 = vector.broadcast %3 : vector<1x32xf32> to vector<128x32xf32>
    %5 = arith.addf %2, %4 : vector<128x32xf32>
    %6 = arith.truncf %5 : vector<128x32xf32> to vector<128x32xbf16>
    %c0_5 = arith.constant 0 : index
    %c0_6 = arith.constant 0 : index
    %7 = vector.load %arg5[%c0_5, %c0_6] : memref<128x32xbf16, #tpu.memory_space<vmem>>, vector<128x32xbf16>
    tpu.vector_store %arg5[%c0_5, %c0_6], %6 {strides = array<i32>} : memref<128x32xbf16, #tpu.memory_space<vmem>>, vector<128x32xbf16>,
    %8 = arith.truncf %5 : vector<128x32xf32> to vector<128x32xbf16>
    %c0_7 = arith.constant 0 : index
    %c0_8 = arith.constant 0 : index
    %9 = vector.load %arg3[%c0_7, %c0_8] : memref<32x128xbf16, #tpu.memory_space<vmem>>, vector<32x128xbf16>
    %cst_9 = arith.constant dense<0.000000e+00> : vector<128x128xf32>
    %10 = tpu.matmul %8, %9, %cst_9 {dimension_numbers = #tpu.dot_dimension_numbers<[1], [0], [0], [1], [0, 0, 1, 1], [], []>} : vector<128x32xbf16>, vector<32x128xbf16>, vector<128x128xf32> -> vector<128x128xf32>
    %c0_10 = arith.constant 0 : index
    %c0_11 = arith.constant 0 : index
    %11 = vector.load %arg4[%c0_10, %c0_11] : memref<1x128xf32, #tpu.memory_space<vmem>>, vector<1x128xf32>
    %12 = vector.broadcast %11 : vector<1x128xf32> to vector<128x128xf32>
    %13 = arith.addf %10, %12 : vector<128x128xf32>
    %14 = arith.mulf %13, %13 : vector<128x128xf32>
    %15 = arith.mulf %13, %14 : vector<128x128xf32>
    %cst_12 = arith.constant 4.471500e-02 : f32
    %16 = vector.broadcast %cst_12 : f32 to vector<128x128xf32>
    %17 = arith.mulf %16, %15 : vector<128x128xf32>
    %18 = arith.addf %13, %17 : vector<128x128xf32>
    %cst_13 = arith.constant 0.797884583 : f32
    %19 = vector.broadcast %cst_13 : f32 to vector<128x128xf32>
    %20 = arith.mulf %19, %18 : vector<128x128xf32>
    %21 = math.tanh %20 : vector<128x128xf32>
    %cst_14 = arith.constant 1.000000e+00 : f32
    %22 = vector.broadcast %cst_14 : f32 to vector<128x128xf32>
    %23 = arith.addf %22, %21 : vector<128x128xf32>
    %cst_15 = arith.constant 5.000000e-01 : f32
    %24 = vector.broadcast %cst_15 : f32 to vector<128x128xf32>
    %25 = arith.mulf %24, %23 : vector<128x128xf32>
    %26 = arith.mulf %13, %25 : vector<128x128xf32>
    %27 = arith.truncf %26 : vector<128x128xf32> to vector<128x128xbf16>
    %c0_16 = arith.constant 0 : index
    %c0_17 = arith.constant 0 : index
    %28 = vector.load %arg6[%c0_16, %c0_17] : memref<128x128xbf16, #tpu.memory_space<vmem>>, vector<128x128xbf16>
    tpu.vector_store %arg6[%c0_16, %c0_17], %27 {strides = array<i32>} : memref<128x128xbf16, #tpu.memory_space<vmem>>, vector<128x128xbf16>,
    return
  }
}

module attributes {stable_mosaic.version = 11 : i64} {
  func.func @_mbconv_tail_kernel(%arg0: memref<9x32x128xbf16, #tpu.memory_space<vmem>>, %arg1: memref<9x1x128xf32, #tpu.memory_space<vmem>>, %arg2: memref<1x128xf32, #tpu.memory_space<vmem>>, %arg3: memref<128x128xbf16, #tpu.memory_space<vmem>>, %arg4: memref<1x128xf32, #tpu.memory_space<vmem>>, %arg5: memref<128x128xbf16, #tpu.memory_space<vmem>>, %arg6: memref<1x128xf32, #tpu.memory_space<vmem>>, %arg7: memref<128x64xbf16, #tpu.memory_space<vmem>>, %arg8: memref<1x64xf32, #tpu.memory_space<vmem>>, %arg9: memref<32x128xbf16, #tpu.memory_space<vmem>>, %arg10: memref<128x64xbf16, #tpu.memory_space<vmem>>, %arg11: memref<1x64xf32, #tpu.memory_space<vmem>>, %arg12: memref<32x64xbf16, #tpu.memory_space<vmem>>) attributes {dimension_semantics = [], scalar_prefetch = 0 : i64, scratch_operands = 0 : i64, tpu.core_type = #tpu.core_type<tc>} {
    %c0 = arith.constant 0 : index
    %c0_0 = arith.constant 0 : index
    %c0_1 = arith.constant 0 : index
    %0 = vector.load %arg0[%c0, %c0_0, %c0_1] : memref<9x32x128xbf16, #tpu.memory_space<vmem>>, vector<1x32x128xbf16>
    %1 = vector.shape_cast %0 : vector<1x32x128xbf16> to vector<32x128xbf16>
    %2 = arith.extf %1 : vector<32x128xbf16> to vector<32x128xf32>
    %c0_2 = arith.constant 0 : index
    %c0_3 = arith.constant 0 : index
    %c0_4 = arith.constant 0 : index
    %3 = vector.load %arg1[%c0_2, %c0_3, %c0_4] : memref<9x1x128xf32, #tpu.memory_space<vmem>>, vector<1x1x128xf32>
    %4 = vector.shape_cast %3 : vector<1x1x128xf32> to vector<1x128xf32>
    %5 = vector.broadcast %4 : vector<1x128xf32> to vector<32x128xf32>
    %6 = arith.mulf %2, %5 : vector<32x128xf32>
    %c1 = arith.constant 1 : index
    %c0_5 = arith.constant 0 : index
    %c0_6 = arith.constant 0 : index
    %7 = vector.load %arg0[%c1, %c0_5, %c0_6] : memref<9x32x128xbf16, #tpu.memory_space<vmem>>, vector<1x32x128xbf16>
    %8 = vector.shape_cast %7 : vector<1x32x128xbf16> to vector<32x128xbf16>
    %9 = arith.extf %8 : vector<32x128xbf16> to vector<32x128xf32>
    %c1_7 = arith.constant 1 : index
    %c0_8 = arith.constant 0 : index
    %c0_9 = arith.constant 0 : index
    %10 = vector.load %arg1[%c1_7, %c0_8, %c0_9] : memref<9x1x128xf32, #tpu.memory_space<vmem>>, vector<1x1x128xf32>
    %11 = vector.shape_cast %10 : vector<1x1x128xf32> to vector<1x128xf32>
    %12 = vector.broadcast %11 : vector<1x128xf32> to vector<32x128xf32>
    %13 = arith.mulf %9, %12 : vector<32x128xf32>
    %14 = arith.addf %6, %13 : vector<32x128xf32>
    %c2 = arith.constant 2 : index
    %c0_10 = arith.constant 0 : index
    %c0_11 = arith.constant 0 : index
    %15 = vector.load %arg0[%c2, %c0_10, %c0_11] : memref<9x32x128xbf16, #tpu.memory_space<vmem>>, vector<1x32x128xbf16>
    %16 = vector.shape_cast %15 : vector<1x32x128xbf16> to vector<32x128xbf16>
    %17 = arith.extf %16 : vector<32x128xbf16> to vector<32x128xf32>
    %c2_12 = arith.constant 2 : index
    %c0_13 = arith.constant 0 : index
    %c0_14 = arith.constant 0 : index
    %18 = vector.load %arg1[%c2_12, %c0_13, %c0_14] : memref<9x1x128xf32, #tpu.memory_space<vmem>>, vector<1x1x128xf32>
    %19 = vector.shape_cast %18 : vector<1x1x128xf32> to vector<1x128xf32>
    %20 = vector.broadcast %19 : vector<1x128xf32> to vector<32x128xf32>
    %21 = arith.mulf %17, %20 : vector<32x128xf32>
    %22 = arith.addf %14, %21 : vector<32x128xf32>
    %c3 = arith.constant 3 : index
    %c0_15 = arith.constant 0 : index
    %c0_16 = arith.constant 0 : index
    %23 = vector.load %arg0[%c3, %c0_15, %c0_16] : memref<9x32x128xbf16, #tpu.memory_space<vmem>>, vector<1x32x128xbf16>
    %24 = vector.shape_cast %23 : vector<1x32x128xbf16> to vector<32x128xbf16>
    %25 = arith.extf %24 : vector<32x128xbf16> to vector<32x128xf32>
    %c3_17 = arith.constant 3 : index
    %c0_18 = arith.constant 0 : index
    %c0_19 = arith.constant 0 : index
    %26 = vector.load %arg1[%c3_17, %c0_18, %c0_19] : memref<9x1x128xf32, #tpu.memory_space<vmem>>, vector<1x1x128xf32>
    %27 = vector.shape_cast %26 : vector<1x1x128xf32> to vector<1x128xf32>
    %28 = vector.broadcast %27 : vector<1x128xf32> to vector<32x128xf32>
    %29 = arith.mulf %25, %28 : vector<32x128xf32>
    %30 = arith.addf %22, %29 : vector<32x128xf32>
    %c4 = arith.constant 4 : index
    %c0_20 = arith.constant 0 : index
    %c0_21 = arith.constant 0 : index
    %31 = vector.load %arg0[%c4, %c0_20, %c0_21] : memref<9x32x128xbf16, #tpu.memory_space<vmem>>, vector<1x32x128xbf16>
    %32 = vector.shape_cast %31 : vector<1x32x128xbf16> to vector<32x128xbf16>
    %33 = arith.extf %32 : vector<32x128xbf16> to vector<32x128xf32>
    %c4_22 = arith.constant 4 : index
    %c0_23 = arith.constant 0 : index
    %c0_24 = arith.constant 0 : index
    %34 = vector.load %arg1[%c4_22, %c0_23, %c0_24] : memref<9x1x128xf32, #tpu.memory_space<vmem>>, vector<1x1x128xf32>
    %35 = vector.shape_cast %34 : vector<1x1x128xf32> to vector<1x128xf32>
    %36 = vector.broadcast %35 : vector<1x128xf32> to vector<32x128xf32>
    %37 = arith.mulf %33, %36 : vector<32x128xf32>
    %38 = arith.addf %30, %37 : vector<32x128xf32>
    %c5 = arith.constant 5 : index
    %c0_25 = arith.constant 0 : index
    %c0_26 = arith.constant 0 : index
    %39 = vector.load %arg0[%c5, %c0_25, %c0_26] : memref<9x32x128xbf16, #tpu.memory_space<vmem>>, vector<1x32x128xbf16>
    %40 = vector.shape_cast %39 : vector<1x32x128xbf16> to vector<32x128xbf16>
    %41 = arith.extf %40 : vector<32x128xbf16> to vector<32x128xf32>
    %c5_27 = arith.constant 5 : index
    %c0_28 = arith.constant 0 : index
    %c0_29 = arith.constant 0 : index
    %42 = vector.load %arg1[%c5_27, %c0_28, %c0_29] : memref<9x1x128xf32, #tpu.memory_space<vmem>>, vector<1x1x128xf32>
    %43 = vector.shape_cast %42 : vector<1x1x128xf32> to vector<1x128xf32>
    %44 = vector.broadcast %43 : vector<1x128xf32> to vector<32x128xf32>
    %45 = arith.mulf %41, %44 : vector<32x128xf32>
    %46 = arith.addf %38, %45 : vector<32x128xf32>
    %c6 = arith.constant 6 : index
    %c0_30 = arith.constant 0 : index
    %c0_31 = arith.constant 0 : index
    %47 = vector.load %arg0[%c6, %c0_30, %c0_31] : memref<9x32x128xbf16, #tpu.memory_space<vmem>>, vector<1x32x128xbf16>
    %48 = vector.shape_cast %47 : vector<1x32x128xbf16> to vector<32x128xbf16>
    %49 = arith.extf %48 : vector<32x128xbf16> to vector<32x128xf32>
    %c6_32 = arith.constant 6 : index
    %c0_33 = arith.constant 0 : index
    %c0_34 = arith.constant 0 : index
    %50 = vector.load %arg1[%c6_32, %c0_33, %c0_34] : memref<9x1x128xf32, #tpu.memory_space<vmem>>, vector<1x1x128xf32>
    %51 = vector.shape_cast %50 : vector<1x1x128xf32> to vector<1x128xf32>
    %52 = vector.broadcast %51 : vector<1x128xf32> to vector<32x128xf32>
    %53 = arith.mulf %49, %52 : vector<32x128xf32>
    %54 = arith.addf %46, %53 : vector<32x128xf32>
    %c7 = arith.constant 7 : index
    %c0_35 = arith.constant 0 : index
    %c0_36 = arith.constant 0 : index
    %55 = vector.load %arg0[%c7, %c0_35, %c0_36] : memref<9x32x128xbf16, #tpu.memory_space<vmem>>, vector<1x32x128xbf16>
    %56 = vector.shape_cast %55 : vector<1x32x128xbf16> to vector<32x128xbf16>
    %57 = arith.extf %56 : vector<32x128xbf16> to vector<32x128xf32>
    %c7_37 = arith.constant 7 : index
    %c0_38 = arith.constant 0 : index
    %c0_39 = arith.constant 0 : index
    %58 = vector.load %arg1[%c7_37, %c0_38, %c0_39] : memref<9x1x128xf32, #tpu.memory_space<vmem>>, vector<1x1x128xf32>
    %59 = vector.shape_cast %58 : vector<1x1x128xf32> to vector<1x128xf32>
    %60 = vector.broadcast %59 : vector<1x128xf32> to vector<32x128xf32>
    %61 = arith.mulf %57, %60 : vector<32x128xf32>
    %62 = arith.addf %54, %61 : vector<32x128xf32>
    %c8 = arith.constant 8 : index
    %c0_40 = arith.constant 0 : index
    %c0_41 = arith.constant 0 : index
    %63 = vector.load %arg0[%c8, %c0_40, %c0_41] : memref<9x32x128xbf16, #tpu.memory_space<vmem>>, vector<1x32x128xbf16>
    %64 = vector.shape_cast %63 : vector<1x32x128xbf16> to vector<32x128xbf16>
    %65 = arith.extf %64 : vector<32x128xbf16> to vector<32x128xf32>
    %c8_42 = arith.constant 8 : index
    %c0_43 = arith.constant 0 : index
    %c0_44 = arith.constant 0 : index
    %66 = vector.load %arg1[%c8_42, %c0_43, %c0_44] : memref<9x1x128xf32, #tpu.memory_space<vmem>>, vector<1x1x128xf32>
    %67 = vector.shape_cast %66 : vector<1x1x128xf32> to vector<1x128xf32>
    %68 = vector.broadcast %67 : vector<1x128xf32> to vector<32x128xf32>
    %69 = arith.mulf %65, %68 : vector<32x128xf32>
    %70 = arith.addf %62, %69 : vector<32x128xf32>
    %c0_45 = arith.constant 0 : index
    %c0_46 = arith.constant 0 : index
    %71 = vector.load %arg2[%c0_45, %c0_46] : memref<1x128xf32, #tpu.memory_space<vmem>>, vector<1x128xf32>
    %72 = vector.broadcast %71 : vector<1x128xf32> to vector<32x128xf32>
    %73 = arith.addf %70, %72 : vector<32x128xf32>
    %74 = arith.mulf %73, %73 : vector<32x128xf32>
    %75 = arith.mulf %73, %74 : vector<32x128xf32>
    %cst = arith.constant 4.471500e-02 : f32
    %76 = vector.broadcast %cst : f32 to vector<32x128xf32>
    %77 = arith.mulf %76, %75 : vector<32x128xf32>
    %78 = arith.addf %73, %77 : vector<32x128xf32>
    %cst_47 = arith.constant 0.797884583 : f32
    %79 = vector.broadcast %cst_47 : f32 to vector<32x128xf32>
    %80 = arith.mulf %79, %78 : vector<32x128xf32>
    %81 = math.tanh %80 : vector<32x128xf32>
    %cst_48 = arith.constant 1.000000e+00 : f32
    %82 = vector.broadcast %cst_48 : f32 to vector<32x128xf32>
    %83 = arith.addf %82, %81 : vector<32x128xf32>
    %cst_49 = arith.constant 5.000000e-01 : f32
    %84 = vector.broadcast %cst_49 : f32 to vector<32x128xf32>
    %85 = arith.mulf %84, %83 : vector<32x128xf32>
    %86 = arith.mulf %73, %85 : vector<32x128xf32>
    %87 = vector.shape_cast %86 : vector<32x128xf32> to vector<2x16x128xf32>
    %cst_50 = arith.constant dense<0.000000e+00> : vector<2x128xf32>
    %88 = vector.multi_reduction <add>, %87, %cst_50 [1] : vector<2x16x128xf32> to vector<2x128xf32>
    %cst_51 = arith.constant 1.600000e+01 : f32
    %89 = vector.broadcast %cst_51 : f32 to vector<2x128xf32>
    %90 = arith.divf %88, %89 : vector<2x128xf32>
    %91 = arith.truncf %90 : vector<2x128xf32> to vector<2x128xbf16>
    %c0_52 = arith.constant 0 : index
    %c0_53 = arith.constant 0 : index
    %92 = vector.load %arg3[%c0_52, %c0_53] : memref<128x128xbf16, #tpu.memory_space<vmem>>, vector<128x128xbf16>
    %cst_54 = arith.constant dense<0.000000e+00> : vector<2x128xf32>
    %93 = tpu.matmul %91, %92, %cst_54 {dimension_numbers = #tpu.dot_dimension_numbers<[1], [0], [0], [1], [0, 0, 1, 1], [], []>} : vector<2x128xbf16>, vector<128x128xbf16>, vector<2x128xf32> -> vector<2x128xf32>
    %c0_55 = arith.constant 0 : index
    %c0_56 = arith.constant 0 : index
    %94 = vector.load %arg4[%c0_55, %c0_56] : memref<1x128xf32, #tpu.memory_space<vmem>>, vector<1x128xf32>
    %95 = vector.broadcast %94 : vector<1x128xf32> to vector<2x128xf32>
    %96 = arith.addf %93, %95 : vector<2x128xf32>
    %97 = arith.negf %96 : vector<2x128xf32>
    %98 = math.exp %97 : vector<2x128xf32>
    %cst_57 = arith.constant 1.000000e+00 : f32
    %99 = vector.broadcast %cst_57 : f32 to vector<2x128xf32>
    %100 = arith.addf %99, %98 : vector<2x128xf32>
    %101 = arith.divf %99, %100 : vector<2x128xf32>
    %102 = arith.mulf %96, %101 : vector<2x128xf32>
    %103 = arith.truncf %102 : vector<2x128xf32> to vector<2x128xbf16>
    %c0_58 = arith.constant 0 : index
    %c0_59 = arith.constant 0 : index
    %104 = vector.load %arg5[%c0_58, %c0_59] : memref<128x128xbf16, #tpu.memory_space<vmem>>, vector<128x128xbf16>
    %cst_60 = arith.constant dense<0.000000e+00> : vector<2x128xf32>
    %105 = tpu.matmul %103, %104, %cst_60 {dimension_numbers = #tpu.dot_dimension_numbers<[1], [0], [0], [1], [0, 0, 1, 1], [], []>} : vector<2x128xbf16>, vector<128x128xbf16>, vector<2x128xf32> -> vector<2x128xf32>
    %c0_61 = arith.constant 0 : index
    %c0_62 = arith.constant 0 : index
    %106 = vector.load %arg6[%c0_61, %c0_62] : memref<1x128xf32, #tpu.memory_space<vmem>>, vector<1x128xf32>
    %107 = vector.broadcast %106 : vector<1x128xf32> to vector<2x128xf32>
    %108 = arith.addf %105, %107 : vector<2x128xf32>
    %109 = arith.negf %108 : vector<2x128xf32>
    %110 = math.exp %109 : vector<2x128xf32>
    %cst_63 = arith.constant 1.000000e+00 : f32
    %111 = vector.broadcast %cst_63 : f32 to vector<2x128xf32>
    %112 = arith.addf %111, %110 : vector<2x128xf32>
    %113 = arith.divf %111, %112 : vector<2x128xf32>
    %114 = vector.shape_cast %113 : vector<2x128xf32> to vector<2x1x128xf32>
    %115 = vector.broadcast %114 : vector<2x1x128xf32> to vector<2x16x128xf32>
    %116 = arith.mulf %87, %115 : vector<2x16x128xf32>
    %117 = vector.shape_cast %116 : vector<2x16x128xf32> to vector<32x128xf32>
    %118 = arith.truncf %117 : vector<32x128xf32> to vector<32x128xbf16>
    %c0_64 = arith.constant 0 : index
    %c0_65 = arith.constant 0 : index
    %119 = vector.load %arg7[%c0_64, %c0_65] : memref<128x64xbf16, #tpu.memory_space<vmem>>, vector<128x64xbf16>
    %cst_66 = arith.constant dense<0.000000e+00> : vector<32x64xf32>
    %120 = tpu.matmul %118, %119, %cst_66 {dimension_numbers = #tpu.dot_dimension_numbers<[1], [0], [0], [1], [0, 0, 1, 1], [], []>} : vector<32x128xbf16>, vector<128x64xbf16>, vector<32x64xf32> -> vector<32x64xf32>
    %c0_67 = arith.constant 0 : index
    %c0_68 = arith.constant 0 : index
    %121 = vector.load %arg8[%c0_67, %c0_68] : memref<1x64xf32, #tpu.memory_space<vmem>>, vector<1x64xf32>
    %122 = vector.broadcast %121 : vector<1x64xf32> to vector<32x64xf32>
    %123 = arith.addf %120, %122 : vector<32x64xf32>
    %c0_69 = arith.constant 0 : index
    %c0_70 = arith.constant 0 : index
    %124 = vector.load %arg9[%c0_69, %c0_70] : memref<32x128xbf16, #tpu.memory_space<vmem>>, vector<32x128xbf16>
    %c0_71 = arith.constant 0 : index
    %c0_72 = arith.constant 0 : index
    %125 = vector.load %arg10[%c0_71, %c0_72] : memref<128x64xbf16, #tpu.memory_space<vmem>>, vector<128x64xbf16>
    %cst_73 = arith.constant dense<0.000000e+00> : vector<32x64xf32>
    %126 = tpu.matmul %124, %125, %cst_73 {dimension_numbers = #tpu.dot_dimension_numbers<[1], [0], [0], [1], [0, 0, 1, 1], [], []>} : vector<32x128xbf16>, vector<128x64xbf16>, vector<32x64xf32> -> vector<32x64xf32>
    %c0_74 = arith.constant 0 : index
    %c0_75 = arith.constant 0 : index
    %127 = vector.load %arg11[%c0_74, %c0_75] : memref<1x64xf32, #tpu.memory_space<vmem>>, vector<1x64xf32>
    %128 = vector.broadcast %127 : vector<1x64xf32> to vector<32x64xf32>
    %129 = arith.addf %126, %128 : vector<32x64xf32>
    %130 = arith.addf %123, %129 : vector<32x64xf32>
    %131 = arith.truncf %130 : vector<32x64xf32> to vector<32x64xbf16>
    %c0_76 = arith.constant 0 : index
    %c0_77 = arith.constant 0 : index
    %132 = vector.load %arg12[%c0_76, %c0_77] : memref<32x64xbf16, #tpu.memory_space<vmem>>, vector<32x64xbf16>
    tpu.vector_store %arg12[%c0_76, %c0_77], %131 {strides = array<i32>} : memref<32x64xbf16, #tpu.memory_space<vmem>>, vector<32x64xbf16>,
    return
  }
}

module attributes {stable_mosaic.version = 11 : i64} {
  func.func @_transformer_head_kernel(%arg0: memref<32x64xbf16, #tpu.memory_space<vmem>>, %arg1: memref<1x64xf32, #tpu.memory_space<vmem>>, %arg2: memref<1x64xf32, #tpu.memory_space<vmem>>, %arg3: memref<64x192xbf16, #tpu.memory_space<vmem>>, %arg4: memref<1x192xf32, #tpu.memory_space<vmem>>, %arg5: memref<2x16x16xf32, #tpu.memory_space<vmem>>, %arg6: memref<64x64xbf16, #tpu.memory_space<vmem>>, %arg7: memref<1x64xf32, #tpu.memory_space<vmem>>, %arg8: memref<1x64xf32, #tpu.memory_space<vmem>>, %arg9: memref<1x64xf32, #tpu.memory_space<vmem>>, %arg10: memref<64x256xbf16, #tpu.memory_space<vmem>>, %arg11: memref<1x256xf32, #tpu.memory_space<vmem>>, %arg12: memref<256x64xbf16, #tpu.memory_space<vmem>>, %arg13: memref<1x64xf32, #tpu.memory_space<vmem>>, %arg14: memref<1x64xf32, #tpu.memory_space<vmem>>, %arg15: memref<1x64xf32, #tpu.memory_space<vmem>>, %arg16: memref<64x384xbf16, #tpu.memory_space<vmem>>, %arg17: memref<1x384xf32, #tpu.memory_space<vmem>>, %arg18: memref<2x384xf32, #tpu.memory_space<vmem>>) attributes {dimension_semantics = [], scalar_prefetch = 0 : i64, scratch_operands = 0 : i64, tpu.core_type = #tpu.core_type<tc>} {
    %c0 = arith.constant 0 : index
    %c0_0 = arith.constant 0 : index
    %0 = vector.load %arg0[%c0, %c0_0] : memref<32x64xbf16, #tpu.memory_space<vmem>>, vector<32x64xbf16>
    %1 = arith.extf %0 : vector<32x64xbf16> to vector<32x64xf32>
    %c0_1 = arith.constant 0 : index
    %c0_2 = arith.constant 0 : index
    %2 = vector.load %arg1[%c0_1, %c0_2] : memref<1x64xf32, #tpu.memory_space<vmem>>, vector<1x64xf32>
    %c0_3 = arith.constant 0 : index
    %c0_4 = arith.constant 0 : index
    %3 = vector.load %arg2[%c0_3, %c0_4] : memref<1x64xf32, #tpu.memory_space<vmem>>, vector<1x64xf32>
    %cst = arith.constant dense<0.000000e+00> : vector<32xf32>
    %4 = vector.multi_reduction <add>, %1, %cst [1] : vector<32x64xf32> to vector<32xf32>
    %5 = vector.shape_cast %4 : vector<32xf32> to vector<32x1xf32>
    %cst_5 = arith.constant 6.400000e+01 : f32
    %6 = vector.broadcast %cst_5 : f32 to vector<32x1xf32>
    %7 = arith.divf %5, %6 : vector<32x1xf32>
    %8 = vector.broadcast %7 : vector<32x1xf32> to vector<32x64xf32>
    %9 = arith.subf %1, %8 : vector<32x64xf32>
    %10 = arith.mulf %9, %9 : vector<32x64xf32>
    %cst_6 = arith.constant dense<0.000000e+00> : vector<32xf32>
    %11 = vector.multi_reduction <add>, %10, %cst_6 [1] : vector<32x64xf32> to vector<32xf32>
    %12 = vector.shape_cast %11 : vector<32xf32> to vector<32x1xf32>
    %cst_7 = arith.constant 6.400000e+01 : f32
    %13 = vector.broadcast %cst_7 : f32 to vector<32x1xf32>
    %14 = arith.divf %12, %13 : vector<32x1xf32>
    %15 = vector.broadcast %7 : vector<32x1xf32> to vector<32x64xf32>
    %16 = arith.subf %1, %15 : vector<32x64xf32>
    %cst_8 = arith.constant 9.99999974E-6 : f32
    %17 = vector.broadcast %cst_8 : f32 to vector<32x1xf32>
    %18 = arith.addf %14, %17 : vector<32x1xf32>
    %19 = math.rsqrt %18 : vector<32x1xf32>
    %20 = vector.broadcast %19 : vector<32x1xf32> to vector<32x64xf32>
    %21 = arith.mulf %16, %20 : vector<32x64xf32>
    %22 = vector.broadcast %2 : vector<1x64xf32> to vector<32x64xf32>
    %23 = arith.mulf %21, %22 : vector<32x64xf32>
    %24 = vector.broadcast %3 : vector<1x64xf32> to vector<32x64xf32>
    %25 = arith.addf %23, %24 : vector<32x64xf32>
    %26 = arith.truncf %25 : vector<32x64xf32> to vector<32x64xbf16>
    %c0_9 = arith.constant 0 : index
    %c0_10 = arith.constant 0 : index
    %27 = vector.load %arg3[%c0_9, %c0_10] : memref<64x192xbf16, #tpu.memory_space<vmem>>, vector<64x192xbf16>
    %cst_11 = arith.constant dense<0.000000e+00> : vector<32x192xf32>
    %28 = tpu.matmul %26, %27, %cst_11 {dimension_numbers = #tpu.dot_dimension_numbers<[1], [0], [0], [1], [0, 0, 1, 1], [], []>} : vector<32x64xbf16>, vector<64x192xbf16>, vector<32x192xf32> -> vector<32x192xf32>
    %c0_12 = arith.constant 0 : index
    %c0_13 = arith.constant 0 : index
    %29 = vector.load %arg4[%c0_12, %c0_13] : memref<1x192xf32, #tpu.memory_space<vmem>>, vector<1x192xf32>
    %30 = vector.broadcast %29 : vector<1x192xf32> to vector<32x192xf32>
    %31 = arith.addf %28, %30 : vector<32x192xf32>
    %c0_14 = arith.constant 0 : index
    %c0_15 = arith.constant 0 : index
    %32 = vector.load %arg6[%c0_14, %c0_15] : memref<64x64xbf16, #tpu.memory_space<vmem>>, vector<64x64xbf16>
    %cst_16 = arith.constant 0.000000e+00 : f32
    %33 = vector.broadcast %cst_16 : f32 to vector<32x64xf32>
    %34 = vector.extract_strided_slice %31 {offsets = [0, 0], sizes = [32, 32], strides = [1, 1]} : vector<32x192xf32> to vector<32x32xf32>
    %35 = vector.shape_cast %34 : vector<32x32xf32> to vector<2x16x32xf32>
    %36 = vector.extract_strided_slice %31 {offsets = [0, 64], sizes = [32, 32], strides = [1, 1]} : vector<32x192xf32> to vector<32x32xf32>
    %37 = vector.shape_cast %36 : vector<32x32xf32> to vector<2x16x32xf32>
    %38 = vector.extract_strided_slice %31 {offsets = [0, 128], sizes = [32, 32], strides = [1, 1]} : vector<32x192xf32> to vector<32x32xf32>
    %39 = vector.shape_cast %38 : vector<32x32xf32> to vector<2x16x32xf32>
    %40 = arith.truncf %35 : vector<2x16x32xf32> to vector<2x16x32xbf16>
    %41 = arith.truncf %37 : vector<2x16x32xf32> to vector<2x16x32xbf16>
    "tpu.trace_start"() <{level = 10 : i32, message = "bqd,bkd->bqk"}> : () -> ()
    %cst_17 = arith.constant dense<0.000000e+00> : vector<2x16x16xf32>
    %42 = tpu.matmul %40, %41, %cst_17 {dimension_numbers = #tpu.dot_dimension_numbers<[2], [2], [1], [1], [0, 0, 0, 1, 1, 1], [0], [0]>} : vector<2x16x32xbf16>, vector<2x16x32xbf16>, vector<2x16x16xf32> -> vector<2x16x16xf32>
    "tpu.trace_stop"() : () -> ()
    %cst_18 = arith.constant 0.176776692 : f32
    %43 = vector.broadcast %cst_18 : f32 to vector<2x16x16xf32>
    %44 = arith.mulf %42, %43 : vector<2x16x16xf32>
    %c0_19 = arith.constant 0 : index
    %c0_20 = arith.constant 0 : index
    %c0_21 = arith.constant 0 : index
    %45 = vector.load %arg5[%c0_19, %c0_20, %c0_21] : memref<2x16x16xf32, #tpu.memory_space<vmem>>, vector<1x16x16xf32>
    %46 = vector.shape_cast %45 : vector<1x16x16xf32> to vector<16x16xf32>
    %47 = vector.shape_cast %46 : vector<16x16xf32> to vector<1x16x16xf32>
    %48 = vector.broadcast %47 : vector<1x16x16xf32> to vector<2x16x16xf32>
    %49 = arith.addf %44, %48 : vector<2x16x16xf32>
    %cst_22 = arith.constant dense<0xFF800000> : vector<2x16xf32>
    %50 = vector.multi_reduction <maximumf>, %49, %cst_22 [2] : vector<2x16x16xf32> to vector<2x16xf32>
    %51 = vector.shape_cast %50 : vector<2x16xf32> to vector<2x16x1xf32>
    %52 = vector.broadcast %51 : vector<2x16x1xf32> to vector<2x16x16xf32>
    %53 = arith.subf %49, %52 : vector<2x16x16xf32>
    %54 = math.exp %53 : vector<2x16x16xf32>
    %cst_23 = arith.constant dense<0.000000e+00> : vector<2x16xf32>
    %55 = vector.multi_reduction <add>, %54, %cst_23 [2] : vector<2x16x16xf32> to vector<2x16xf32>
    %56 = vector.shape_cast %55 : vector<2x16xf32> to vector<2x16x1xf32>
    %57 = vector.broadcast %56 : vector<2x16x1xf32> to vector<2x16x16xf32>
    %58 = arith.divf %54, %57 : vector<2x16x16xf32>
    %59 = arith.truncf %58 : vector<2x16x16xf32> to vector<2x16x16xbf16>
    %60 = arith.truncf %39 : vector<2x16x32xf32> to vector<2x16x32xbf16>
    "tpu.trace_start"() <{level = 10 : i32, message = "bqk,bkd->bqd"}> : () -> ()
    %cst_24 = arith.constant dense<0.000000e+00> : vector<2x16x32xf32>
    %61 = tpu.matmul %59, %60, %cst_24 {dimension_numbers = #tpu.dot_dimension_numbers<[2], [1], [1], [2], [0, 0, 0, 1, 1, 2], [0], [0]>} : vector<2x16x16xbf16>, vector<2x16x32xbf16>, vector<2x16x32xf32> -> vector<2x16x32xf32>
    "tpu.trace_stop"() : () -> ()
    %62 = vector.shape_cast %61 : vector<2x16x32xf32> to vector<32x32xf32>
    %63 = arith.truncf %62 : vector<32x32xf32> to vector<32x32xbf16>
    %64 = vector.extract_strided_slice %32 {offsets = [0, 0], sizes = [32, 64], strides = [1, 1]} : vector<64x64xbf16> to vector<32x64xbf16>
    %cst_25 = arith.constant dense<0.000000e+00> : vector<32x64xf32>
    %65 = tpu.matmul %63, %64, %cst_25 {dimension_numbers = #tpu.dot_dimension_numbers<[1], [0], [0], [1], [0, 0, 1, 1], [], []>} : vector<32x32xbf16>, vector<32x64xbf16>, vector<32x64xf32> -> vector<32x64xf32>
    %66 = arith.addf %33, %65 : vector<32x64xf32>
    %67 = vector.extract_strided_slice %31 {offsets = [0, 32], sizes = [32, 32], strides = [1, 1]} : vector<32x192xf32> to vector<32x32xf32>
    %68 = vector.shape_cast %67 : vector<32x32xf32> to vector<2x16x32xf32>
    %69 = vector.extract_strided_slice %31 {offsets = [0, 96], sizes = [32, 32], strides = [1, 1]} : vector<32x192xf32> to vector<32x32xf32>
    %70 = vector.shape_cast %69 : vector<32x32xf32> to vector<2x16x32xf32>
    %71 = vector.extract_strided_slice %31 {offsets = [0, 160], sizes = [32, 32], strides = [1, 1]} : vector<32x192xf32> to vector<32x32xf32>
    %72 = vector.shape_cast %71 : vector<32x32xf32> to vector<2x16x32xf32>
    %73 = arith.truncf %68 : vector<2x16x32xf32> to vector<2x16x32xbf16>
    %74 = arith.truncf %70 : vector<2x16x32xf32> to vector<2x16x32xbf16>
    "tpu.trace_start"() <{level = 10 : i32, message = "bqd,bkd->bqk"}> : () -> ()
    %cst_26 = arith.constant dense<0.000000e+00> : vector<2x16x16xf32>
    %75 = tpu.matmul %73, %74, %cst_26 {dimension_numbers = #tpu.dot_dimension_numbers<[2], [2], [1], [1], [0, 0, 0, 1, 1, 1], [0], [0]>} : vector<2x16x32xbf16>, vector<2x16x32xbf16>, vector<2x16x16xf32> -> vector<2x16x16xf32>
    "tpu.trace_stop"() : () -> ()
    %cst_27 = arith.constant 0.176776692 : f32
    %76 = vector.broadcast %cst_27 : f32 to vector<2x16x16xf32>
    %77 = arith.mulf %75, %76 : vector<2x16x16xf32>
    %c1 = arith.constant 1 : index
    %c0_28 = arith.constant 0 : index
    %c0_29 = arith.constant 0 : index
    %78 = vector.load %arg5[%c1, %c0_28, %c0_29] : memref<2x16x16xf32, #tpu.memory_space<vmem>>, vector<1x16x16xf32>
    %79 = vector.shape_cast %78 : vector<1x16x16xf32> to vector<16x16xf32>
    %80 = vector.shape_cast %79 : vector<16x16xf32> to vector<1x16x16xf32>
    %81 = vector.broadcast %80 : vector<1x16x16xf32> to vector<2x16x16xf32>
    %82 = arith.addf %77, %81 : vector<2x16x16xf32>
    %cst_30 = arith.constant dense<0xFF800000> : vector<2x16xf32>
    %83 = vector.multi_reduction <maximumf>, %82, %cst_30 [2] : vector<2x16x16xf32> to vector<2x16xf32>
    %84 = vector.shape_cast %83 : vector<2x16xf32> to vector<2x16x1xf32>
    %85 = vector.broadcast %84 : vector<2x16x1xf32> to vector<2x16x16xf32>
    %86 = arith.subf %82, %85 : vector<2x16x16xf32>
    %87 = math.exp %86 : vector<2x16x16xf32>
    %cst_31 = arith.constant dense<0.000000e+00> : vector<2x16xf32>
    %88 = vector.multi_reduction <add>, %87, %cst_31 [2] : vector<2x16x16xf32> to vector<2x16xf32>
    %89 = vector.shape_cast %88 : vector<2x16xf32> to vector<2x16x1xf32>
    %90 = vector.broadcast %89 : vector<2x16x1xf32> to vector<2x16x16xf32>
    %91 = arith.divf %87, %90 : vector<2x16x16xf32>
    %92 = arith.truncf %91 : vector<2x16x16xf32> to vector<2x16x16xbf16>
    %93 = arith.truncf %72 : vector<2x16x32xf32> to vector<2x16x32xbf16>
    "tpu.trace_start"() <{level = 10 : i32, message = "bqk,bkd->bqd"}> : () -> ()
    %cst_32 = arith.constant dense<0.000000e+00> : vector<2x16x32xf32>
    %94 = tpu.matmul %92, %93, %cst_32 {dimension_numbers = #tpu.dot_dimension_numbers<[2], [1], [1], [2], [0, 0, 0, 1, 1, 2], [0], [0]>} : vector<2x16x16xbf16>, vector<2x16x32xbf16>, vector<2x16x32xf32> -> vector<2x16x32xf32>
    "tpu.trace_stop"() : () -> ()
    %95 = vector.shape_cast %94 : vector<2x16x32xf32> to vector<32x32xf32>
    %96 = arith.truncf %95 : vector<32x32xf32> to vector<32x32xbf16>
    %97 = vector.extract_strided_slice %32 {offsets = [32, 0], sizes = [32, 64], strides = [1, 1]} : vector<64x64xbf16> to vector<32x64xbf16>
    %cst_33 = arith.constant dense<0.000000e+00> : vector<32x64xf32>
    %98 = tpu.matmul %96, %97, %cst_33 {dimension_numbers = #tpu.dot_dimension_numbers<[1], [0], [0], [1], [0, 0, 1, 1], [], []>} : vector<32x32xbf16>, vector<32x64xbf16>, vector<32x64xf32> -> vector<32x64xf32>
    %99 = arith.addf %66, %98 : vector<32x64xf32>
    %c0_34 = arith.constant 0 : index
    %c0_35 = arith.constant 0 : index
    %100 = vector.load %arg7[%c0_34, %c0_35] : memref<1x64xf32, #tpu.memory_space<vmem>>, vector<1x64xf32>
    %101 = vector.broadcast %100 : vector<1x64xf32> to vector<32x64xf32>
    %102 = arith.addf %99, %101 : vector<32x64xf32>
    %103 = arith.addf %102, %1 : vector<32x64xf32>
    %c0_36 = arith.constant 0 : index
    %c0_37 = arith.constant 0 : index
    %104 = vector.load %arg8[%c0_36, %c0_37] : memref<1x64xf32, #tpu.memory_space<vmem>>, vector<1x64xf32>
    %c0_38 = arith.constant 0 : index
    %c0_39 = arith.constant 0 : index
    %105 = vector.load %arg9[%c0_38, %c0_39] : memref<1x64xf32, #tpu.memory_space<vmem>>, vector<1x64xf32>
    %cst_40 = arith.constant dense<0.000000e+00> : vector<32xf32>
    %106 = vector.multi_reduction <add>, %103, %cst_40 [1] : vector<32x64xf32> to vector<32xf32>
    %107 = vector.shape_cast %106 : vector<32xf32> to vector<32x1xf32>
    %cst_41 = arith.constant 6.400000e+01 : f32
    %108 = vector.broadcast %cst_41 : f32 to vector<32x1xf32>
    %109 = arith.divf %107, %108 : vector<32x1xf32>
    %110 = vector.broadcast %109 : vector<32x1xf32> to vector<32x64xf32>
    %111 = arith.subf %103, %110 : vector<32x64xf32>
    %112 = arith.mulf %111, %111 : vector<32x64xf32>
    %cst_42 = arith.constant dense<0.000000e+00> : vector<32xf32>
    %113 = vector.multi_reduction <add>, %112, %cst_42 [1] : vector<32x64xf32> to vector<32xf32>
    %114 = vector.shape_cast %113 : vector<32xf32> to vector<32x1xf32>
    %cst_43 = arith.constant 6.400000e+01 : f32
    %115 = vector.broadcast %cst_43 : f32 to vector<32x1xf32>
    %116 = arith.divf %114, %115 : vector<32x1xf32>
    %117 = vector.broadcast %109 : vector<32x1xf32> to vector<32x64xf32>
    %118 = arith.subf %103, %117 : vector<32x64xf32>
    %cst_44 = arith.constant 9.99999974E-6 : f32
    %119 = vector.broadcast %cst_44 : f32 to vector<32x1xf32>
    %120 = arith.addf %116, %119 : vector<32x1xf32>
    %121 = math.rsqrt %120 : vector<32x1xf32>
    %122 = vector.broadcast %121 : vector<32x1xf32> to vector<32x64xf32>
    %123 = arith.mulf %118, %122 : vector<32x64xf32>
    %124 = vector.broadcast %104 : vector<1x64xf32> to vector<32x64xf32>
    %125 = arith.mulf %123, %124 : vector<32x64xf32>
    %126 = vector.broadcast %105 : vector<1x64xf32> to vector<32x64xf32>
    %127 = arith.addf %125, %126 : vector<32x64xf32>
    %128 = arith.truncf %127 : vector<32x64xf32> to vector<32x64xbf16>
    %c0_45 = arith.constant 0 : index
    %c0_46 = arith.constant 0 : index
    %129 = vector.load %arg10[%c0_45, %c0_46] : memref<64x256xbf16, #tpu.memory_space<vmem>>, vector<64x256xbf16>
    %cst_47 = arith.constant dense<0.000000e+00> : vector<32x256xf32>
    %130 = tpu.matmul %128, %129, %cst_47 {dimension_numbers = #tpu.dot_dimension_numbers<[1], [0], [0], [1], [0, 0, 1, 1], [], []>} : vector<32x64xbf16>, vector<64x256xbf16>, vector<32x256xf32> -> vector<32x256xf32>
    %c0_48 = arith.constant 0 : index
    %c0_49 = arith.constant 0 : index
    %131 = vector.load %arg11[%c0_48, %c0_49] : memref<1x256xf32, #tpu.memory_space<vmem>>, vector<1x256xf32>
    %132 = vector.broadcast %131 : vector<1x256xf32> to vector<32x256xf32>
    %133 = arith.addf %130, %132 : vector<32x256xf32>
    %134 = arith.mulf %133, %133 : vector<32x256xf32>
    %135 = arith.mulf %133, %134 : vector<32x256xf32>
    %cst_50 = arith.constant 4.471500e-02 : f32
    %136 = vector.broadcast %cst_50 : f32 to vector<32x256xf32>
    %137 = arith.mulf %136, %135 : vector<32x256xf32>
    %138 = arith.addf %133, %137 : vector<32x256xf32>
    %cst_51 = arith.constant 0.797884583 : f32
    %139 = vector.broadcast %cst_51 : f32 to vector<32x256xf32>
    %140 = arith.mulf %139, %138 : vector<32x256xf32>
    %141 = math.tanh %140 : vector<32x256xf32>
    %cst_52 = arith.constant 1.000000e+00 : f32
    %142 = vector.broadcast %cst_52 : f32 to vector<32x256xf32>
    %143 = arith.addf %142, %141 : vector<32x256xf32>
    %cst_53 = arith.constant 5.000000e-01 : f32
    %144 = vector.broadcast %cst_53 : f32 to vector<32x256xf32>
    %145 = arith.mulf %144, %143 : vector<32x256xf32>
    %146 = arith.mulf %133, %145 : vector<32x256xf32>
    %147 = arith.truncf %146 : vector<32x256xf32> to vector<32x256xbf16>
    %c0_54 = arith.constant 0 : index
    %c0_55 = arith.constant 0 : index
    %148 = vector.load %arg12[%c0_54, %c0_55] : memref<256x64xbf16, #tpu.memory_space<vmem>>, vector<256x64xbf16>
    %cst_56 = arith.constant dense<0.000000e+00> : vector<32x64xf32>
    %149 = tpu.matmul %147, %148, %cst_56 {dimension_numbers = #tpu.dot_dimension_numbers<[1], [0], [0], [1], [0, 0, 1, 1], [], []>} : vector<32x256xbf16>, vector<256x64xbf16>, vector<32x64xf32> -> vector<32x64xf32>
    %c0_57 = arith.constant 0 : index
    %c0_58 = arith.constant 0 : index
    %150 = vector.load %arg13[%c0_57, %c0_58] : memref<1x64xf32, #tpu.memory_space<vmem>>, vector<1x64xf32>
    %151 = vector.broadcast %150 : vector<1x64xf32> to vector<32x64xf32>
    %152 = arith.addf %149, %151 : vector<32x64xf32>
    %153 = arith.addf %152, %103 : vector<32x64xf32>
    %154 = vector.shape_cast %153 : vector<32x64xf32> to vector<2x16x64xf32>
    %cst_59 = arith.constant dense<0.000000e+00> : vector<2x64xf32>
    %155 = vector.multi_reduction <add>, %154, %cst_59 [1] : vector<2x16x64xf32> to vector<2x64xf32>
    %cst_60 = arith.constant 1.600000e+01 : f32
    %156 = vector.broadcast %cst_60 : f32 to vector<2x64xf32>
    %157 = arith.divf %155, %156 : vector<2x64xf32>
    %c0_61 = arith.constant 0 : index
    %c0_62 = arith.constant 0 : index
    %158 = vector.load %arg14[%c0_61, %c0_62] : memref<1x64xf32, #tpu.memory_space<vmem>>, vector<1x64xf32>
    %c0_63 = arith.constant 0 : index
    %c0_64 = arith.constant 0 : index
    %159 = vector.load %arg15[%c0_63, %c0_64] : memref<1x64xf32, #tpu.memory_space<vmem>>, vector<1x64xf32>
    %cst_65 = arith.constant dense<0.000000e+00> : vector<2xf32>
    %160 = vector.multi_reduction <add>, %157, %cst_65 [1] : vector<2x64xf32> to vector<2xf32>
    %161 = vector.shape_cast %160 : vector<2xf32> to vector<2x1xf32>
    %cst_66 = arith.constant 6.400000e+01 : f32
    %162 = vector.broadcast %cst_66 : f32 to vector<2x1xf32>
    %163 = arith.divf %161, %162 : vector<2x1xf32>
    %164 = vector.broadcast %163 : vector<2x1xf32> to vector<2x64xf32>
    %165 = arith.subf %157, %164 : vector<2x64xf32>
    %166 = arith.mulf %165, %165 : vector<2x64xf32>
    %cst_67 = arith.constant dense<0.000000e+00> : vector<2xf32>
    %167 = vector.multi_reduction <add>, %166, %cst_67 [1] : vector<2x64xf32> to vector<2xf32>
    %168 = vector.shape_cast %167 : vector<2xf32> to vector<2x1xf32>
    %cst_68 = arith.constant 6.400000e+01 : f32
    %169 = vector.broadcast %cst_68 : f32 to vector<2x1xf32>
    %170 = arith.divf %168, %169 : vector<2x1xf32>
    %171 = vector.broadcast %163 : vector<2x1xf32> to vector<2x64xf32>
    %172 = arith.subf %157, %171 : vector<2x64xf32>
    %cst_69 = arith.constant 9.99999974E-6 : f32
    %173 = vector.broadcast %cst_69 : f32 to vector<2x1xf32>
    %174 = arith.addf %170, %173 : vector<2x1xf32>
    %175 = math.rsqrt %174 : vector<2x1xf32>
    %176 = vector.broadcast %175 : vector<2x1xf32> to vector<2x64xf32>
    %177 = arith.mulf %172, %176 : vector<2x64xf32>
    %178 = vector.broadcast %158 : vector<1x64xf32> to vector<2x64xf32>
    %179 = arith.mulf %177, %178 : vector<2x64xf32>
    %180 = vector.broadcast %159 : vector<1x64xf32> to vector<2x64xf32>
    %181 = arith.addf %179, %180 : vector<2x64xf32>
    %182 = arith.truncf %181 : vector<2x64xf32> to vector<2x64xbf16>
    %c0_70 = arith.constant 0 : index
    %c0_71 = arith.constant 0 : index
    %183 = vector.load %arg16[%c0_70, %c0_71] : memref<64x384xbf16, #tpu.memory_space<vmem>>, vector<64x384xbf16>
    %cst_72 = arith.constant dense<0.000000e+00> : vector<2x384xf32>
    %184 = tpu.matmul %182, %183, %cst_72 {dimension_numbers = #tpu.dot_dimension_numbers<[1], [0], [0], [1], [0, 0, 1, 1], [], []>} : vector<2x64xbf16>, vector<64x384xbf16>, vector<2x384xf32> -> vector<2x384xf32>
    %c0_73 = arith.constant 0 : index
    %c0_74 = arith.constant 0 : index
    %185 = vector.load %arg17[%c0_73, %c0_74] : memref<1x384xf32, #tpu.memory_space<vmem>>, vector<1x384xf32>
    %186 = vector.broadcast %185 : vector<1x384xf32> to vector<2x384xf32>
    %187 = arith.addf %184, %186 : vector<2x384xf32>
    %c0_75 = arith.constant 0 : index
    %c0_76 = arith.constant 0 : index
    %188 = vector.load %arg18[%c0_75, %c0_76] : memref<2x384xf32, #tpu.memory_space<vmem>>, vector<2x384xf32>
    tpu.vector_store %arg18[%c0_75, %c0_76], %187 {strides = array<i32>} : memref<2x384xf32, #tpu.memory_space<vmem>>, vector<2x384xf32>,
    return
  }
}

</mosaic_0001>

<bundles_post_ra>
// kernel: coatnet_forward.4
= control target key start
LH: loop header
LB: loop body
LE: loop exit
PB: predicated region body
PF: predicated region fallthrough
CT: control target
= control target key end

     0   :  { %vm179_vm0 = vcmask 130048   ;;  %vm462_vm1 = vcmask 257024   ;;  %s997_s1 = inlined_call_operand.vmem [shape: bf16[144,32], index: 1, kind: input, shape index: {}]   ;;  %s998_s0 = inlined_call_operand.vmem [shape: bf16[128,144], index: 0, kind: input, shape index: {}]   ;;  %s999_s2 = inlined_call_operand.vmem [shape: f32[1,32], index: 2, kind: input, shape index: {}]   ;;  %s1000_s3 = inlined_call_operand.vmem [shape: bf16[128,32], index: 3, kind: output, shape index: {}]  }
   0x1   :  { %v614_v0 = vld [vmem:[%s997_s1 + $0x38] sm:$0xff]  ;;  %v615_v1 = vld [vmem:[%s997_s1 + $0x40] sm:$0xff]  ;;  %v487_v3 = vld [vmem:[%s998_s0 + $0x8] sm:$0xf0] }
   0x2   :  { %v591_v2 = vld [vmem:[%s998_s0 + $0x4] sm:$0xf]  ;;  %204 = vmatpush.bf16.msra.mxu0 %v614_v0  ;;  %616 = vmatpush.bf16.msra.mxu2 %v614_v0  ;;  %v613_v5 = vld [vmem:[%s997_s1 + $0x30] sm:$0xff]  ;;  %v612_v6 = vld [vmem:[%s997_s1 + $0x28] sm:$0xff] }
   0x3   :  { %v490_v4 = vor.u32 %v591_v2, %v487_v3  ;;  %260 = vmatpush.bf16.msra.mxu1 %v615_v1  ;;  %624 = vmatpush.bf16.msra.mxu3 %v615_v1  ;;  %v601_v7 = vld [vmem:[%s998_s0 + $0x54] sm:$0xf]  ;;  %v527_v8 = vld [vmem:[%s998_s0 + $0x58] sm:$0xf0]  ;;  %v611_v10 = vld [vmem:[%s997_s1 + $0x20] sm:$0xff] }
   0x4   :  { %v530_v9 = vor.u32 %v601_v7, %v527_v8  ;;  %v610_v11 = vld [vmem:[%s997_s1 + $0x18] sm:$0xff]  ;;  %v593_v12 = vld [vmem:[%s998_s0 + $0x14] sm:$0xf]  ;;  %v608_v16 = vld [vmem:[%s997_s1 + $0x8] sm:$0xff] }
   0x5   :  { %v495_v13 = vld [vmem:[%s998_s0 + $0x18] sm:$0xf0]  ;;  %v609_v15 = vld [vmem:[%s997_s1 + $0x10] sm:$0xff]  ;;  %v603_v17 = vld [vmem:[%s998_s0 + $0x64] sm:$0xf] }
   0x6   :  { %583 = vmatmul.msk.bf16.vlgmr.msra.gmra.mxu1 %vm179_vm0, %v490_v4  ;;  %205 = vmatpush.bf16.msra.mxu0 %v613_v5  ;;  %v498_v14 = vor.u32 %v593_v12, %v495_v13  ;;  %v535_v18 = vld [vmem:[%s998_s0 + $0x68] sm:$0xf0]  ;;  %v607_v20 = vld [vmem:[%s997_s1] sm:$0xff]  ;;  %v592_v22 = vld [vmem:[%s998_s0 + $0x4] sm:$0xf0] }
   0x7   :  { %617 = vmatpush.bf16.msra.mxu2 %v613_v5  ;;  %588 = vmatmul.msk.bf16.vlgmr.msra.gmra.mxu3 %vm179_vm0, %v530_v9  ;;  %v538_v19 = vor.u32 %v603_v17, %v535_v18  ;;  %v485_v21 = vld [vmem:[%s998_s0] sm:$0xf]  ;;  %v600_v24 = vld [vmem:[%s998_s0 + $0x44] sm:$0xf0]  ;;  %v595_v27 = vld [vmem:[%s998_s0 + $0x24] sm:$0xf] }
   0x8   :  { %v517_v23 = vld [vmem:[%s998_s0 + $0x40] sm:$0xf]  ;;  %v486_v25 = vor.u32 %v592_v22, %v485_v21  ;;  %v503_v28 = vld [vmem:[%s998_s0 + $0x28] sm:$0xf0]  ;;  %v605_v30 = vld [vmem:[%s998_s0 + $0x74] sm:$0xf] }
   0x9   :  { %v518_v26 = vor.u32 %v600_v24, %v517_v23  ;;  %v506_v29 = vor.u32 %v595_v27, %v503_v28  ;;  %v543_v31 = vld [vmem:[%s998_s0 + $0x78] sm:$0xf0]  ;;  %v493_v33 = vld [vmem:[%s998_s0 + $0x10] sm:$0xf]  ;;  %v594_v34 = vld [vmem:[%s998_s0 + $0x14] sm:$0xf0] }
   0xa   :  { %206 = vmatpush.bf16.msra.mxu0 %v612_v6  ;;  %v546_v32 = vor.u32 %v605_v30, %v543_v31  ;;  %v525_v35 = vld [vmem:[%s998_s0 + $0x50] sm:$0xf]  ;;  %v602_v36 = vld [vmem:[%s998_s0 + $0x54] sm:$0xf0]  ;;  %v494_v37 = vor.u32 %v594_v34, %v493_v33  ;;  %v597_v39 = vld [vmem:[%s998_s0 + $0x34] sm:$0xf] }
   0xb   :  { %618 = vmatpush.bf16.msra.mxu2 %v612_v6  ;;  %v526_v38 = vor.u32 %v602_v36, %v525_v35  ;;  %v511_v40 = vld [vmem:[%s998_s0 + $0x38] sm:$0xf0]  ;;  %v501_v42 = vld [vmem:[%s998_s0 + $0x20] sm:$0xf]  ;;  %v596_v43 = vld [vmem:[%s998_s0 + $0x24] sm:$0xf0] }
   0xc   :  { %v514_v41 = vor.u32 %v597_v39, %v511_v40  ;;  %v533_v44 = vld [vmem:[%s998_s0 + $0x60] sm:$0xf]  ;;  %v604_v45 = vld [vmem:[%s998_s0 + $0x64] sm:$0xf0]  ;;  %v502_v46 = vor.u32 %v596_v43, %v501_v42  ;;  %v599_v48 = vld [vmem:[%s998_s0 + $0x44] sm:$0xf] }
   0xd   :  { %v534_v47 = vor.u32 %v604_v45, %v533_v44  ;;  %v519_v49 = vld [vmem:[%s998_s0 + $0x48] sm:$0xf0]  ;;  %v509_v51 = vld [vmem:[%s998_s0 + $0x30] sm:$0xf]  ;;  %v598_v52 = vld [vmem:[%s998_s0 + $0x34] sm:$0xf0] }
   0xe   :  { %207 = vmatpush.bf16.msra.mxu0 %v611_v10  ;;  %v522_v50 = vor.u32 %v599_v48, %v519_v49  ;;  %v541_v53 = vld [vmem:[%s998_s0 + $0x70] sm:$0xf]  ;;  %v606_v54 = vld [vmem:[%s998_s0 + $0x74] sm:$0xf0]  ;;  %v510_v55 = vor.u32 %v598_v52, %v509_v51  ;;  %v812_v61 = vld [vmem:[%s999_s2] ss:$0 sm:$0xff] }
   0xf   :  { %619 = vmatpush.bf16.msra.mxu2 %v611_v10  ;;  %v542_v56 = vor.u32 %v606_v54, %v541_v53 }
  0x12   :  { %208 = vmatpush.bf16.msra.mxu0 %v610_v11 }
  0x13   :  { %620 = vmatpush.bf16.msra.mxu2 %v610_v11 }
  0x16   :  { %584 = vmatmul.msk.bf16.gmra.mxu1 %vm179_vm0, %v498_v14  ;;  %209 = vmatpush.bf16.msra.mxu0 %v609_v15 }
  0x17   :  { %621 = vmatpush.bf16.msra.mxu2 %v609_v15  ;;  %589 = vmatmul.msk.bf16.gmra.mxu3 %vm179_vm0, %v538_v19 }
  0x1a   :  { %210 = vmatpush.bf16.msra.mxu0 %v608_v16 }
  0x1b   :  { %622 = vmatpush.bf16.msra.mxu2 %v608_v16 }
  0x1e   :  { %211 = vmatpush.bf16.msra.mxu0 %v607_v20 }
  0x1f   :  { %623 = vmatpush.bf16.msra.mxu2 %v607_v20 }
  0x21   :  { %212 = vmatmul.bf16.vlgmr.msra.gmra.mxu0 %v486_v25 }
  0x22   :  { %232 = vmatmul.bf16.vlgmr.msra.gmra.mxu2 %v518_v26 }
  0x26   :  { %585 = vmatmul.msk.bf16.gmra.mxu1 %vm179_vm0, %v506_v29 }
  0x27   :  { %590 = vmatmul.msk.bf16.gmra.mxu3 %vm179_vm0, %v546_v32 }
  0x31   :  { %217 = vmatmul.bf16.gmra.mxu0 %v494_v37 }
  0x32   :  { %237 = vmatmul.bf16.gmra.mxu2 %v526_v38 }
  0x36   :  { %586 = vmatmul.msk.bf16.gmra.mxu1 %vm179_vm0, %v514_v41 }
  0x41   :  { %222 = vmatmul.bf16.gmra.mxu0 %v502_v46 }
  0x42   :  { %242 = vmatmul.bf16.gmra.mxu2 %v534_v47 }
  0x46   :  { %587 = vmatmul.msk.bf16.gmra.mxu1 %vm179_vm0, %v522_v50 }
  0x51   :  { %227 = vmatmul.bf16.gmra.mxu0 %v510_v55 }
  0x52   :  { %247 = vmatmul.bf16.gmra.mxu2 %v542_v56 }
  0x83   :  { %v262_v57 = vpop.f32.mrf.mxu1 }
  0x8a   :  { %v287_v15 = vpop.f32.mrf.mxu3 }
  0x8b   :  { %v264_v58 = vpop.f32.mrf.mxu1 }
  0x92   :  { %v289_v33 = vpop.f32.mrf.mxu3 }
  0x93   :  { %v267_v59 = vpop.f32.mrf.mxu1 }
  0x9b   :  { %v269_v60 = vpop.f32.mrf.mxu1 }
  0x9e   :  { %v213_v62 = vpop.f32.mrf.mxu0 }
  0x9f   :  { %v214_v63 = vadd.f32 %v812_v61, %v213_v62 }
  0xa1   :  { %v263_v0 = vadd.f32 %v262_v57, %v214_v63 }
  0xa3   :  { %v302_v1 = vmul.f32 %v263_v0, %v263_v0  ;;  %v272_v2 = vpop.f32.mrf.mxu1 }
  0xa5   :  { %v318_v3 = vmul.f32 %v302_v1, %v263_v0  ;;  %v233_v4 = vpop.f32.mrf.mxu2 }
  0xa6   :  { %v215_v5 = vpop.f32.mrf.mxu0 }
  0xa7   :  { %v334_v6 = vmul.f32 0.044715, %v318_v3  ;;  %v216_v7 = vadd.f32 %v812_v61, %v215_v5 }
  0xa9   :  { %v350_v8 = vadd.f32 %v334_v6, %v263_v0  ;;  %v265_v9 = vadd.f32 %v264_v58, %v216_v7 }
  0xab   :  { %v366_v10 = vmul.f32 0.7978846, %v350_v8  ;;  %v303_v11 = vmul.f32 %v265_v9, %v265_v9  ;;  %v816_v12 = vpop.f32.mrf.mxu1 }
  0xad   :  { %626 = vtanh.f32 %v366_v10  ;;  %v319_v13 = vmul.f32 %v303_v11, %v265_v9  ;;  %v818_v14 = vpop.f32.mrf.mxu2 }
  0xae   :  { %v218_v16 = vpop.f32.mrf.mxu0 }
  0xaf   :  { %v335_v17 = vmul.f32 0.044715, %v319_v13  ;;  %v219_v18 = vadd.f32 %v812_v61, %v218_v16 }
  0xb1   :  { %v351_v19 = vadd.f32 %v335_v17, %v265_v9  ;;  %v821_v20 = vadd.f32 %v267_v59, %v219_v18  ;;  %v292_v59 = vpop.f32.mrf.mxu3 }
  0xb3   :  { %v627_v21 = vpop.eup %626  ;;  %v367_v22 = vmul.f32 0.7978846, %v351_v19  ;;  %v304_v23 = vmul.f32 %v821_v20, %v821_v20  ;;  %v825_v24 = vpop.f32.mrf.mxu1 }
  0xb4   :  { %v398_v25 = vadd.f32 1.0, %v627_v21 }
  0xb5   :  { %628 = vtanh.f32 %v367_v22  ;;  %v320_v26 = vmul.f32 %v304_v23, %v821_v20  ;;  %v238_v27 = vpop.f32.mrf.mxu2 }
  0xb6   :  { %v414_v28 = vmul.f32 0.5, %v398_v25  ;;  %v239_v29 = vadd.f32 %v812_v61, %v238_v27  ;;  %v220_v30 = vpop.f32.mrf.mxu0 }
  0xb7   :  { %v336_v31 = vmul.f32 0.044715, %v320_v26  ;;  %v221_v32 = vadd.f32 %v812_v61, %v220_v30 }
  0xb8   :  { %v430_v34 = vmul.f32 %v414_v28, %v263_v0  ;;  %v830_v35 = vadd.f32 %v287_v15, %v239_v29 }
  0xb9   :  { %v352_v36 = vadd.f32 %v336_v31, %v821_v20  ;;  %v833_v37 = vadd.f32 %v269_v60, %v221_v32  ;;  %v234_v60 = vadd.f32 %v812_v61, %v233_v4 }
  0xba   :  { %v446_v38 = vpack.c.bf16 %v430_v34, %v430_v34  ;;  %v312_v39 = vmul.f32 %v830_v35, %v830_v35 }
  0xbb   :  { %v629_v40 = vpop.eup %628  ;;  %v368_v41 = vmul.f32 0.7978846, %v352_v36  ;;  %v305_v42 = vmul.f32 %v833_v37, %v833_v37  ;;  %v839_v43 = vpop.f32.mrf.mxu1 }
  0xbc   :  { %463 = vst.msk [vmem:[%s1000_s3] sm:$0xf] %vm462_vm1, %v446_v38  ;;  %v399_v44 = vadd.f32 1.0, %v629_v40  ;;  %v328_v45 = vmul.f32 %v312_v39, %v830_v35  ;;  %v294_v38 = vpop.f32.mrf.mxu3 }
  0xbd   :  { %630 = vtanh.f32 %v368_v41  ;;  %v321_v46 = vmul.f32 %v305_v42, %v833_v37  ;;  %v240_v47 = vpop.f32.mrf.mxu2 }
  0xbe   :  { %v415_v48 = vmul.f32 0.5, %v399_v44  ;;  %v344_v49 = vmul.f32 0.044715, %v328_v45  ;;  %v241_v50 = vadd.f32 %v812_v61, %v240_v47  ;;  %v223_v51 = vpop.f32.mrf.mxu0 }
  0xbf   :  { %v337_v52 = vmul.f32 0.044715, %v321_v46  ;;  %v224_v53 = vadd.f32 %v812_v61, %v223_v51 }
  0xc0   :  { %v431_v54 = vmul.f32 %v415_v48, %v265_v9  ;;  %v360_v55 = vadd.f32 %v344_v49, %v830_v35  ;;  %v850_v56 = vadd.f32 %v289_v33, %v241_v50 }
  0xc1   :  { %v353_v57 = vadd.f32 %v337_v52, %v833_v37  ;;  %v853_v58 = vadd.f32 %v272_v2, %v224_v53 }
  0xc2   :  { %v447_v62 = vpack.c.bf16 %v431_v54, %v431_v54  ;;  %v376_v63 = vmul.f32 0.7978846, %v360_v55  ;;  %v313_v0 = vmul.f32 %v850_v56, %v850_v56 }
  0xc3   :  { %v631_v1 = vpop.eup %630  ;;  %v369_v3 = vmul.f32 0.7978846, %v353_v57  ;;  %v306_v5 = vmul.f32 %v853_v58, %v853_v58  ;;  %v282_v6 = vpop.f32.mrf.mxu1 }
  0xc4   :  { %464 = vst.msk [vmem:[%s1000_s3 + $0x4] sm:$0xf] %vm462_vm1, %v447_v62  ;;  %v400_v2 = vadd.f32 1.0, %v631_v1  ;;  %632 = vtanh.f32 %v376_v63  ;;  %v329_v4 = vmul.f32 %v313_v0, %v850_v56  ;;  %v865_v7 = vadd.f32 %v282_v6, %v234_v60 }
  0xc5   :  { %634 = vtanh.f32 %v369_v3  ;;  %v322_v8 = vmul.f32 %v306_v5, %v853_v58  ;;  %v243_v9 = vpop.f32.mrf.mxu2 }
  0xc6   :  { %v416_v10 = vmul.f32 0.5, %v400_v2  ;;  %v345_v11 = vmul.f32 0.044715, %v329_v4  ;;  %v310_v13 = vmul.f32 %v865_v7, %v865_v7  ;;  %v244_v15 = vadd.f32 %v812_v61, %v243_v9  ;;  %v225_v16 = vpop.f32.mrf.mxu0 }
  0xc7   :  { %v338_v17 = vmul.f32 0.044715, %v322_v8  ;;  %v226_v18 = vadd.f32 %v812_v61, %v225_v16 }
  0xc8   :  { %v432_v19 = vmul.f32 %v416_v10, %v821_v20  ;;  %v361_v21 = vadd.f32 %v345_v11, %v850_v56  ;;  %v326_v22 = vmul.f32 %v310_v13, %v865_v7  ;;  %v875_v23 = vadd.f32 %v292_v59, %v244_v15  ;;  %v297_v13 = vpop.f32.mrf.mxu3 }
  0xc9   :  { %v354_v25 = vadd.f32 %v338_v17, %v853_v58  ;;  %v879_v26 = vadd.f32 %v816_v12, %v226_v18  ;;  %v236_v20 = vadd.f32 %v812_v61, %v818_v14 }
  0xca   :  { %v633_v27 = vpop.eup %632  ;;  %v448_v28 = vpack.c.bf16 %v432_v19, %v432_v19  ;;  %v377_v29 = vmul.f32 0.7978846, %v361_v21  ;;  %v342_v30 = vmul.f32 0.044715, %v326_v22  ;;  %v314_v31 = vmul.f32 %v875_v23, %v875_v23 }
  0xcb   :  { %v635_v32 = vpop.eup %634  ;;  %v408_v33 = vadd.f32 1.0, %v633_v27  ;;  %v370_v34 = vmul.f32 0.7978846, %v354_v25  ;;  %v307_v36 = vmul.f32 %v879_v26, %v879_v26  ;;  %v284_v39 = vpop.f32.mrf.mxu1 }
  0xcc   :  { %465 = vst.msk [vmem:[%s1000_s3 + $0x8] sm:$0xf] %vm462_vm1, %v448_v28  ;;  %v401_v12 = vadd.f32 1.0, %v635_v32  ;;  %636 = vtanh.f32 %v377_v29  ;;  %v358_v40 = vadd.f32 %v342_v30, %v865_v7  ;;  %v330_v41 = vmul.f32 %v314_v31, %v875_v23 }
  0xcd   :  { %v424_v42 = vmul.f32 0.5, %v408_v33  ;;  %638 = vtanh.f32 %v370_v34  ;;  %v323_v14 = vmul.f32 %v307_v36, %v879_v26  ;;  %v894_v44 = vadd.f32 %v284_v39, %v236_v20  ;;  %v245_v45 = vpop.f32.mrf.mxu2 }
  0xce   :  { %v417_v46 = vmul.f32 0.5, %v401_v12  ;;  %v374_v47 = vmul.f32 0.7978846, %v358_v40  ;;  %v346_v48 = vmul.f32 0.044715, %v330_v41  ;;  %v246_v49 = vadd.f32 %v812_v61, %v245_v45  ;;  %v228_v50 = vpop.f32.mrf.mxu0 }
  0xcf   :  { %v440_v51 = vmul.f32 %v424_v42, %v830_v35  ;;  %v339_v52 = vmul.f32 0.044715, %v323_v14  ;;  %v311_v53 = vmul.f32 %v894_v44, %v894_v44  ;;  %v229_v54 = vadd.f32 %v812_v61, %v228_v50 }
  0xd0   :  { %v433_v55 = vmul.f32 %v417_v46, %v833_v37  ;;  %640 = vtanh.f32 %v374_v47  ;;  %v362_v57 = vadd.f32 %v346_v48, %v875_v23  ;;  %v903_v59 = vadd.f32 %v294_v38, %v246_v49 }
  0xd1   :  { %v456_v60 = vpack.c.bf16 %v440_v51, %v440_v51  ;;  %v355_v62 = vadd.f32 %v339_v52, %v879_v26  ;;  %v327_v63 = vmul.f32 %v311_v53, %v894_v44  ;;  %v908_v35 = vadd.f32 %v825_v24, %v229_v54 }
  0xd2   :  { %v637_v0 = vpop.eup %636  ;;  %v449_v1 = vpack.c.bf16 %v433_v55, %v433_v55  ;;  %v378_v3 = vmul.f32 0.7978846, %v362_v57  ;;  %v315_v5 = vmul.f32 %v903_v59, %v903_v59  ;;  %v299_v55 = vpop.f32.mrf.mxu3 }
  0xd3   :  { %v639_v37 = vpop.eup %638  ;;  %473 = vst.msk [vmem:[%s1000_s3 + $0x28] sm:$0xf] %vm462_vm1, %v456_v60  ;;  %v409_v6 = vadd.f32 1.0, %v637_v0  ;;  %v371_v2 = vmul.f32 0.7978846, %v355_v62  ;;  %v308_v4 = vmul.f32 %v908_v35, %v908_v35 }
  0xd4   :  { %466 = vst.msk [vmem:[%s1000_s3 + $0xc] sm:$0xf] %vm462_vm1, %v449_v1  ;;  %v402_v24 = vadd.f32 1.0, %v639_v37  ;;  %642 = vtanh.f32 %v378_v3  ;;  %v343_v8 = vmul.f32 0.044715, %v327_v63  ;;  %v331_v9 = vmul.f32 %v315_v5, %v903_v59 }
  0xd5   :  { %v425_v10 = vmul.f32 0.5, %v409_v6  ;;  %644 = vtanh.f32 %v371_v2  ;;  %v324_v11 = vmul.f32 %v308_v4, %v908_v35  ;;  %v248_v15 = vpop.f32.mrf.mxu2 }
  0xd6   :  { %v641_v16 = vpop.eup %640  ;;  %v418_v17 = vmul.f32 0.5, %v402_v24  ;;  %v359_v18 = vadd.f32 %v343_v8, %v894_v44  ;;  %v347_v19 = vmul.f32 0.044715, %v331_v9  ;;  %v249_v21 = vadd.f32 %v812_v61, %v248_v15  ;;  %v230_v22 = vpop.f32.mrf.mxu0 }
  0xd7   :  { %v441_v25 = vmul.f32 %v425_v10, %v850_v56  ;;  %v406_v27 = vadd.f32 1.0, %v641_v16  ;;  %v340_v28 = vmul.f32 0.044715, %v324_v11  ;;  %v231_v29 = vadd.f32 %v812_v61, %v230_v22 }
  0xd8   :  { %v434_v30 = vmul.f32 %v418_v17, %v853_v58  ;;  %v375_v31 = vmul.f32 0.7978846, %v359_v18  ;;  %v363_v32 = vadd.f32 %v347_v19, %v903_v59  ;;  %v930_v20 = vadd.f32 %v297_v13, %v249_v21 }
  0xd9   :  { %v457_v33 = vpack.c.bf16 %v441_v25, %v441_v25  ;;  %v422_v34 = vmul.f32 0.5, %v406_v27  ;;  %v356_v36 = vadd.f32 %v340_v28, %v908_v35  ;;  %v934_v38 = vadd.f32 %v839_v43, %v231_v29 }
  0xda   :  { %v643_v39 = vpop.eup %642  ;;  %v450_v56 = vpack.c.bf16 %v434_v30, %v434_v30  ;;  %646 = vtanh.f32 %v375_v31  ;;  %v379_v12 = vmul.f32 0.7978846, %v363_v32  ;;  %v316_v40 = vmul.f32 %v930_v20, %v930_v20 }
  0xdb   :  { %v645_v58 = vpop.eup %644  ;;  %474 = vst.msk [vmem:[%s1000_s3 + $0x2c] sm:$0xf] %vm462_vm1, %v457_v33  ;;  %v438_v41 = vmul.f32 %v422_v34, %v865_v7  ;;  %v410_v42 = vadd.f32 1.0, %v643_v39  ;;  %v372_v14 = vmul.f32 0.7978846, %v356_v36  ;;  %v309_v43 = vmul.f32 %v934_v38, %v934_v38 }
  0xdc   :  { %467 = vst.msk [vmem:[%s1000_s3 + $0x10] sm:$0xf] %vm462_vm1, %v450_v56  ;;  %v403_v45 = vadd.f32 1.0, %v645_v58  ;;  %648 = vtanh.f32 %v379_v12  ;;  %v332_v46 = vmul.f32 %v316_v40, %v930_v20 }
  0xdd   :  { %v454_v47 = vpack.c.bf16 %v438_v41, %v438_v41  ;;  %v426_v48 = vmul.f32 0.5, %v410_v42  ;;  %650 = vtanh.f32 %v372_v14  ;;  %v325_v49 = vmul.f32 %v309_v43, %v934_v38  ;;  %v250_v7 = vpop.f32.mrf.mxu2 }
  0xde   :  { %v419_v50 = vmul.f32 0.5, %v403_v45  ;;  %v348_v51 = vmul.f32 0.044715, %v332_v46  ;;  %v251_v52 = vadd.f32 %v812_v61, %v250_v7 }
  0xdf   :  { %471 = vst.msk [vmem:[%s1000_s3 + $0x20] sm:$0xf] %vm462_vm1, %v454_v47  ;;  %v442_v53 = vmul.f32 %v426_v48, %v875_v23  ;;  %v341_v54 = vmul.f32 0.044715, %v325_v49 }
  0xe0   :  { %v647_v57 = vpop.eup %646  ;;  %v435_v60 = vmul.f32 %v419_v50, %v879_v26  ;;  %v364_v62 = vadd.f32 %v348_v51, %v930_v20  ;;  %v300_v63 = vadd.f32 %v299_v55, %v251_v52 }
  0xe1   :  { %v458_v0 = vpack.c.bf16 %v442_v53, %v442_v53  ;;  %v407_v1 = vadd.f32 1.0, %v647_v57  ;;  %v357_v3 = vadd.f32 %v341_v54, %v934_v38 }
  0xe2   :  { %v649_v61 = vpop.eup %648  ;;  %v451_v5 = vpack.c.bf16 %v435_v60, %v435_v60  ;;  %v380_v37 = vmul.f32 0.7978846, %v364_v62  ;;  %v317_v6 = vmul.f32 %v300_v63, %v300_v63 }
  0xe3   :  { %v651_v2 = vpop.eup %650  ;;  %475 = vst.msk [vmem:[%s1000_s3 + $0x30] sm:$0xf] %vm462_vm1, %v458_v0  ;;  %v423_v23 = vmul.f32 0.5, %v407_v1  ;;  %v411_v4 = vadd.f32 1.0, %v649_v61  ;;  %v373_v26 = vmul.f32 0.7978846, %v357_v3 }
  0xe4   :  { %468 = vst.msk [vmem:[%s1000_s3 + $0x14] sm:$0xf] %vm462_vm1, %v451_v5  ;;  %v404_v24 = vadd.f32 1.0, %v651_v2  ;;  %652 = vtanh.f32 %v380_v37  ;;  %v333_v8 = vmul.f32 %v317_v6, %v300_v63 }
  0xe5   :  { %v439_v9 = vmul.f32 %v423_v23, %v894_v44  ;;  %v427_v10 = vmul.f32 0.5, %v411_v4  ;;  %654 = vtanh.f32 %v373_v26 }
  0xe6   :  { %v420_v11 = vmul.f32 0.5, %v404_v24  ;;  %v349_v13 = vmul.f32 0.044715, %v333_v8 }
  0xe7   :  { %v455_v15 = vpack.c.bf16 %v439_v9, %v439_v9  ;;  %v443_v16 = vmul.f32 %v427_v10, %v903_v59 }
  0xe8   :  { %v436_v17 = vmul.f32 %v420_v11, %v908_v35  ;;  %v365_v18 = vadd.f32 %v349_v13, %v300_v63 }
  0xe9   :  { %472 = vst.msk [vmem:[%s1000_s3 + $0x24] sm:$0xf] %vm462_vm1, %v455_v15  ;;  %v459_v19 = vpack.c.bf16 %v443_v16, %v443_v16 }
  0xea   :  { %v653_v21 = vpop.eup %652  ;;  %v452_v22 = vpack.c.bf16 %v436_v17, %v436_v17  ;;  %v381_v25 = vmul.f32 0.7978846, %v365_v18 }
  0xeb   :  { %v655_v44 = vpop.eup %654  ;;  %476 = vst.msk [vmem:[%s1000_s3 + $0x34] sm:$0xf] %vm462_vm1, %v459_v19  ;;  %v412_v27 = vadd.f32 1.0, %v653_v21 }
  0xec   :  { %469 = vst.msk [vmem:[%s1000_s3 + $0x18] sm:$0xf] %vm462_vm1, %v452_v22  ;;  %v405_v59 = vadd.f32 1.0, %v655_v44  ;;  %656 = vtanh.f32 %v381_v25 }
  0xed   :  { %v428_v35 = vmul.f32 0.5, %v412_v27 }
  0xee   :  { %v421_v28 = vmul.f32 0.5, %v405_v59 }
  0xef   :  { %v444_v29 = vmul.f32 %v428_v35, %v930_v20 }
  0xf0   :  { %v437_v30 = vmul.f32 %v421_v28, %v934_v38 }
  0xf1   :  { %v460_v31 = vpack.c.bf16 %v444_v29, %v444_v29 }
  0xf2   :  { %v657_v32 = vpop.eup %656  ;;  %v453_v33 = vpack.c.bf16 %v437_v30, %v437_v30 }
  0xf3   :  { %477 = vst.msk [vmem:[%s1000_s3 + $0x38] sm:$0xf] %vm462_vm1, %v460_v31  ;;  %v413_v34 = vadd.f32 1.0, %v657_v32 }
  0xf4   :  { %470 = vst.msk [vmem:[%s1000_s3 + $0x1c] sm:$0xf] %vm462_vm1, %v453_v33 }
  0xf5   :  { %v429_v36 = vmul.f32 0.5, %v413_v34 }
  0xf7   :  { %v445_v39 = vmul.f32 %v429_v36, %v300_v63 }
  0xf9   :  { %v461_v56 = vpack.c.bf16 %v445_v39, %v445_v39 }
  0xfb   :  { %478 = vst.msk [vmem:[%s1000_s3 + $0x3c] sm:$0xf] %vm462_vm1, %v461_v56 }

// kernel: coatnet_forward.5
= control target key start
LH: loop header
LB: loop body
LE: loop exit
PB: predicated region body
PF: predicated region fallthrough
CT: control target
= control target key end

     0   :  { %vm323_vm0 = vcmask 261120   ;;  %vm511_vm1 = vcmask 257024   ;;  %s1547_s1 = inlined_call_operand.vmem [shape: bf16[288,32], index: 1, kind: input, shape index: {}]   ;;  %s1548_s0 = inlined_call_operand.vmem [shape: bf16[128,288], index: 0, kind: input, shape index: {}]   ;;  %s1549_s2 = inlined_call_operand.vmem [shape: f32[1,32], index: 2, kind: input, shape index: {}]   ;;  %s1550_s3 = inlined_call_operand.vmem [shape: bf16[32,128], index: 3, kind: input, shape index: {}]   ;;  %s1551_s4 = inlined_call_operand.vmem [shape: f32[1,128], index: 4, kind: input, shape index: {}]   ;;  %s1552_s5 = inlined_call_operand.vmem [shape: bf16[128,32], index: 5, kind: output, shape index: {0}]   ;;  %s1553_s6 = inlined_call_operand.vmem [shape: bf16[128,128], index: 6, kind: output, shape index: {1}]  }
   0x1   :  { %v1068_v0 = vld [vmem:[%s1547_s1 + $0x38] sm:$0xff]  ;;  %v1067_v2 = vld [vmem:[%s1547_s1 + $0x30] sm:$0xff]  ;;  %v1078_v4 = vld [vmem:[%s1547_s1 + $0x88] sm:$0xff] }
   0x2   :  { %v1076_v1 = vld [vmem:[%s1547_s1 + $0x78] sm:$0xff]  ;;  %348 = vmatpush.bf16.msra.mxu0 %v1068_v0  ;;  %v1075_v3 = vld [vmem:[%s1547_s1 + $0x70] sm:$0xff]  ;;  %452 = vmatpush.bf16.msra.mxu2 %v1078_v4  ;;  %v1077_v5 = vld [vmem:[%s1547_s1 + $0x80] sm:$0xff] }
   0x3   :  { %397 = vmatpush.bf16.msra.mxu1 %v1076_v1  ;;  %v855_v6 = vld [vmem:[%s1548_s0 + $0x8] sm:$0xf]  ;;  %v1039_v7 = vld [vmem:[%s1548_s0 + $0x10] sm:$0xf0]  ;;  %v1065_v11 = vld [vmem:[%s1547_s1 + $0x20] sm:$0xff] }
   0x4   :  { %v1066_v8 = vld [vmem:[%s1547_s1 + $0x28] sm:$0xff]  ;;  %v856_v10 = vor.u32 %v1039_v7, %v855_v6  ;;  %v1073_v12 = vld [vmem:[%s1547_s1 + $0x60] sm:$0xff]  ;;  %v1064_v13 = vld [vmem:[%s1547_s1 + $0x18] sm:$0xff] }
   0x5   :  { %v1074_v9 = vld [vmem:[%s1547_s1 + $0x68] sm:$0xff]  ;;  %v1072_v14 = vld [vmem:[%s1547_s1 + $0x58] sm:$0xff]  ;;  %v1063_v15 = vld [vmem:[%s1547_s1 + $0x10] sm:$0xff] }
   0x6   :  { %349 = vmatpush.bf16.msra.mxu0 %v1067_v2  ;;  %453 = vmatpush.bf16.msra.mxu2 %v1077_v5  ;;  %v1071_v16 = vld [vmem:[%s1547_s1 + $0x50] sm:$0xff]  ;;  %v867_v17 = vld [vmem:[%s1548_s0 + $0x20] sm:$0xf]  ;;  %v1042_v18 = vld [vmem:[%s1548_s0 + $0x28] sm:$0xf0] }
   0x7   :  { %398 = vmatpush.bf16.msra.mxu1 %v1075_v3  ;;  %v1062_v19 = vld [vmem:[%s1547_s1 + $0x8] sm:$0xff]  ;;  %v868_v21 = vor.u32 %v1042_v18, %v867_v17  ;;  %v1061_v22 = vld [vmem:[%s1547_s1] sm:$0xff]  ;;  %v849_v27 = vld [vmem:[%s1548_s0 + $0xc] sm:$0xf0] }
   0x8   :  { %v1070_v20 = vld [vmem:[%s1547_s1 + $0x48] sm:$0xff]  ;;  %v1069_v23 = vld [vmem:[%s1547_s1 + $0x40] sm:$0xff]  ;;  %v879_v30 = vld [vmem:[%s1548_s0 + $0x38] sm:$0xf] }
   0x9   :  { %1013 = vmatmul.msk.bf16.vlgmr.msra.gmra.mxu2 %vm323_vm0, %v856_v10  ;;  %v847_v24 = vld [vmem:[%s1548_s0] sm:$0xf]  ;;  %v1038_v25 = vld [vmem:[%s1548_s0 + $0x8] sm:$0xf0]  ;;  %v1037_v26 = vld [vmem:[%s1548_s0 + $0x4] sm:$0xf] }
   0xa   :  { %350 = vmatpush.bf16.msra.mxu0 %v1066_v8  ;;  %v848_v28 = vor.u32 %v1038_v25, %v847_v24  ;;  %v852_v29 = vor.u32 %v1037_v26, %v849_v27  ;;  %v1045_v31 = vld [vmem:[%s1548_s0 + $0x40] sm:$0xf0]  ;;  %v859_v33 = vld [vmem:[%s1548_s0 + $0x18] sm:$0xf]  ;;  %v1040_v35 = vld [vmem:[%s1548_s0 + $0x1c] sm:$0xf] }
   0xb   :  { %399 = vmatpush.bf16.msra.mxu1 %v1074_v9  ;;  %v880_v32 = vor.u32 %v1045_v31, %v879_v30  ;;  %v1041_v34 = vld [vmem:[%s1548_s0 + $0x20] sm:$0xf0]  ;;  %v861_v36 = vld [vmem:[%s1548_s0 + $0x24] sm:$0xf0]  ;;  %v891_v39 = vld [vmem:[%s1548_s0 + $0x50] sm:$0xf] }
   0xc   :  { %v860_v37 = vor.u32 %v1041_v34, %v859_v33  ;;  %v864_v38 = vor.u32 %v1040_v35, %v861_v36  ;;  %v1048_v40 = vld [vmem:[%s1548_s0 + $0x58] sm:$0xf0]  ;;  %v871_v42 = vld [vmem:[%s1548_s0 + $0x30] sm:$0xf]  ;;  %v1043_v44 = vld [vmem:[%s1548_s0 + $0x34] sm:$0xf] }
   0xd   :  { %v892_v41 = vor.u32 %v1048_v40, %v891_v39  ;;  %v1044_v43 = vld [vmem:[%s1548_s0 + $0x38] sm:$0xf0]  ;;  %v873_v45 = vld [vmem:[%s1548_s0 + $0x3c] sm:$0xf0]  ;;  %v903_v48 = vld [vmem:[%s1548_s0 + $0x68] sm:$0xf] }
   0xe   :  { %351 = vmatpush.bf16.msra.mxu0 %v1065_v11  ;;  %v872_v46 = vor.u32 %v1044_v43, %v871_v42  ;;  %v876_v47 = vor.u32 %v1043_v44, %v873_v45  ;;  %v1051_v49 = vld [vmem:[%s1548_s0 + $0x70] sm:$0xf0]  ;;  %v883_v51 = vld [vmem:[%s1548_s0 + $0x48] sm:$0xf]  ;;  %v1046_v53 = vld [vmem:[%s1548_s0 + $0x4c] sm:$0xf] }
   0xf   :  { %400 = vmatpush.bf16.msra.mxu1 %v1073_v12  ;;  %v904_v50 = vor.u32 %v1051_v49, %v903_v48  ;;  %v1047_v52 = vld [vmem:[%s1548_s0 + $0x50] sm:$0xf0]  ;;  %v885_v54 = vld [vmem:[%s1548_s0 + $0x54] sm:$0xf0]  ;;  %v915_v57 = vld [vmem:[%s1548_s0 + $0x80] sm:$0xf] }
  0x10   :  { %v884_v55 = vor.u32 %v1047_v52, %v883_v51  ;;  %v888_v56 = vor.u32 %v1046_v53, %v885_v54  ;;  %v1054_v58 = vld [vmem:[%s1548_s0 + $0x88] sm:$0xf0]  ;;  %v895_v60 = vld [vmem:[%s1548_s0 + $0x60] sm:$0xf]  ;;  %v1049_v62 = vld [vmem:[%s1548_s0 + $0x64] sm:$0xf] }
  0x11   :  { %v916_v59 = vor.u32 %v1054_v58, %v915_v57  ;;  %v1050_v61 = vld [vmem:[%s1548_s0 + $0x68] sm:$0xf0]  ;;  %v897_v63 = vld [vmem:[%s1548_s0 + $0x6c] sm:$0xf0]  ;;  %v927_v2 = vld [vmem:[%s1548_s0 + $0x98] sm:$0xf] }
  0x12   :  { %352 = vmatpush.bf16.msra.mxu0 %v1064_v13  ;;  %v896_v0 = vor.u32 %v1050_v61, %v895_v60  ;;  %v900_v1 = vor.u32 %v1049_v62, %v897_v63  ;;  %v1057_v3 = vld [vmem:[%s1548_s0 + $0xa0] sm:$0xf0]  ;;  %v907_v5 = vld [vmem:[%s1548_s0 + $0x78] sm:$0xf]  ;;  %v1052_v7 = vld [vmem:[%s1548_s0 + $0x7c] sm:$0xf] }
  0x13   :  { %401 = vmatpush.bf16.msra.mxu1 %v1072_v14  ;;  %v928_v4 = vor.u32 %v1057_v3, %v927_v2  ;;  %v1053_v6 = vld [vmem:[%s1548_s0 + $0x80] sm:$0xf0]  ;;  %v909_v8 = vld [vmem:[%s1548_s0 + $0x84] sm:$0xf0]  ;;  %v939_v11 = vld [vmem:[%s1548_s0 + $0xb0] sm:$0xf] }
  0x14   :  { %v908_v9 = vor.u32 %v1053_v6, %v907_v5  ;;  %v912_v10 = vor.u32 %v1052_v7, %v909_v8  ;;  %v1060_v12 = vld [vmem:[%s1548_s0 + $0xb8] sm:$0xf0]  ;;  %v919_v14 = vld [vmem:[%s1548_s0 + $0x90] sm:$0xf]  ;;  %v921_v17 = vld [vmem:[%s1548_s0 + $0x9c] sm:$0xf0] }
  0x15   :  { %v940_v13 = vor.u32 %v1060_v12, %v939_v11  ;;  %v1080_v24 = vld [vmem:[%s1550_s3 + $0x8] sm:$0xff]  ;;  %v1412_v30 = vld [vmem:[%s1549_s2] ss:$0 sm:$0xff] }
  0x16   :  { %353 = vmatpush.bf16.msra.mxu0 %v1063_v15  ;;  %v1056_v15 = vld [vmem:[%s1548_s0 + $0x98] sm:$0xf0]  ;;  %618 = vmatpush.bf16.msra.mxu3 %v1080_v24 }
  0x17   :  { %402 = vmatpush.bf16.msra.mxu1 %v1071_v16  ;;  %v1055_v16 = vld [vmem:[%s1548_s0 + $0x94] sm:$0xf]  ;;  %v920_v18 = vor.u32 %v1056_v15, %v919_v14 }
  0x19   :  { %1014 = vmatmul.msk.bf16.gmra.mxu2 %vm323_vm0, %v868_v21  ;;  %v1059_v21 = vld [vmem:[%s1548_s0 + $0xb0] sm:$0xf0] }
  0x1a   :  { %354 = vmatpush.bf16.msra.mxu0 %v1062_v19  ;;  %v924_v19 = vor.u32 %v1055_v16, %v921_v17 }
  0x1b   :  { %403 = vmatpush.bf16.msra.mxu1 %v1070_v20  ;;  %v931_v20 = vld [vmem:[%s1548_s0 + $0xa8] sm:$0xf] }
  0x1c   :  { %v932_v25 = vor.u32 %v1059_v21, %v931_v20 }
  0x1e   :  { %355 = vmatpush.bf16.msra.mxu0 %v1061_v22  ;;  %v1058_v22 = vld [vmem:[%s1548_s0 + $0xac] sm:$0xf] }
  0x1f   :  { %404 = vmatpush.bf16.msra.mxu1 %v1069_v23  ;;  %v933_v23 = vld [vmem:[%s1548_s0 + $0xb4] sm:$0xf0] }
  0x20   :  { %v936_v26 = vor.u32 %v1058_v22, %v933_v23 }
  0x21   :  { %356 = vmatmul.bf16.vlgmr.msra.gmra.mxu0 %v848_v28  ;;  %v1079_v28 = vld [vmem:[%s1550_s3] sm:$0xff] }
  0x22   :  { %405 = vmatmul.bf16.vlgmr.msra.gmra.mxu1 %v852_v29  ;;  %619 = vmatpush.bf16.msra.mxu3 %v1079_v28 }
  0x29   :  { %1015 = vmatmul.msk.bf16.gmra.mxu2 %vm323_vm0, %v880_v32 }
  0x31   :  { %361 = vmatmul.bf16.gmra.mxu0 %v860_v37 }
  0x32   :  { %410 = vmatmul.bf16.gmra.mxu1 %v864_v38 }
  0x39   :  { %1016 = vmatmul.msk.bf16.gmra.mxu2 %vm323_vm0, %v892_v41 }
  0x41   :  { %366 = vmatmul.bf16.gmra.mxu0 %v872_v46 }
  0x42   :  { %415 = vmatmul.bf16.gmra.mxu1 %v876_v47 }
  0x49   :  { %1017 = vmatmul.msk.bf16.gmra.mxu2 %vm323_vm0, %v904_v50 }
  0x51   :  { %371 = vmatmul.bf16.gmra.mxu0 %v884_v55 }
  0x52   :  { %420 = vmatmul.bf16.gmra.mxu1 %v888_v56 }
  0x59   :  { %1018 = vmatmul.msk.bf16.gmra.mxu2 %vm323_vm0, %v916_v59 }
  0x61   :  { %376 = vmatmul.bf16.gmra.mxu0 %v896_v0 }
  0x62   :  { %425 = vmatmul.bf16.gmra.mxu1 %v900_v1 }
  0x69   :  { %1019 = vmatmul.msk.bf16.gmra.mxu2 %vm323_vm0, %v928_v4 }
  0x71   :  { %381 = vmatmul.bf16.gmra.mxu0 %v908_v9 }
  0x72   :  { %430 = vmatmul.bf16.gmra.mxu1 %v912_v10 }
  0x79   :  { %1020 = vmatmul.msk.bf16.gmra.mxu2 %vm323_vm0, %v940_v13 }
  0x81   :  { %386 = vmatmul.bf16.gmra.mxu0 %v920_v18 }
  0x82   :  { %435 = vmatmul.bf16.gmra.mxu1 %v924_v19 }
  0x8c   :  { %v455_v27 = vpop.f32.mrf.mxu2 }
  0x91   :  { %391 = vmatmul.bf16.gmra.mxu0 %v932_v25 }
  0x92   :  { %440 = vmatmul.bf16.gmra.mxu1 %v936_v26 }
  0x94   :  { %v457_v29 = vpop.f32.mrf.mxu2 }
  0x9c   :  { %v460_v34 = vpop.f32.mrf.mxu2 }
  0x9e   :  { %v357_v31 = vpop.f32.mrf.mxu0 }
  0x9f   :  { %v406_v32 = vpop.f32.mrf.mxu1  ;;  %v358_v33 = vadd.f32 %v1412_v30, %v357_v31 }
  0xa1   :  { %v407_v35 = vadd.f32 %v406_v32, %v358_v33 }
  0xa3   :  { %v456_v36 = vadd.f32 %v455_v27, %v407_v35 }
  0xa4   :  { %v462_v41 = vpop.f32.mrf.mxu2 }
  0xa5   :  { %v495_v37 = vpack.c.bf16 %v456_v36, %v456_v36 }
  0xa6   :  { %v359_v38 = vpop.f32.mrf.mxu0 }
  0xa7   :  { %v408_v39 = vpop.f32.mrf.mxu1  ;;  %512 = vst.msk [vmem:[%s1552_s5] sm:$0xf] %vm511_vm1, %v495_v37  ;;  %v360_v40 = vadd.f32 %v1412_v30, %v359_v38  ;;  %v552_v47 = vunpack.c.l.b16 %v495_v37 }
  0xa9   :  { %v409_v42 = vadd.f32 %v408_v39, %v360_v40 }
  0xab   :  { %v458_v43 = vadd.f32 %v457_v29, %v409_v42 }
  0xac   :  { %v465_v50 = vpop.f32.mrf.mxu2 }
  0xad   :  { %v496_v44 = vpack.c.bf16 %v458_v43, %v458_v43 }
  0xae   :  { %v362_v45 = vpop.f32.mrf.mxu0 }
  0xaf   :  { %v411_v46 = vpop.f32.mrf.mxu1  ;;  %513 = vst.msk [vmem:[%s1552_s5 + $0x4] sm:$0xf] %vm511_vm1, %v496_v44  ;;  %v553_v48 = vunpack.c.l.b16 %v496_v44  ;;  %v363_v49 = vadd.f32 %v1412_v30, %v362_v45 }
  0xb1   :  { %v412_v51 = vadd.f32 %v411_v46, %v363_v49  ;;  %v568_v52 = vpack.c.b16 %v553_v48, %v552_v47 }
  0xb3   :  { %v461_v53 = vadd.f32 %v460_v34, %v412_v51  ;;  %1029 = vmatmul.msk.bf16.vlgmr.msra.gmra.mxu3 %vm323_vm0, %v568_v52 }
  0xb4   :  { %v467_v58 = vpop.f32.mrf.mxu2 }
  0xb5   :  { %v497_v54 = vpack.c.bf16 %v461_v53, %v461_v53 }
  0xb6   :  { %v364_v55 = vpop.f32.mrf.mxu0 }
  0xb7   :  { %v413_v56 = vpop.f32.mrf.mxu1  ;;  %514 = vst.msk [vmem:[%s1552_s5 + $0x8] sm:$0xf] %vm511_vm1, %v497_v54  ;;  %v365_v57 = vadd.f32 %v1412_v30, %v364_v55  ;;  %v554_v0 = vunpack.c.l.b16 %v497_v54 }
  0xb9   :  { %v414_v59 = vadd.f32 %v413_v56, %v365_v57 }
  0xbb   :  { %v463_v60 = vadd.f32 %v462_v41, %v414_v59 }
  0xbc   :  { %v470_v3 = vpop.f32.mrf.mxu2 }
  0xbd   :  { %v498_v61 = vpack.c.bf16 %v463_v60, %v463_v60 }
  0xbe   :  { %v367_v62 = vpop.f32.mrf.mxu0 }
  0xbf   :  { %v416_v63 = vpop.f32.mrf.mxu1  ;;  %515 = vst.msk [vmem:[%s1552_s5 + $0xc] sm:$0xf] %vm511_vm1, %v498_v61  ;;  %v555_v1 = vunpack.c.l.b16 %v498_v61  ;;  %v368_v2 = vadd.f32 %v1412_v30, %v367_v62 }
  0xc1   :  { %v417_v4 = vadd.f32 %v416_v63, %v368_v2  ;;  %v569_v5 = vpack.c.b16 %v555_v1, %v554_v0 }
  0xc3   :  { %v466_v6 = vadd.f32 %v465_v50, %v417_v4  ;;  %1030 = vmatmul.msk.bf16.gmra.mxu3 %vm323_vm0, %v569_v5 }
  0xc4   :  { %v472_v12 = vpop.f32.mrf.mxu2 }
  0xc5   :  { %v499_v7 = vpack.c.bf16 %v466_v6, %v466_v6 }
  0xc6   :  { %v369_v8 = vpop.f32.mrf.mxu0 }
  0xc7   :  { %v418_v9 = vpop.f32.mrf.mxu1  ;;  %516 = vst.msk [vmem:[%s1552_s5 + $0x10] sm:$0xf] %vm511_vm1, %v499_v7  ;;  %v370_v10 = vadd.f32 %v1412_v30, %v369_v8  ;;  %v556_v17 = vunpack.c.l.b16 %v499_v7 }
  0xc9   :  { %v419_v11 = vadd.f32 %v418_v9, %v370_v10 }
  0xcb   :  { %v468_v13 = vadd.f32 %v467_v58, %v419_v11 }
  0xcc   :  { %v475_v23 = vpop.f32.mrf.mxu2 }
  0xcd   :  { %v500_v14 = vpack.c.bf16 %v468_v13, %v468_v13 }
  0xce   :  { %v372_v15 = vpop.f32.mrf.mxu0 }
  0xcf   :  { %v421_v16 = vpop.f32.mrf.mxu1  ;;  %517 = vst.msk [vmem:[%s1552_s5 + $0x14] sm:$0xf] %vm511_vm1, %v500_v14  ;;  %v557_v18 = vunpack.c.l.b16 %v500_v14  ;;  %v373_v19 = vadd.f32 %v1412_v30, %v372_v15 }
  0xd1   :  { %v422_v20 = vadd.f32 %v421_v16, %v373_v19  ;;  %v570_v21 = vpack.c.b16 %v557_v18, %v556_v17 }
  0xd3   :  { %v471_v22 = vadd.f32 %v470_v3, %v422_v20  ;;  %1031 = vmatmul.msk.bf16.gmra.mxu3 %vm323_vm0, %v570_v21 }
  0xd4   :  { %v477_v32 = vpop.f32.mrf.mxu2 }
  0xd5   :  { %v501_v24 = vpack.c.bf16 %v471_v22, %v471_v22 }
  0xd6   :  { %v374_v25 = vpop.f32.mrf.mxu0 }
  0xd7   :  { %v423_v26 = vpop.f32.mrf.mxu1  ;;  %518 = vst.msk [vmem:[%s1552_s5 + $0x18] sm:$0xf] %vm511_vm1, %v501_v24  ;;  %v375_v27 = vadd.f32 %v1412_v30, %v374_v25  ;;  %v558_v35 = vunpack.c.l.b16 %v501_v24 }
  0xd9   :  { %v424_v28 = vadd.f32 %v423_v26, %v375_v27 }
  0xdb   :  { %v473_v29 = vadd.f32 %v472_v12, %v424_v28 }
  0xdc   :  { %v480_v45 = vpop.f32.mrf.mxu2 }
  0xdd   :  { %v502_v31 = vpack.c.bf16 %v473_v29, %v473_v29 }
  0xde   :  { %v377_v33 = vpop.f32.mrf.mxu0 }
  0xdf   :  { %v426_v34 = vpop.f32.mrf.mxu1  ;;  %519 = vst.msk [vmem:[%s1552_s5 + $0x1c] sm:$0xf] %vm511_vm1, %v502_v31  ;;  %v559_v36 = vunpack.c.l.b16 %v502_v31  ;;  %v378_v37 = vadd.f32 %v1412_v30, %v377_v33 }
  0xe1   :  { %v427_v38 = vadd.f32 %v426_v34, %v378_v37  ;;  %v571_v39 = vpack.c.b16 %v559_v36, %v558_v35 }
  0xe3   :  { %v476_v40 = vadd.f32 %v475_v23, %v427_v38  ;;  %1032 = vmatmul.msk.bf16.gmra.mxu3 %vm323_vm0, %v571_v39  ;;  %v1505_v39 = vld [vmem:[%s1551_s4] ss:$0 sm:$0xff] }
  0xe4   :  { %v482_v55 = vpop.f32.mrf.mxu2 }
  0xe5   :  { %v503_v41 = vpack.c.bf16 %v476_v40, %v476_v40 }
  0xe6   :  { %v379_v42 = vpop.f32.mrf.mxu0 }
  0xe7   :  { %v428_v43 = vpop.f32.mrf.mxu1  ;;  %520 = vst.msk [vmem:[%s1552_s5 + $0x20] sm:$0xf] %vm511_vm1, %v503_v41  ;;  %v380_v44 = vadd.f32 %v1412_v30, %v379_v42  ;;  %v560_v51 = vunpack.c.l.b16 %v503_v41 }
  0xe9   :  { %v429_v46 = vadd.f32 %v428_v43, %v380_v44 }
  0xeb   :  { %v478_v47 = vadd.f32 %v477_v32, %v429_v46 }
  0xec   :  { %v485_v0 = vpop.f32.mrf.mxu2 }
  0xed   :  { %v504_v48 = vpack.c.bf16 %v478_v47, %v478_v47 }
  0xee   :  { %v382_v49 = vpop.f32.mrf.mxu0 }
  0xef   :  { %v431_v50 = vpop.f32.mrf.mxu1  ;;  %521 = vst.msk [vmem:[%s1552_s5 + $0x24] sm:$0xf] %vm511_vm1, %v504_v48  ;;  %v561_v52 = vunpack.c.l.b16 %v504_v48  ;;  %v383_v53 = vadd.f32 %v1412_v30, %v382_v49 }
  0xf1   :  { %v432_v54 = vadd.f32 %v431_v50, %v383_v53  ;;  %v572_v56 = vpack.c.b16 %v561_v52, %v560_v51 }
  0xf3   :  { %v481_v57 = vadd.f32 %v480_v45, %v432_v54  ;;  %1033 = vmatmul.msk.bf16.gmra.mxu3 %vm323_vm0, %v572_v56 }
  0xf4   :  { %v487_v11 = vpop.f32.mrf.mxu2 }
  0xf5   :  { %v505_v58 = vpack.c.bf16 %v481_v57, %v481_v57 }
  0xf6   :  { %v384_v59 = vpop.f32.mrf.mxu0 }
  0xf7   :  { %v433_v60 = vpop.f32.mrf.mxu1  ;;  %522 = vst.msk [vmem:[%s1552_s5 + $0x28] sm:$0xf] %vm511_vm1, %v505_v58  ;;  %v385_v61 = vadd.f32 %v1412_v30, %v384_v59  ;;  %v562_v4 = vunpack.c.l.b16 %v505_v58 }
  0xf9   :  { %v434_v62 = vadd.f32 %v433_v60, %v385_v61 }
  0xfb   :  { %v483_v63 = vadd.f32 %v482_v55, %v434_v62 }
  0xfc   :  { %v490_v23 = vpop.f32.mrf.mxu2 }
  0xfd   :  { %v506_v1 = vpack.c.bf16 %v483_v63, %v483_v63 }
  0xfe   :  { %v387_v2 = vpop.f32.mrf.mxu0 }
  0xff   :  { %v436_v3 = vpop.f32.mrf.mxu1  ;;  %523 = vst.msk [vmem:[%s1552_s5 + $0x2c] sm:$0xf] %vm511_vm1, %v506_v1  ;;  %v563_v5 = vunpack.c.l.b16 %v506_v1  ;;  %v388_v6 = vadd.f32 %v1412_v30, %v387_v2 }
 0x101   :  { %v437_v7 = vadd.f32 %v436_v3, %v388_v6  ;;  %v573_v8 = vpack.c.b16 %v563_v5, %v562_v4 }
 0x103   :  { %v486_v9 = vadd.f32 %v485_v0, %v437_v7  ;;  %1034 = vmatmul.msk.bf16.gmra.mxu3 %vm323_vm0, %v573_v8 }
 0x104   :  { %v492_v33 = vpop.f32.mrf.mxu2 }
 0x105   :  { %v507_v10 = vpack.c.bf16 %v486_v9, %v486_v9 }
 0x106   :  { %v389_v12 = vpop.f32.mrf.mxu0 }
 0x107   :  { %v438_v13 = vpop.f32.mrf.mxu1  ;;  %524 = vst.msk [vmem:[%s1552_s5 + $0x30] sm:$0xf] %vm511_vm1, %v507_v10  ;;  %v390_v14 = vadd.f32 %v1412_v30, %v389_v12  ;;  %v564_v20 = vunpack.c.l.b16 %v507_v10 }
 0x109   :  { %v439_v15 = vadd.f32 %v438_v13, %v390_v14 }
 0x10b   :  { %v488_v16 = vadd.f32 %v487_v11, %v439_v15 }
 0x10d   :  { %v508_v17 = vpack.c.bf16 %v488_v16, %v488_v16 }
 0x10e   :  { %v392_v18 = vpop.f32.mrf.mxu0 }
 0x10f   :  { %v441_v19 = vpop.f32.mrf.mxu1  ;;  %525 = vst.msk [vmem:[%s1552_s5 + $0x34] sm:$0xf] %vm511_vm1, %v508_v17  ;;  %v565_v21 = vunpack.c.l.b16 %v508_v17  ;;  %v393_v22 = vadd.f32 %v1412_v30, %v392_v18 }
 0x111   :  { %v442_v24 = vadd.f32 %v441_v19, %v393_v22  ;;  %v574_v25 = vpack.c.b16 %v565_v21, %v564_v20 }
 0x113   :  { %v491_v26 = vadd.f32 %v490_v23, %v442_v24  ;;  %1035 = vmatmul.msk.bf16.gmra.mxu3 %vm323_vm0, %v574_v25 }
 0x115   :  { %v509_v27 = vpack.c.bf16 %v491_v26, %v491_v26 }
 0x116   :  { %v394_v28 = vpop.f32.mrf.mxu0 }
 0x117   :  { %526 = vst.msk [vmem:[%s1552_s5 + $0x38] sm:$0xf] %vm511_vm1, %v509_v27  ;;  %v395_v29 = vadd.f32 %v1412_v30, %v394_v28  ;;  %v443_v31 = vpop.f32.mrf.mxu1  ;;  %v566_v36 = vunpack.c.l.b16 %v509_v27 }
 0x119   :  { %v444_v32 = vadd.f32 %v443_v31, %v395_v29 }
 0x11b   :  { %v493_v34 = vadd.f32 %v492_v33, %v444_v32 }
 0x11d   :  { %v510_v35 = vpack.c.bf16 %v493_v34, %v493_v34 }
 0x11f   :  { %527 = vst.msk [vmem:[%s1552_s5 + $0x3c] sm:$0xf] %vm511_vm1, %v510_v35  ;;  %v567_v37 = vunpack.c.l.b16 %v510_v35 }
 0x121   :  { %v575_v38 = vpack.c.b16 %v567_v37, %v566_v36 }
 0x123   :  { %1036 = vmatmul.msk.bf16.gmra.mxu3 %vm323_vm0, %v575_v38 }
 0x136   :  { %v621_v30 = vpop.f32.mrf.mxu3 }
 0x137   :  { %v622_v40 = vadd.f32 %v1505_v39, %v621_v30 }
 0x139   :  { %v661_v41 = vmul.f32 %v622_v40, %v622_v40 }
 0x13b   :  { %v677_v42 = vmul.f32 %v661_v41, %v622_v40 }
 0x13d   :  { %v693_v43 = vmul.f32 0.044715, %v677_v42 }
 0x13e   :  { %v623_v44 = vpop.f32.mrf.mxu3 }
 0x13f   :  { %v709_v45 = vadd.f32 %v693_v43, %v622_v40  ;;  %v624_v46 = vadd.f32 %v1505_v39, %v623_v44 }
 0x141   :  { %v725_v47 = vmul.f32 0.7978846, %v709_v45  ;;  %v662_v48 = vmul.f32 %v624_v46, %v624_v46 }
 0x143   :  { %v678_v49 = vmul.f32 %v662_v48, %v624_v46  ;;  %1130 = vtanh.f32 %v725_v47 }
 0x145   :  { %v694_v50 = vmul.f32 0.044715, %v678_v49 }
 0x146   :  { %v626_v51 = vpop.f32.mrf.mxu3 }
 0x147   :  { %v710_v52 = vadd.f32 %v694_v50, %v624_v46  ;;  %v627_v53 = vadd.f32 %v1505_v39, %v626_v51 }
 0x149   :  { %v726_v54 = vmul.f32 0.7978846, %v710_v52  ;;  %v663_v55 = vmul.f32 %v627_v53, %v627_v53  ;;  %v1131_v56 = vpop.eup %1130 }
 0x14a   :  { %v757_v59 = vadd.f32 1.0, %v1131_v56 }
 0x14b   :  { %1132 = vtanh.f32 %v726_v54  ;;  %v679_v57 = vmul.f32 %v663_v55, %v627_v53 }
 0x14c   :  { %v773_v2 = vmul.f32 0.5, %v757_v59 }
 0x14d   :  { %v695_v58 = vmul.f32 0.044715, %v679_v57 }
 0x14e   :  { %v628_v60 = vpop.f32.mrf.mxu3  ;;  %v789_v7 = vmul.f32 %v773_v2, %v622_v40 }
 0x14f   :  { %v711_v61 = vadd.f32 %v695_v58, %v627_v53  ;;  %v629_v62 = vadd.f32 %v1505_v39, %v628_v60 }
 0x151   :  { %v1133_v63 = vpop.eup %1132  ;;  %v727_v0 = vmul.f32 0.7978846, %v711_v61  ;;  %v664_v1 = vmul.f32 %v629_v62, %v629_v62 }
 0x152   :  { %v758_v3 = vadd.f32 1.0, %v1133_v63 }
 0x153   :  { %v680_v4 = vmul.f32 %v664_v1, %v629_v62  ;;  %1134 = vtanh.f32 %v727_v0 }
 0x154   :  { %v774_v5 = vmul.f32 0.5, %v758_v3 }
 0x155   :  { %v696_v6 = vmul.f32 0.044715, %v680_v4 }
 0x156   :  { %v790_v8 = vmul.f32 %v774_v5, %v624_v46  ;;  %v631_v9 = vpop.f32.mrf.mxu3 }
 0x157   :  { %v712_v10 = vadd.f32 %v696_v6, %v629_v62  ;;  %v632_v11 = vadd.f32 %v1505_v39, %v631_v9 }
 0x158   :  { %v1084_v12 = vpack.c.bf16 %v790_v8, %v789_v7 }
 0x159   :  { %v728_v13 = vmul.f32 0.7978846, %v712_v10  ;;  %v665_v14 = vmul.f32 %v632_v11, %v632_v11  ;;  %v1135_v15 = vpop.eup %1134 }
 0x15a   :  { %1085 = vst [vmem:[%s1553_s6] sm:$0xff] %v1084_v12   ;;  %v759_v18 = vadd.f32 1.0, %v1135_v15 }
 0x15b   :  { %1136 = vtanh.f32 %v728_v13  ;;  %v681_v16 = vmul.f32 %v665_v14, %v632_v11 }
 0x15c   :  { %v775_v25 = vmul.f32 0.5, %v759_v18 }
 0x15d   :  { %v697_v17 = vmul.f32 0.044715, %v681_v16 }
 0x15e   :  { %v633_v19 = vpop.f32.mrf.mxu3  ;;  %v791_v31 = vmul.f32 %v775_v25, %v627_v53 }
 0x15f   :  { %v713_v20 = vadd.f32 %v697_v17, %v632_v11  ;;  %v634_v21 = vadd.f32 %v1505_v39, %v633_v19 }
 0x161   :  { %v1137_v22 = vpop.eup %1136  ;;  %v729_v23 = vmul.f32 0.7978846, %v713_v20  ;;  %v666_v24 = vmul.f32 %v634_v21, %v634_v21 }
 0x162   :  { %v760_v26 = vadd.f32 1.0, %v1137_v22 }
 0x163   :  { %v682_v27 = vmul.f32 %v666_v24, %v634_v21  ;;  %1138 = vtanh.f32 %v729_v23 }
 0x164   :  { %v776_v28 = vmul.f32 0.5, %v760_v26 }
 0x165   :  { %v698_v29 = vmul.f32 0.044715, %v682_v27 }
 0x166   :  { %v792_v32 = vmul.f32 %v776_v28, %v629_v62  ;;  %v636_v33 = vpop.f32.mrf.mxu3 }
 0x167   :  { %v714_v34 = vadd.f32 %v698_v29, %v634_v21  ;;  %v637_v35 = vadd.f32 %v1505_v39, %v636_v33 }
 0x168   :  { %v1089_v36 = vpack.c.bf16 %v792_v32, %v791_v31 }
 0x169   :  { %v730_v37 = vmul.f32 0.7978846, %v714_v34  ;;  %v667_v38 = vmul.f32 %v637_v35, %v637_v35  ;;  %v1139_v30 = vpop.eup %1138 }
 0x16a   :  { %1121 = vst [vmem:[%s1553_s6 + $0x8] sm:$0xff] %v1089_v36   ;;  %v761_v42 = vadd.f32 1.0, %v1139_v30 }
 0x16b   :  { %1140 = vtanh.f32 %v730_v37  ;;  %v683_v40 = vmul.f32 %v667_v38, %v637_v35 }
 0x16c   :  { %v777_v49 = vmul.f32 0.5, %v761_v42 }
 0x16d   :  { %v699_v41 = vmul.f32 0.044715, %v683_v40 }
 0x16e   :  { %v638_v43 = vpop.f32.mrf.mxu3  ;;  %v793_v54 = vmul.f32 %v777_v49, %v632_v11 }
 0x16f   :  { %v715_v44 = vadd.f32 %v699_v41, %v637_v35  ;;  %v639_v45 = vadd.f32 %v1505_v39, %v638_v43 }
 0x171   :  { %v1141_v46 = vpop.eup %1140  ;;  %v731_v47 = vmul.f32 0.7978846, %v715_v44  ;;  %v668_v48 = vmul.f32 %v639_v45, %v639_v45 }
 0x172   :  { %v762_v50 = vadd.f32 1.0, %v1141_v46 }
 0x173   :  { %v684_v51 = vmul.f32 %v668_v48, %v639_v45  ;;  %1142 = vtanh.f32 %v731_v47 }
 0x174   :  { %v778_v52 = vmul.f32 0.5, %v762_v50 }
 0x175   :  { %v700_v53 = vmul.f32 0.044715, %v684_v51 }
 0x176   :  { %v794_v55 = vmul.f32 %v778_v52, %v634_v21  ;;  %v641_v56 = vpop.f32.mrf.mxu3 }
 0x177   :  { %v716_v57 = vadd.f32 %v700_v53, %v639_v45  ;;  %v642_v58 = vadd.f32 %v1505_v39, %v641_v56 }
 0x178   :  { %v1094_v59 = vpack.c.bf16 %v794_v55, %v793_v54 }
 0x179   :  { %v732_v60 = vmul.f32 0.7978846, %v716_v57  ;;  %v669_v61 = vmul.f32 %v642_v58, %v642_v58  ;;  %v1143_v62 = vpop.eup %1142 }
 0x17a   :  { %1122 = vst [vmem:[%s1553_s6 + $0x10] sm:$0xff] %v1094_v59   ;;  %v763_v1 = vadd.f32 1.0, %v1143_v62 }
 0x17b   :  { %1144 = vtanh.f32 %v732_v60  ;;  %v685_v63 = vmul.f32 %v669_v61, %v642_v58 }
 0x17c   :  { %v779_v8 = vmul.f32 0.5, %v763_v1 }
 0x17d   :  { %v701_v0 = vmul.f32 0.044715, %v685_v63 }
 0x17e   :  { %v643_v2 = vpop.f32.mrf.mxu3  ;;  %v795_v13 = vmul.f32 %v779_v8, %v637_v35 }
 0x17f   :  { %v717_v3 = vadd.f32 %v701_v0, %v642_v58  ;;  %v644_v4 = vadd.f32 %v1505_v39, %v643_v2 }
 0x181   :  { %v1145_v5 = vpop.eup %1144  ;;  %v733_v6 = vmul.f32 0.7978846, %v717_v3  ;;  %v670_v7 = vmul.f32 %v644_v4, %v644_v4 }
 0x182   :  { %v764_v9 = vadd.f32 1.0, %v1145_v5 }
 0x183   :  { %v686_v10 = vmul.f32 %v670_v7, %v644_v4  ;;  %1146 = vtanh.f32 %v733_v6 }
 0x184   :  { %v780_v11 = vmul.f32 0.5, %v764_v9 }
 0x185   :  { %v702_v12 = vmul.f32 0.044715, %v686_v10 }
 0x186   :  { %v796_v14 = vmul.f32 %v780_v11, %v639_v45  ;;  %v646_v15 = vpop.f32.mrf.mxu3 }
 0x187   :  { %v718_v16 = vadd.f32 %v702_v12, %v644_v4  ;;  %v647_v17 = vadd.f32 %v1505_v39, %v646_v15 }
 0x188   :  { %v1099_v18 = vpack.c.bf16 %v796_v14, %v795_v13 }
 0x189   :  { %v734_v19 = vmul.f32 0.7978846, %v718_v16  ;;  %v671_v20 = vmul.f32 %v647_v17, %v647_v17  ;;  %v1147_v21 = vpop.eup %1146 }
 0x18a   :  { %1123 = vst [vmem:[%s1553_s6 + $0x18] sm:$0xff] %v1099_v18   ;;  %v765_v24 = vadd.f32 1.0, %v1147_v21 }
 0x18b   :  { %1148 = vtanh.f32 %v734_v19  ;;  %v687_v22 = vmul.f32 %v671_v20, %v647_v17 }
 0x18c   :  { %v781_v32 = vmul.f32 0.5, %v765_v24 }
 0x18d   :  { %v703_v23 = vmul.f32 0.044715, %v687_v22 }
 0x18e   :  { %v648_v25 = vpop.f32.mrf.mxu3  ;;  %v797_v37 = vmul.f32 %v781_v32, %v642_v58 }
 0x18f   :  { %v719_v26 = vadd.f32 %v703_v23, %v647_v17  ;;  %v649_v27 = vadd.f32 %v1505_v39, %v648_v25 }
 0x191   :  { %v1149_v28 = vpop.eup %1148  ;;  %v735_v29 = vmul.f32 0.7978846, %v719_v26  ;;  %v672_v31 = vmul.f32 %v649_v27, %v649_v27 }
 0x192   :  { %v766_v33 = vadd.f32 1.0, %v1149_v28 }
 0x193   :  { %v688_v34 = vmul.f32 %v672_v31, %v649_v27  ;;  %1150 = vtanh.f32 %v735_v29 }
 0x194   :  { %v782_v35 = vmul.f32 0.5, %v766_v33 }
 0x195   :  { %v704_v36 = vmul.f32 0.044715, %v688_v34 }
 0x196   :  { %v798_v38 = vmul.f32 %v782_v35, %v644_v4  ;;  %v651_v30 = vpop.f32.mrf.mxu3 }
 0x197   :  { %v720_v40 = vadd.f32 %v704_v36, %v649_v27  ;;  %v652_v41 = vadd.f32 %v1505_v39, %v651_v30 }
 0x198   :  { %v1104_v42 = vpack.c.bf16 %v798_v38, %v797_v37 }
 0x199   :  { %v736_v43 = vmul.f32 0.7978846, %v720_v40  ;;  %v673_v44 = vmul.f32 %v652_v41, %v652_v41  ;;  %v1151_v45 = vpop.eup %1150 }
 0x19a   :  { %1124 = vst [vmem:[%s1553_s6 + $0x20] sm:$0xff] %v1104_v42   ;;  %v767_v48 = vadd.f32 1.0, %v1151_v45 }
 0x19b   :  { %1152 = vtanh.f32 %v736_v43  ;;  %v689_v46 = vmul.f32 %v673_v44, %v652_v41 }
 0x19c   :  { %v783_v55 = vmul.f32 0.5, %v767_v48 }
 0x19d   :  { %v705_v47 = vmul.f32 0.044715, %v689_v46 }
 0x19e   :  { %v653_v49 = vpop.f32.mrf.mxu3  ;;  %v799_v60 = vmul.f32 %v783_v55, %v647_v17 }
 0x19f   :  { %v721_v50 = vadd.f32 %v705_v47, %v652_v41  ;;  %v654_v51 = vadd.f32 %v1505_v39, %v653_v49 }
 0x1a1   :  { %v1153_v52 = vpop.eup %1152  ;;  %v737_v53 = vmul.f32 0.7978846, %v721_v50  ;;  %v674_v54 = vmul.f32 %v654_v51, %v654_v51 }
 0x1a2   :  { %v768_v56 = vadd.f32 1.0, %v1153_v52 }
 0x1a3   :  { %v690_v57 = vmul.f32 %v674_v54, %v654_v51  ;;  %1154 = vtanh.f32 %v737_v53 }
 0x1a4   :  { %v784_v58 = vmul.f32 0.5, %v768_v56 }
 0x1a5   :  { %v706_v59 = vmul.f32 0.044715, %v690_v57 }
 0x1a6   :  { %v800_v61 = vmul.f32 %v784_v58, %v649_v27  ;;  %v656_v62 = vpop.f32.mrf.mxu3 }
 0x1a7   :  { %v722_v63 = vadd.f32 %v706_v59, %v654_v51  ;;  %v657_v0 = vadd.f32 %v1505_v39, %v656_v62 }
 0x1a8   :  { %v1109_v1 = vpack.c.bf16 %v800_v61, %v799_v60 }
 0x1a9   :  { %v738_v2 = vmul.f32 0.7978846, %v722_v63  ;;  %v675_v3 = vmul.f32 %v657_v0, %v657_v0  ;;  %v1155_v4 = vpop.eup %1154 }
 0x1aa   :  { %1125 = vst [vmem:[%s1553_s6 + $0x28] sm:$0xff] %v1109_v1   ;;  %v769_v7 = vadd.f32 1.0, %v1155_v4 }
 0x1ab   :  { %1156 = vtanh.f32 %v738_v2  ;;  %v691_v5 = vmul.f32 %v675_v3, %v657_v0 }
 0x1ac   :  { %v785_v14 = vmul.f32 0.5, %v769_v7 }
 0x1ad   :  { %v707_v6 = vmul.f32 0.044715, %v691_v5 }
 0x1ae   :  { %v658_v8 = vpop.f32.mrf.mxu3  ;;  %v801_v19 = vmul.f32 %v785_v14, %v652_v41 }
 0x1af   :  { %v723_v9 = vadd.f32 %v707_v6, %v657_v0  ;;  %v659_v10 = vadd.f32 %v1505_v39, %v658_v8 }
 0x1b1   :  { %v1157_v11 = vpop.eup %1156  ;;  %v739_v12 = vmul.f32 0.7978846, %v723_v9  ;;  %v676_v13 = vmul.f32 %v659_v10, %v659_v10 }
 0x1b2   :  { %v770_v15 = vadd.f32 1.0, %v1157_v11 }
 0x1b3   :  { %v692_v16 = vmul.f32 %v676_v13, %v659_v10  ;;  %1158 = vtanh.f32 %v739_v12 }
 0x1b4   :  { %v786_v17 = vmul.f32 0.5, %v770_v15 }
 0x1b5   :  { %v708_v18 = vmul.f32 0.044715, %v692_v16 }
 0x1b6   :  { %v802_v20 = vmul.f32 %v786_v17, %v654_v51 }
 0x1b7   :  { %v724_v21 = vadd.f32 %v708_v18, %v659_v10 }
 0x1b8   :  { %v1114_v22 = vpack.c.bf16 %v802_v20, %v801_v19 }
 0x1b9   :  { %v740_v23 = vmul.f32 0.7978846, %v724_v21  ;;  %v1159_v24 = vpop.eup %1158 }
 0x1ba   :  { %1126 = vst [vmem:[%s1553_s6 + $0x30] sm:$0xff] %v1114_v22   ;;  %v771_v39 = vadd.f32 1.0, %v1159_v24 }
 0x1bb   :  { %1160 = vtanh.f32 %v740_v23 }
 0x1bc   :  { %v787_v26 = vmul.f32 0.5, %v771_v39 }
 0x1be   :  { %v803_v29 = vmul.f32 %v787_v26, %v657_v0 }
 0x1c1   :  { %v1161_v25 = vpop.eup %1160 }
 0x1c2   :  { %v772_v27 = vadd.f32 1.0, %v1161_v25 }
 0x1c4   :  { %v788_v28 = vmul.f32 0.5, %v772_v27 }
 0x1c6   :  { %v804_v31 = vmul.f32 %v788_v28, %v659_v10 }
 0x1c8   :  { %v1119_v32 = vpack.c.bf16 %v804_v31, %v803_v29 }
 0x1ca   :  { %1127 = vst [vmem:[%s1553_s6 + $0x38] sm:$0xff] %v1119_v32  }

// kernel: coatnet_forward.6
= control target key start
LH: loop header
LB: loop body
LE: loop exit
PB: predicated region body
PF: predicated region fallthrough
CT: control target
= control target key end

     0   :  { %vm326_vm1 = vcmask 1041409   ;;  %vm722_vm10 = vcmask 519168   ;;  %s1361_s3 = inlined_call_operand.vmem [shape: bf16[128,128], index: 3, kind: input, shape index: {}]   ;;  %s1362_s0 = inlined_call_operand.vmem [shape: bf16[9,32,128], index: 0, kind: input, shape index: {}]   ;;  %s1363_s1 = inlined_call_operand.vmem [shape: f32[9,1,128], index: 1, kind: input, shape index: {}]   ;;  %s1364_s2 = inlined_call_operand.vmem [shape: f32[1,128], index: 2, kind: input, shape index: {}]   ;;  %s1365_s4 = inlined_call_operand.vmem [shape: f32[1,128], index: 4, kind: input, shape index: {}]   ;;  %s1366_s6 = inlined_call_operand.vmem [shape: f32[1,128], index: 6, kind: input, shape index: {}]   ;;  %s1367_s5 = inlined_call_operand.vmem [shape: bf16[128,128], index: 5, kind: input, shape index: {}]   ;;  %s1368_s10 = inlined_call_operand.vmem [shape: bf16[128,64], index: 10, kind: input, shape index: {}]   ;;  %s1369_s11 = inlined_call_operand.vmem [shape: f32[1,64], index: 11, kind: input, shape index: {}]   ;;  %s1370_s7 = inlined_call_operand.vmem [shape: bf16[128,64], index: 7, kind: input, shape index: {}]   ;;  %s1371_s9 = inlined_call_operand.vmem [shape: bf16[32,128], index: 9, kind: input, shape index: {}]   ;;  %s1372_s8 = inlined_call_operand.vmem [shape: f32[1,64], index: 8, kind: input, shape index: {}]   ;;  %s1373_s12 = inlined_call_operand.vmem [shape: bf16[32,64], index: 12, kind: output, shape index: {}]  }
   0x1   :  { %v916_v0 = vld [vmem:[%s1361_s3 + $0x38] sm:$0xff]  ;;  %v915_v1 = vld [vmem:[%s1361_s3 + $0x30] sm:$0xff]  ;;  %v944_v2 = vld [vmem:[%s1362_s0] sm:$0xff]  }
   0x2   :  { %378 = vmatpush.bf16.msra.mxu0 %v916_v0  ;;  %v945_v3 = vunpack.c.l.bf16 %v944_v2  ;;  %v946_v4 = vunpack.c.h.bf16 %v944_v2  ;;  %v1015_v5 = vld [vmem:[%s1362_s0 + $0x8] sm:$0xff]   ;;  %v1033_v6 = vld [vmem:[%s1363_s1] ss:$0 sm:$0xff]  ;;  %v1016_v9 = vld [vmem:[%s1362_s0 + $0x10] sm:$0xff]  }
   0x3   :  { %v949_v7 = vunpack.c.l.bf16 %v1015_v5  ;;  %v950_v8 = vunpack.c.h.bf16 %v1015_v5  ;;  %v1017_v10 = vld [vmem:[%s1362_s0 + $0x18] sm:$0xff]   ;;  %v953_v13 = vunpack.c.l.bf16 %v1016_v9  ;;  %v954_v14 = vunpack.c.h.bf16 %v1016_v9  ;;  %v1034_v15 = vld [vmem:[%s1363_s1 + $0x1] ss:$0 sm:$0xff]  ;;  %v1019_v17 = vld [vmem:[%s1362_s0 + $0x28] sm:$0xff]  }
   0x4   :  { %v53_v11 = vmul.f32 %v1033_v6, %v945_v3  ;;  %v54_v12 = vmul.f32 %v1033_v6, %v946_v4  ;;  %v1018_v16 = vld [vmem:[%s1362_s0 + $0x20] sm:$0xff]   ;;  %v914_v18 = vld [vmem:[%s1361_s3 + $0x28] sm:$0xff]  ;;  %v957_v21 = vunpack.c.l.bf16 %v1017_v10  ;;  %v958_v22 = vunpack.c.h.bf16 %v1017_v10  ;;  %v1020_v32 = vld [vmem:[%s1362_s0 + $0x30] sm:$0xff]  }
   0x5   :  { %v55_v19 = vmul.f32 %v1033_v6, %v949_v7  ;;  %v56_v20 = vmul.f32 %v1033_v6, %v950_v8  ;;  %v1035_v23 = vld [vmem:[%s1363_s1 + $0x2] ss:$0 sm:$0xff]  ;;  %v71_v24 = vmul.f32 %v1034_v15, %v953_v13  ;;  %v72_v25 = vmul.f32 %v1034_v15, %v954_v14  ;;  %v1021_v37 = vld [vmem:[%s1362_s0 + $0x38] sm:$0xff]   ;;  %v1036_v38 = vld [vmem:[%s1363_s1 + $0x3] ss:$0 sm:$0xff] }
   0x6   :  { %379 = vmatpush.bf16.msra.mxu0 %v915_v1  ;;  %v961_v26 = vunpack.c.l.bf16 %v1018_v16  ;;  %v962_v27 = vunpack.c.h.bf16 %v1018_v16  ;;  %v73_v28 = vmul.f32 %v1034_v15, %v957_v21  ;;  %v74_v29 = vmul.f32 %v1034_v15, %v958_v22  ;;  %v913_v39 = vld [vmem:[%s1361_s3 + $0x20] sm:$0xff]  ;;  %v1023_v49 = vld [vmem:[%s1362_s0 + $0x48] sm:$0xff]   ;;  %v912_v55 = vld [vmem:[%s1361_s3 + $0x18] sm:$0xff] }
   0x7   :  { %v965_v30 = vunpack.c.l.bf16 %v1019_v17  ;;  %v966_v31 = vunpack.c.h.bf16 %v1019_v17  ;;  %v75_v33 = vadd.f32 %v71_v24, %v53_v11  ;;  %v76_v34 = vadd.f32 %v72_v25, %v54_v12  ;;  %v1022_v44 = vld [vmem:[%s1362_s0 + $0x40] sm:$0xff]   ;;  %v1024_v0 = vld [vmem:[%s1362_s0 + $0x50] sm:$0xff]   ;;  %v1025_v5 = vld [vmem:[%s1362_s0 + $0x58] sm:$0xff]  }
   0x8   :  { %v93_v35 = vmul.f32 %v1035_v23, %v961_v26  ;;  %v94_v36 = vmul.f32 %v1035_v23, %v962_v27  ;;  %v77_v40 = vadd.f32 %v73_v28, %v55_v19  ;;  %v78_v41 = vadd.f32 %v74_v29, %v56_v20  ;;  %v1037_v50 = vld [vmem:[%s1363_s1 + $0x4] ss:$0 sm:$0xff]  ;;  %v1038_v6 = vld [vmem:[%s1363_s1 + $0x5] ss:$0 sm:$0xff]  ;;  %v1027_v16 = vld [vmem:[%s1362_s0 + $0x68] sm:$0xff]  }
   0x9   :  { %v95_v42 = vmul.f32 %v1035_v23, %v965_v30  ;;  %v96_v43 = vmul.f32 %v1035_v23, %v966_v31  ;;  %v969_v47 = vunpack.c.l.bf16 %v1020_v32  ;;  %v970_v48 = vunpack.c.h.bf16 %v1020_v32  ;;  %v1026_v11 = vld [vmem:[%s1362_s0 + $0x60] sm:$0xff]   ;;  %v1028_v31 = vld [vmem:[%s1362_s0 + $0x70] sm:$0xff]  }
   0xa   :  { %380 = vmatpush.bf16.msra.mxu0 %v914_v18  ;;  %v97_v45 = vadd.f32 %v93_v35, %v75_v33  ;;  %v98_v46 = vadd.f32 %v94_v36, %v76_v34  ;;  %v973_v53 = vunpack.c.l.bf16 %v1021_v37  ;;  %v974_v54 = vunpack.c.h.bf16 %v1021_v37  ;;  %v1039_v17 = vld [vmem:[%s1363_s1 + $0x6] ss:$0 sm:$0xff]  ;;  %v911_v18 = vld [vmem:[%s1361_s3 + $0x10] sm:$0xff]  ;;  %v1029_v36 = vld [vmem:[%s1362_s0 + $0x78] sm:$0xff]  }
   0xb   :  { %v99_v51 = vadd.f32 %v95_v42, %v77_v40  ;;  %v100_v52 = vadd.f32 %v96_v43, %v78_v41  ;;  %v115_v56 = vmul.f32 %v1036_v38, %v969_v47  ;;  %v116_v57 = vmul.f32 %v1036_v38, %v970_v48  ;;  %v1040_v37 = vld [vmem:[%s1363_s1 + $0x7] ss:$0 sm:$0xff]  ;;  %v1031_v48 = vld [vmem:[%s1362_s0 + $0x88] sm:$0xff]  }
   0xc   :  { %v977_v58 = vunpack.c.l.bf16 %v1022_v44  ;;  %v978_v59 = vunpack.c.h.bf16 %v1022_v44  ;;  %v117_v60 = vmul.f32 %v1036_v38, %v973_v53  ;;  %v118_v61 = vmul.f32 %v1036_v38, %v974_v54  ;;  %v910_v38 = vld [vmem:[%s1361_s3 + $0x8] sm:$0xff]  ;;  %v1030_v43 = vld [vmem:[%s1362_s0 + $0x80] sm:$0xff]  }
   0xd   :  { %v981_v62 = vunpack.c.l.bf16 %v1023_v49  ;;  %v982_v63 = vunpack.c.h.bf16 %v1023_v49  ;;  %v119_v1 = vadd.f32 %v115_v56, %v97_v45  ;;  %v120_v2 = vadd.f32 %v116_v57, %v98_v46  ;;  %v1041_v49 = vld [vmem:[%s1363_s1 + $0x8] ss:$0 sm:$0xff] }
   0xe   :  { %381 = vmatpush.bf16.msra.mxu0 %v913_v39  ;;  %v137_v3 = vmul.f32 %v1037_v50, %v977_v58  ;;  %v138_v4 = vmul.f32 %v1037_v50, %v978_v59  ;;  %v121_v7 = vadd.f32 %v117_v60, %v99_v51  ;;  %v122_v8 = vadd.f32 %v118_v61, %v100_v52  ;;  %v909_v58 = vld [vmem:[%s1361_s3] sm:$0xff] }
   0xf   :  { %v139_v9 = vmul.f32 %v1037_v50, %v981_v62  ;;  %v140_v10 = vmul.f32 %v1037_v50, %v982_v63  ;;  %v985_v14 = vunpack.c.l.bf16 %v1024_v0  ;;  %v986_v15 = vunpack.c.h.bf16 %v1024_v0 }
  0x10   :  { %v141_v12 = vadd.f32 %v137_v3, %v119_v1  ;;  %v142_v13 = vadd.f32 %v138_v4, %v120_v2  ;;  %v989_v21 = vunpack.c.l.bf16 %v1025_v5  ;;  %v990_v22 = vunpack.c.h.bf16 %v1025_v5  ;;  %v1042_v3 = vld [vmem:[%s1364_s2] ss:$0 sm:$0xff] }
  0x11   :  { %v143_v19 = vadd.f32 %v139_v9, %v121_v7  ;;  %v144_v20 = vadd.f32 %v140_v10, %v122_v8  ;;  %v159_v23 = vmul.f32 %v1038_v6, %v985_v14  ;;  %v160_v24 = vmul.f32 %v1038_v6, %v986_v15 }
  0x12   :  { %382 = vmatpush.bf16.msra.mxu0 %v912_v55  ;;  %v993_v25 = vunpack.c.l.bf16 %v1026_v11  ;;  %v994_v26 = vunpack.c.h.bf16 %v1026_v11  ;;  %v161_v27 = vmul.f32 %v1038_v6, %v989_v21  ;;  %v162_v28 = vmul.f32 %v1038_v6, %v990_v22 }
  0x13   :  { %v997_v29 = vunpack.c.l.bf16 %v1027_v16  ;;  %v998_v30 = vunpack.c.h.bf16 %v1027_v16  ;;  %v163_v32 = vadd.f32 %v159_v23, %v141_v12  ;;  %v164_v33 = vadd.f32 %v160_v24, %v142_v13 }
  0x14   :  { %v181_v34 = vmul.f32 %v1039_v17, %v993_v25  ;;  %v182_v35 = vmul.f32 %v1039_v17, %v994_v26  ;;  %v165_v39 = vadd.f32 %v161_v27, %v143_v19  ;;  %v166_v40 = vadd.f32 %v162_v28, %v144_v20 }
  0x15   :  { %v183_v41 = vmul.f32 %v1039_v17, %v997_v29  ;;  %v184_v42 = vmul.f32 %v1039_v17, %v998_v30  ;;  %v1001_v46 = vunpack.c.l.bf16 %v1028_v31  ;;  %v1002_v47 = vunpack.c.h.bf16 %v1028_v31 }
  0x16   :  { %383 = vmatpush.bf16.msra.mxu0 %v911_v18  ;;  %v185_v44 = vadd.f32 %v181_v34, %v163_v32  ;;  %v186_v45 = vadd.f32 %v182_v35, %v164_v33  ;;  %v1005_v52 = vunpack.c.l.bf16 %v1029_v36  ;;  %v1006_v53 = vunpack.c.h.bf16 %v1029_v36 }
  0x17   :  { %v187_v50 = vadd.f32 %v183_v41, %v165_v39  ;;  %v188_v51 = vadd.f32 %v184_v42, %v166_v40  ;;  %v203_v54 = vmul.f32 %v1040_v37, %v1001_v46  ;;  %v204_v55 = vmul.f32 %v1040_v37, %v1002_v47 }
  0x18   :  { %v1009_v56 = vunpack.c.l.bf16 %v1030_v43  ;;  %v1010_v57 = vunpack.c.h.bf16 %v1030_v43  ;;  %v205_v59 = vmul.f32 %v1040_v37, %v1005_v52  ;;  %v206_v60 = vmul.f32 %v1040_v37, %v1006_v53 }
  0x19   :  { %v1013_v61 = vunpack.c.l.bf16 %v1031_v48  ;;  %v1014_v62 = vunpack.c.h.bf16 %v1031_v48  ;;  %v207_v63 = vadd.f32 %v203_v54, %v185_v44  ;;  %v208_v0 = vadd.f32 %v204_v55, %v186_v45 }
  0x1a   :  { %384 = vmatpush.bf16.msra.mxu0 %v910_v38  ;;  %v225_v1 = vmul.f32 %v1041_v49, %v1009_v56  ;;  %v226_v2 = vmul.f32 %v1041_v49, %v1010_v57  ;;  %v209_v4 = vadd.f32 %v205_v59, %v187_v50  ;;  %v210_v5 = vadd.f32 %v206_v60, %v188_v51 }
  0x1b   :  { %v227_v6 = vmul.f32 %v1041_v49, %v1013_v61  ;;  %v228_v7 = vmul.f32 %v1041_v49, %v1014_v62  ;;  %v1065_v36 = vmov 16.0  }
  0x1c   :  { %v229_v8 = vadd.f32 %v225_v1, %v207_v63  ;;  %v230_v9 = vadd.f32 %v226_v2, %v208_v0  ;;  %1047 = vrcp.f32 %v1065_v36 }
  0x1d   :  { %v231_v10 = vadd.f32 %v227_v6, %v209_v4  ;;  %v232_v11 = vadd.f32 %v228_v7, %v210_v5 }
  0x1e   :  { %385 = vmatpush.bf16.msra.mxu0 %v909_v58  ;;  %v237_v12 = vadd.f32 %v1042_v3, %v229_v8  ;;  %v238_v13 = vadd.f32 %v1042_v3, %v230_v9 }
  0x1f   :  { %v239_v14 = vadd.f32 %v1042_v3, %v231_v10  ;;  %v240_v15 = vadd.f32 %v1042_v3, %v232_v11 }
  0x20   :  { %v241_v16 = vmul.f32 %v237_v12, %v237_v12  ;;  %v242_v17 = vmul.f32 %v238_v13, %v238_v13 }
  0x21   :  { %v243_v18 = vmul.f32 %v239_v14, %v239_v14  ;;  %v244_v19 = vmul.f32 %v240_v15, %v240_v15 }
  0x22   :  { %v245_v20 = vmul.f32 %v241_v16, %v237_v12  ;;  %v246_v21 = vmul.f32 %v242_v17, %v238_v13  ;;  %v1048_v37 = vpop.eup %1047  ;;  %v924_v17 = vld [vmem:[%s1367_s5 + $0x38] sm:$0xff] }
  0x23   :  { %v247_v22 = vmul.f32 %v243_v18, %v239_v14  ;;  %v248_v23 = vmul.f32 %v244_v19, %v240_v15  ;;  %v292_v46 = vmul.f32 16.0, %v1048_v37  ;;  %vm296_vm0 = vweird.f32 %v1048_v37  ;;  %480 = vmatpush.bf16.msra.mxu1 %v924_v17  ;;  %v923_v18 = vld [vmem:[%s1367_s5 + $0x30] sm:$0xff]  ;;  %v922_v19 = vld [vmem:[%s1367_s5 + $0x28] sm:$0xff] }
  0x24   :  { %v249_v24 = vmul.f32 0.044715, %v245_v20  ;;  %v250_v25 = vmul.f32 0.044715, %v246_v21  ;;  %v921_v20 = vld [vmem:[%s1367_s5 + $0x20] sm:$0xff]  ;;  %v920_v21 = vld [vmem:[%s1367_s5 + $0x18] sm:$0xff] }
  0x25   :  { %v251_v26 = vmul.f32 0.044715, %v247_v22  ;;  %v252_v27 = vmul.f32 0.044715, %v248_v23  ;;  %v293_v54 = vsub.f32 1.0, %v292_v46  ;;  %v919_v22 = vld [vmem:[%s1367_s5 + $0x10] sm:$0xff] }
  0x26   :  { %v253_v28 = vadd.f32 %v249_v24, %v237_v12  ;;  %v254_v29 = vadd.f32 %v250_v25, %v238_v13  ;;  %v918_v23 = vld [vmem:[%s1367_s5 + $0x8] sm:$0xff]  ;;  %v917_v24 = vld [vmem:[%s1367_s5] sm:$0xff]  ;;  %v932_v46 = vld [vmem:[%s1370_s7 + $0x38] sm:$0xff] }
  0x27   :  { %v255_v30 = vadd.f32 %v251_v26, %v239_v14  ;;  %v256_v31 = vadd.f32 %v252_v27, %v240_v15  ;;  %v294_v59 = vmul.f32 %v1048_v37, %v293_v54  ;;  %481 = vmatpush.bf16.msra.mxu1 %v923_v18  ;;  %v1043_v25 = vld [vmem:[%s1365_s4] ss:$0 sm:$0xff]  ;;  %592 = vmatpush.bf16.msra.mxu2 %v932_v46  ;;  %v938_v54 = vld [vmem:[%s1368_s10 + $0x18] sm:$0xff] }
  0x28   :  { %v257_v32 = vmul.f32 0.7978846, %v253_v28  ;;  %v258_v33 = vmul.f32 0.7978846, %v254_v29  ;;  %v942_v29 = vld [vmem:[%s1368_s10 + $0x38] sm:$0xff] }
  0x29   :  { %v259_v34 = vmul.f32 0.7978846, %v255_v30  ;;  %v260_v35 = vmul.f32 0.7978846, %v256_v31  ;;  %v295_v0 = vadd.f32 %v1048_v37, %v294_v59  ;;  %695 = vmatpush.bf16.msra.mxu3 %v942_v29  ;;  %v936_v59 = vld [vmem:[%s1368_s10 + $0x8] sm:$0xff] }
  0x2a   :  { %1049 = vtanh.f32 %v257_v32  ;;  %v1045_v29 = vld [vmem:[%s1369_s11] ss:$0 sm:$0xff] }
  0x2b   :  { %1051 = vtanh.f32 %v258_v33  ;;  %v297_v5 = vsel %vm296_vm0, %v1048_v37, %v295_v0  ;;  %482 = vmatpush.bf16.msra.mxu1 %v922_v19  ;;  %v1044_v0 = vld [vmem:[%s1366_s6] ss:$0 sm:$0xff] }
  0x2c   :  { %1053 = vtanh.f32 %v259_v34 }
  0x2d   :  { %1055 = vtanh.f32 %v260_v35 }
  0x2f   :  { %483 = vmatpush.bf16.msra.mxu1 %v921_v20 }
  0x30   :  { %v1050_v38 = vpop.eup %1049 }
  0x31   :  { %v1052_v39 = vpop.eup %1051  ;;  %v265_v40 = vadd.f32 1.0, %v1050_v38 }
  0x32   :  { %v1054_v41 = vpop.eup %1053  ;;  %v266_v42 = vadd.f32 1.0, %v1052_v39 }
  0x33   :  { %v1056_v43 = vpop.eup %1055  ;;  %v267_v44 = vadd.f32 1.0, %v1054_v41  ;;  %v269_v45 = vmul.f32 0.5, %v265_v40  ;;  %484 = vmatpush.bf16.msra.mxu1 %v920_v21 }
  0x34   :  { %v268_v47 = vadd.f32 1.0, %v1056_v43  ;;  %v270_v48 = vmul.f32 0.5, %v266_v42 }
  0x35   :  { %v271_v49 = vmul.f32 0.5, %v267_v44  ;;  %v1239_v50 = vmul.f32 %v269_v45, %v237_v12  ;;  %v941_v45 = vld [vmem:[%s1368_s10 + $0x30] sm:$0xff] }
  0x36   :  { %v272_v51 = vmul.f32 0.5, %v268_v47  ;;  %v1241_v52 = vmul.f32 %v270_v48, %v238_v13  ;;  %696 = vmatpush.bf16.msra.mxu3 %v941_v45  ;;  %v940_v47 = vld [vmem:[%s1368_s10 + $0x28] sm:$0xff]  ;;  %v931_v48 = vld [vmem:[%s1370_s7 + $0x30] sm:$0xff] }
  0x37   :  { %v1243_v53 = vmul.f32 %v271_v49, %v239_v14  ;;  %485 = vmatpush.bf16.msra.mxu1 %v919_v22  ;;  %v939_v49 = vld [vmem:[%s1368_s10 + $0x20] sm:$0xff]  ;;  %593 = vmatpush.bf16.msra.mxu2 %v931_v48 }
  0x38   :  { %v1245_v55 = vmul.f32 %v272_v51, %v240_v15  ;;  %v277_v56 = vadd.f32 %v1241_v52, %v1239_v50  ;;  %v930_v51 = vld [vmem:[%s1370_s7 + $0x28] sm:$0xff] }
  0x3a   :  { %v278_v57 = vrot.slane %v277_v56, 4  ;;  %v284_v58 = vadd.f32 %v1245_v55, %v1243_v53  ;;  %697 = vmatpush.bf16.msra.mxu3 %v940_v47 }
  0x3b   :  { %486 = vmatpush.bf16.msra.mxu1 %v918_v23  ;;  %594 = vmatpush.bf16.msra.mxu2 %v930_v51 }
  0x3c   :  { %v279_v60 = vadd.f32 %v278_v57, %v277_v56  ;;  %v285_v61 = vrot.slane %v284_v58, 4  ;;  %v929_v56 = vld [vmem:[%s1370_s7 + $0x20] sm:$0xff]  ;;  %v937_v57 = vld [vmem:[%s1368_s10 + $0x10] sm:$0xff] }
  0x3e   :  { %v280_v62 = vrot.slane %v279_v60, 2  ;;  %v286_v63 = vadd.f32 %v285_v61, %v284_v58  ;;  %698 = vmatpush.bf16.msra.mxu3 %v939_v49  ;;  %v928_v58 = vld [vmem:[%s1370_s7 + $0x18] sm:$0xff]  ;;  %v935_v61 = vld [vmem:[%s1368_s10] sm:$0xff] }
  0x3f   :  { %487 = vmatpush.bf16.msra.mxu1 %v917_v24  ;;  %595 = vmatpush.bf16.msra.mxu2 %v929_v56 }
  0x40   :  { %v281_v1 = vadd.f32 %v280_v62, %v279_v60  ;;  %v287_v2 = vrot.slane %v286_v63, 2  ;;  %v927_v60 = vld [vmem:[%s1370_s7 + $0x10] sm:$0xff]  ;;  %v933_v62 = vld [vmem:[%s1371_s9] sm:$0xff] }
  0x42   :  { %v282_v3 = vrot.slane %v281_v1, 1  ;;  %v288_v4 = vadd.f32 %v287_v2, %v286_v63  ;;  %699 = vmatpush.bf16.msra.mxu3 %v938_v54  ;;  %v926_v63 = vld [vmem:[%s1370_s7 + $0x8] sm:$0xff] }
  0x43   :  { %596 = vmatpush.bf16.msra.mxu2 %v928_v58 }
  0x44   :  { %v283_v6 = vadd.f32 %v282_v3, %v281_v1  ;;  %v289_v7 = vrot.slane %v288_v4, 1  ;;  %v925_v1 = vld [vmem:[%s1370_s7] sm:$0xff] }
  0x46   :  { %v290_v8 = vadd.f32 %v289_v7, %v288_v4  ;;  %v298_v9 = vmul.f32 %v297_v5, %v283_v6  ;;  %700 = vmatpush.bf16.msra.mxu3 %v937_v57  ;;  %v934_v6 = vld [vmem:[%s1371_s9 + $0x8] sm:$0xff] }
  0x47   :  { %597 = vmatpush.bf16.msra.mxu2 %v927_v60 }
  0x48   :  { %v299_v10 = vmul.f32 %v297_v5, %v290_v8  ;;  %v300_v11 = vpack.c.bf16 %v298_v9, %v298_v9 }
  0x4a   :  { %v301_v12 = vpack.c.bf16 %v299_v10, %v299_v10  ;;  %v324_v13 = vunpack.c.l.b16 %v300_v11  ;;  %701 = vmatpush.bf16.msra.mxu3 %v936_v59 }
  0x4b   :  { %598 = vmatpush.bf16.msra.mxu2 %v926_v63 }
  0x4c   :  { %v325_v14 = vunpack.c.l.b16 %v301_v12 }
  0x4e   :  { %v327_v15 = vsel %vm326_vm1, %v325_v14, %v324_v13  ;;  %702 = vmatpush.bf16.msra.mxu3 %v935_v61 }
  0x4f   :  { %v328_v16 = vpack.c.b16 %v327_v15, %v327_v15  ;;  %599 = vmatpush.bf16.msra.mxu2 %v925_v1 }
  0x51   :  { %386 = vmatmul.bf16.vlgmr.msra.gmra.mxu0 %v328_v16  ;;  %703 = vmatmul.bf16.vlgmr.msra.gmra.mxu3 %v933_v62 }
  0x61   :  { %708 = vmatmul.bf16.gmra.mxu3 %v934_v6 }
  0xce   :  { %v387_v26 = vpop.f32.mrf.mxu0 }
  0xcf   :  { %v388_v27 = vadd.f32 %v1043_v25, %v387_v26 }
  0xd1   :  { %v803_v28 = vmul.f32 -1.442695, %v388_v27 }
  0xd3   :  { %1057 = vpow2.f32 %v803_v28 }
  0xd4   :  { %v704_v28 = vpop.f32.mrf.mxu3 }
  0xd6   :  { %v389_v30 = vpop.f32.mrf.mxu0 }
  0xd9   :  { %v1058_v31 = vpop.eup %1057 }
  0xda   :  { %v394_v32 = vadd.f32 1.0, %v1058_v31 }
  0xdc   :  { %1059 = vrcp.f32 %v394_v32  ;;  %v406_v36 = vand.u32 2147483648, %v394_v32  ;;  %v404_v38 = vand.u32 2147483647, %v394_v32  ;;  %vm400_vm3 = vweird.f32 %v394_v32 }
  0xde   :  { %v407_v40 = vor.u32 1.1754944e-38, %v406_v36  ;;  %vm405_vm5 = vcmp.eq.f32.partialorder %v404_v38, 8.507059e+37 }
  0xe2   :  { %v1060_v33 = vpop.eup %1059 }
  0xe3   :  { %v396_v34 = vmul.f32 %v1060_v33, %v394_v32  ;;  %vm401_vm2 = vweird.f32 %v1060_v33  ;;  %v706_v32 = vpop.f32.mrf.mxu3 }
  0xe4   :  { %vm402_vm4 = vmor %vm400_vm3, %vm401_vm2 }
  0xe5   :  { %v397_v35 = vsub.f32 1.0, %v396_v34  ;;  %v707_v34 = vadd.f32 %v1045_v29, %v706_v32 }
  0xe7   :  { %v398_v37 = vmul.f32 %v1060_v33, %v397_v35 }
  0xe9   :  { %v399_v39 = vadd.f32 %v1060_v33, %v398_v37 }
  0xeb   :  { %v403_v41 = vsel %vm402_vm4, %v1060_v33, %v399_v39  ;;  %v709_v37 = vpop.f32.mrf.mxu3 }
  0xec   :  { %v408_v42 = vsel %vm405_vm5, %v407_v40, %v403_v41  ;;  %v710_v39 = vadd.f32 %v1045_v29, %v709_v37 }
  0xed   :  { %v410_v43 = vmul.f32 %v408_v42, %v388_v27 }
  0xef   :  { %v411_v44 = vpack.c.bf16 %v410_v43, %v410_v43 }
  0xf1   :  { %488 = vmatmul.bf16.vlgmr.msra.gmra.mxu1 %v411_v44 }
  0xf3   :  { %v711_v44 = vpop.f32.mrf.mxu3 }
  0xf4   :  { %v712_v46 = vadd.f32 %v1045_v29, %v711_v44 }
 0x16e   :  { %v489_v2 = vpop.f32.mrf.mxu1 }
 0x16f   :  { %v490_v3 = vadd.f32 %v1044_v0, %v489_v2 }
 0x171   :  { %v836_v4 = vmul.f32 -1.442695, %v490_v3 }
 0x173   :  { %1061 = vpow2.f32 %v836_v4 }
 0x176   :  { %v491_v5 = vpop.f32.mrf.mxu1 }
 0x179   :  { %v1062_v7 = vpop.eup %1061 }
 0x17a   :  { %v496_v8 = vadd.f32 1.0, %v1062_v7 }
 0x17c   :  { %1063 = vrcp.f32 %v496_v8  ;;  %v508_v12 = vand.u32 2147483648, %v496_v8  ;;  %v506_v14 = vand.u32 2147483647, %v496_v8  ;;  %vm502_vm7 = vweird.f32 %v496_v8 }
 0x17e   :  { %v509_v16 = vor.u32 1.1754944e-38, %v508_v12  ;;  %vm507_vm9 = vcmp.eq.f32.partialorder %v506_v14, 8.507059e+37 }
 0x182   :  { %v1064_v9 = vpop.eup %1063 }
 0x183   :  { %v498_v10 = vmul.f32 %v1064_v9, %v496_v8  ;;  %vm503_vm6 = vweird.f32 %v1064_v9 }
 0x184   :  { %vm504_vm8 = vmor %vm502_vm7, %vm503_vm6 }
 0x185   :  { %v499_v11 = vsub.f32 1.0, %v498_v10 }
 0x187   :  { %v500_v13 = vmul.f32 %v1064_v9, %v499_v11 }
 0x189   :  { %v501_v15 = vadd.f32 %v1064_v9, %v500_v13 }
 0x18b   :  { %v505_v17 = vsel %vm504_vm8, %v1064_v9, %v501_v15 }
 0x18c   :  { %v510_v18 = vsel %vm507_vm9, %v509_v16, %v505_v17 }
 0x18d   :  { %v514_v19 = vperm.slane %v510_v18, 0  ;;  %v513_v23 = vrot.slane %v510_v18, 1 }
 0x18f   :  { %v518_v20 = vmul.f32 %v514_v19, %v1239_v50  ;;  %v519_v21 = vmul.f32 %v514_v19, %v1241_v52  ;;  %v515_v24 = vperm.slane %v513_v23, 0  ;;  %v1046_v50 = vld [vmem:[%s1372_s8] ss:$0 sm:$0xff]  ;;  %v705_v52 = vadd.f32 %v1045_v29, %v704_v28 }
 0x191   :  { %v522_v22 = vpack.c.bf16 %v519_v21, %v518_v20  ;;  %v520_v25 = vmul.f32 %v515_v24, %v1243_v53  ;;  %v521_v26 = vmul.f32 %v515_v24, %v1245_v55 }
 0x193   :  { %600 = vmatmul.bf16.vlgmr.msra.gmra.mxu2 %v522_v22  ;;  %v523_v27 = vpack.c.bf16 %v521_v26, %v520_v25 }
 0x1a3   :  { %605 = vmatmul.bf16.gmra.mxu2 %v523_v27 }
 0x216   :  { %v601_v30 = vpop.f32.mrf.mxu2 }
 0x217   :  { %v602_v31 = vadd.f32 %v1046_v50, %v601_v30 }
 0x219   :  { %v714_v33 = vadd.f32 %v705_v52, %v602_v31 }
 0x21b   :  { %v718_v53 = vpack.c.bf16 %v714_v33, %v714_v33 }
 0x21d   :  { %723 = vst.msk [vmem:[%s1373_s12] sm:$0xf] %vm722_vm10, %v718_v53 }
 0x21e   :  { %v603_v55 = vpop.f32.mrf.mxu2 }
 0x21f   :  { %v604_v35 = vadd.f32 %v1046_v50, %v603_v55 }
 0x221   :  { %v715_v36 = vadd.f32 %v707_v34, %v604_v35 }
 0x223   :  { %v719_v38 = vpack.c.bf16 %v715_v36, %v715_v36 }
 0x225   :  { %724 = vst.msk [vmem:[%s1373_s12 + $0x4] sm:$0xf] %vm722_vm10, %v719_v38 }
 0x226   :  { %v606_v40 = vpop.f32.mrf.mxu2 }
 0x227   :  { %v607_v41 = vadd.f32 %v1046_v50, %v606_v40 }
 0x229   :  { %v716_v42 = vadd.f32 %v710_v39, %v607_v41 }
 0x22b   :  { %v720_v43 = vpack.c.bf16 %v716_v42, %v716_v42 }
 0x22d   :  { %725 = vst.msk [vmem:[%s1373_s12 + $0x8] sm:$0xf] %vm722_vm10, %v720_v43 }
 0x22e   :  { %v608_v45 = vpop.f32.mrf.mxu2 }
 0x22f   :  { %v609_v47 = vadd.f32 %v1046_v50, %v608_v45 }
 0x231   :  { %v717_v48 = vadd.f32 %v712_v46, %v609_v47 }
 0x233   :  { %v721_v49 = vpack.c.bf16 %v717_v48, %v717_v48 }
 0x235   :  { %726 = vst.msk [vmem:[%s1373_s12 + $0xc] sm:$0xf] %vm722_vm10, %v721_v49 }

// kernel: coatnet_forward.7
= control target key start
LH: loop header
LB: loop body
LE: loop exit
PB: predicated region body
PF: predicated region fallthrough
CT: control target
= control target key end

     0   :  { %s2516_s0 = inlined_call_operand.vmem [shape: bf16[32,64], index: 0, kind: input, shape index: {}]   ;;  %s2517_s1 = inlined_call_operand.vmem [shape: f32[1,64], index: 1, kind: input, shape index: {}]   ;;  %s2518_s2 = inlined_call_operand.vmem [shape: f32[1,64], index: 2, kind: input, shape index: {}]   ;;  %s2519_s3 = inlined_call_operand.vmem [shape: bf16[64,192], index: 3, kind: input, shape index: {}]   ;;  %s2520_s4 = inlined_call_operand.vmem [shape: f32[1,192], index: 4, kind: input, shape index: {}]   ;;  %s2521_s5 = inlined_call_operand.vmem [shape: f32[2,16,16], index: 5, kind: input, shape index: {}]   ;;  %s2522_s6 = inlined_call_operand.vmem [shape: bf16[64,64], index: 6, kind: input, shape index: {}]   ;;  %s2523_s7 = inlined_call_operand.vmem [shape: f32[1,64], index: 7, kind: input, shape index: {}]   ;;  %s2524_s8 = inlined_call_operand.vmem [shape: f32[1,64], index: 8, kind: input, shape index: {}]   ;;  %s2525_s9 = inlined_call_operand.vmem [shape: f32[1,64], index: 9, kind: input, shape index: {}]   ;;  %s2526_s10 = inlined_call_operand.vmem [shape: bf16[64,256], index: 10, kind: input, shape index: {}]   ;;  %s2527_s11 = inlined_call_operand.vmem [shape: f32[1,256], index: 11, kind: input, shape index: {}]   ;;  %s2528_s12 = inlined_call_operand.vmem [shape: bf16[256,64], index: 12, kind: input, shape index: {}]   ;;  %s2529_s13 = inlined_call_operand.vmem [shape: f32[1,64], index: 13, kind: input, shape index: {}]   ;;  %s2530_s14 = inlined_call_operand.vmem [shape: f32[1,64], index: 14, kind: input, shape index: {}]   ;;  %s2531_s15 = inlined_call_operand.vmem [shape: f32[1,64], index: 15, kind: input, shape index: {}]   ;;  %s2532_s16 = inlined_call_operand.vmem [shape: bf16[64,384], index: 16, kind: input, shape index: {}]   ;;  %s2533_s17 = inlined_call_operand.vmem [shape: f32[1,384], index: 17, kind: input, shape index: {}]   ;;  %s2534_s18 = inlined_call_operand.hbm [shape: f32[2,384], index: 18, kind: output, shape index: {}]  }
   0x1   :  { %2536 = sst [smem:[#allocation5_spill]] %s2516_s0 }
   0x2   :  { %2537 = sst [smem:[#allocation6_spill]] %s2517_s1 }
   0x3   :  { %2538 = sst [smem:[#allocation7_spill]] %s2518_s2 }
   0x4   :  { %s2539_s29 = sld [smem:[#allocation5_spill]]  ;;  %vm71_vm0 = vcmask 523264  }
   0xa   :  { %v1794_v0 = vld [vmem:[%s2539_s29 + $0x8] sm:$0xff]   ;;  %v1787_v1 = vld [vmem:[%s2539_s29] sm:$0xff]  }
   0xb   :  { %v2012_v2 = vunpack.c.l.bf16 %v1794_v0  ;;  %v2014_v3 = vunpack.c.l.bf16 %v1787_v1 }
   0xd   :  { %v78_v4 = vsel %vm71_vm0, %v2012_v2, 0.0  ;;  %v72_v5 = vsel %vm71_vm0, %v2014_v3, 0.0 }
   0xe   :  { %79 = vadd.xlane.f32.xlu1 %v78_v4  ;;  %73 = vadd.xlane.f32.xlu0 %v72_v5 }
   0xf   :  { %23 = vsyncpa [#allocation3], 0  ;;  %v2020_v6 = vunpack.c.h.bf16 %v1794_v0  ;;  %v2022_v7 = vunpack.c.h.bf16 %v1787_v1  ;;  %v1905_v10 = vmov 64.0   ;;  %v1547_v37 = vld [vmem:[%s2519_s3 + $0x30] sm:$0xf]  ;;  %s2540_s21 = sld [smem:[#allocation6_spill]] }
  0x10   :  { %1809 = vrcp.f32 %v1905_v10  ;;  %v1745_v38 = vld [vmem:[%s2519_s3 + $0x34] sm:$0xf0]  ;;  %v1744_v39 = vld [vmem:[%s2519_s3 + $0x34] sm:$0xf]  ;;  %v1549_v41 = vld [vmem:[%s2519_s3 + $0x38] sm:$0xf0] }
  0x11   :  { %v81_v8 = vsel %vm71_vm0, %v2020_v6, 0.0  ;;  %v75_v9 = vsel %vm71_vm0, %v2022_v7, 0.0  ;;  %v1548_v40 = vor.u32 %v1745_v38, %v1547_v37  ;;  %v1552_v42 = vor.u32 %v1744_v39, %v1549_v41  ;;  %v1539_v43 = vld [vmem:[%s2519_s3 + $0x20] sm:$0xf]  ;;  %v1743_v44 = vld [vmem:[%s2519_s3 + $0x24] sm:$0xf0] }
  0x12   :  { %v1742_v45 = vld [vmem:[%s2519_s3 + $0x24] sm:$0xf]  ;;  %v1540_v46 = vor.u32 %v1743_v44, %v1539_v43  ;;  %v1541_v47 = vld [vmem:[%s2519_s3 + $0x28] sm:$0xf0]  ;;  %v1531_v49 = vld [vmem:[%s2519_s3 + $0x10] sm:$0xf] }
  0x13   :  { %247 = vmatpush.bf16.msra.mxu0 %v1548_v40  ;;  %266 = vmatpush.bf16.msra.mxu1 %v1552_v42  ;;  %v1544_v48 = vor.u32 %v1742_v45, %v1541_v47  ;;  %v1741_v50 = vld [vmem:[%s2519_s3 + $0x14] sm:$0xf0]  ;;  %v1740_v51 = vld [vmem:[%s2519_s3 + $0x14] sm:$0xf]  ;;  %v1533_v53 = vld [vmem:[%s2519_s3 + $0x18] sm:$0xf0] }
  0x14   :  { %v1532_v52 = vor.u32 %v1741_v50, %v1531_v49  ;;  %v1536_v55 = vor.u32 %v1740_v51, %v1533_v53  ;;  %v1523_v56 = vld [vmem:[%s2519_s3] sm:$0xf]  ;;  %v1739_v57 = vld [vmem:[%s2519_s3 + $0x4] sm:$0xf0]  ;;  %v1738_v58 = vld [vmem:[%s2519_s3 + $0x4] sm:$0xf] }
  0x15   :  { %v1524_v61 = vor.u32 %v1739_v57, %v1523_v56  ;;  %v1525_v62 = vld [vmem:[%s2519_s3 + $0x8] sm:$0xf0]  ;;  %v1801_v38 = vld [vmem:[%s2540_s21] ss:$0 sm:$0xff]  ;;  %s2541_s23 = sld [smem:[#allocation7_spill]]  ;;  %s1906_s26 = smov 64  }
  0x16   :  { %82 = vadd.xlane.f32.xlu1 %v81_v8  ;;  %76 = vadd.xlane.f32.xlu0 %v75_v9  ;;  %v1810_v11 = vpop.eup %1809  ;;  %v1528_v63 = vor.u32 %v1738_v58, %v1525_v62  ;;  %vm300_vm14 = vcmask 261120   ;;  %vm358_vm15 = vcmask 130048   ;;  %s1907_s30 = smov 32   ;;  %s1908_s0 = smov 96  }
  0x17   :  { %v85_v12 = vmul.f32 64.0, %v1810_v11  ;;  %vm89_vm1 = vweird.f32 %v1810_v11  ;;  %248 = vmatpush.bf16.msra.mxu0 %v1540_v46  ;;  %267 = vmatpush.bf16.msra.mxu1 %v1544_v48  ;;  %s1512_s19 = sshll.u32 %s2534_s18, 4  ;;  %s1513_s19 = int_to_ptr.hbm [resolvable:$true] %s1512_s19 }
  0x19   :  { %v86_v13 = vsub.f32 1.0, %v85_v12 }
  0x1b   :  { %v87_v14 = vmul.f32 %v1810_v11, %v86_v13  ;;  %249 = vmatpush.bf16.msra.mxu0 %v1532_v52  ;;  %268 = vmatpush.bf16.msra.mxu1 %v1536_v55  ;;  %v1802_v45 = vld [vmem:[%s2541_s23] ss:$0 sm:$0xff] }
  0x1d   :  { %v88_v15 = vadd.f32 %v1810_v11, %v87_v14 }
  0x1f   :  { %v2028_v16 = vsel %vm89_vm1, %v1810_v11, %v88_v15  ;;  %250 = vmatpush.bf16.msra.mxu0 %v1524_v61  ;;  %269 = vmatpush.bf16.msra.mxu1 %v1528_v63 }
  0x81   :  { %v80_v17 = vpop.xlane.xlu1 %79  ;;  %v74_v18 = vpop.xlane.xlu0 %73 }
  0x82   :  { %v93_v19 = vmul.f32 %v2028_v16, %v80_v17  ;;  %v91_v20 = vmul.f32 %v2028_v16, %v74_v18 }
  0x84   :  { %v2033_v21 = vsub.f32 %v2012_v2, %v93_v19  ;;  %v2036_v22 = vsub.f32 %v2014_v3, %v91_v20 }
  0x86   :  { %v101_v23 = vmul.f32 %v2033_v21, %v2033_v21  ;;  %v99_v24 = vmul.f32 %v2036_v22, %v2036_v22 }
  0x88   :  { %v109_v25 = vsel %vm71_vm0, %v101_v23, 0.0  ;;  %v103_v26 = vsel %vm71_vm0, %v99_v24, 0.0 }
  0x89   :  { %v83_v27 = vpop.xlane.xlu1 %82  ;;  %110 = vadd.xlane.f32.xlu0 %v109_v25  ;;  %104 = vadd.xlane.f32.xlu2 %v103_v26  ;;  %v77_v28 = vpop.xlane.xlu0 %76 }
  0x8a   :  { %v94_v29 = vmul.f32 %v2028_v16, %v83_v27  ;;  %v92_v30 = vmul.f32 %v2028_v16, %v77_v28 }
  0x8c   :  { %v2047_v31 = vsub.f32 %v2020_v6, %v94_v29  ;;  %v2050_v32 = vsub.f32 %v2022_v7, %v92_v30 }
  0x8e   :  { %v102_v33 = vmul.f32 %v2047_v31, %v2047_v31  ;;  %v100_v34 = vmul.f32 %v2050_v32, %v2050_v32 }
  0x90   :  { %v112_v35 = vsel %vm71_vm0, %v102_v33, 0.0  ;;  %v106_v36 = vsel %vm71_vm0, %v100_v34, 0.0 }
  0x91   :  { %113 = vadd.xlane.f32.xlu1 %v112_v35  ;;  %107 = vadd.xlane.f32.xlu2 %v106_v36 }
  0xfc   :  { %v105_v54 = vpop.xlane.xlu2 %104  ;;  %v111_v60 = vpop.xlane.xlu0 %110 }
  0xfd   :  { %v115_v59 = vmul.f32 %v105_v54, %v2028_v16  ;;  %v117_v1 = vmul.f32 %v111_v60, %v2028_v16  ;;  %v191_v60 = vld [vmem:[%s2520_s4] sm:$0x3] }
  0xfe   :  { %v193_v62 = vperm.slane %v191_v60, 0 }
  0xff   :  { %v119_v0 = vadd.f32 1e-05, %v115_v59  ;;  %v121_v4 = vadd.f32 1e-05, %v117_v1 }
 0x101   :  { %1811 = vrsqrt.f32 %v119_v0  ;;  %vm129_vm3 = vweird.f32 %v119_v0  ;;  %vm149_vm10 = vweird.f32 %v121_v4 }
 0x102   :  { %1813 = vrsqrt.f32 %v121_v4 }
 0x104   :  { %v114_v5 = vpop.xlane.xlu1 %113  ;;  %v108_v8 = vpop.xlane.xlu2 %107 }
 0x105   :  { %v118_v9 = vmul.f32 %v114_v5, %v2028_v16  ;;  %v116_v10 = vmul.f32 %v108_v8, %v2028_v16 }
 0x107   :  { %v1812_v11 = vpop.eup %1811  ;;  %v122_v12 = vadd.f32 1e-05, %v118_v9  ;;  %v120_v13 = vadd.f32 1e-05, %v116_v10 }
 0x108   :  { %v124_v14 = vmul.f32 %v1812_v11, %v119_v0  ;;  %v1814_v18 = vpop.eup %1813  ;;  %vm130_vm2 = vweird.f32 %v1812_v11 }
 0x109   :  { %1815 = vrsqrt.f32 %v122_v12  ;;  %v144_v26 = vmul.f32 %v1814_v18, %v121_v4  ;;  %vm131_vm4 = vmor %vm129_vm3, %vm130_vm2  ;;  %vm139_vm6 = vweird.f32 %v120_v13  ;;  %vm159_vm8 = vweird.f32 %v122_v12 }
 0x10a   :  { %v125_v15 = vmul.f32 %v1812_v11, %v124_v14  ;;  %1817 = vrsqrt.f32 %v120_v13  ;;  %vm150_vm11 = vweird.f32 %v1814_v18 }
 0x10b   :  { %v145_v33 = vmul.f32 %v1814_v18, %v144_v26  ;;  %vm151_vm13 = vmor %vm149_vm10, %vm150_vm11 }
 0x10c   :  { %v126_v17 = vmul.f32 0.5, %v125_v15 }
 0x10d   :  { %v146_v39 = vmul.f32 0.5, %v145_v33 }
 0x10e   :  { %v127_v19 = vsub.f32 1.5, %v126_v17 }
 0x10f   :  { %v1816_v20 = vpop.eup %1815  ;;  %v147_v46 = vsub.f32 1.5, %v146_v39 }
 0x110   :  { %v1818_v23 = vpop.eup %1817  ;;  %v154_v24 = vmul.f32 %v1816_v20, %v122_v12  ;;  %v128_v25 = vmul.f32 %v1812_v11, %v127_v19  ;;  %vm160_vm9 = vweird.f32 %v1816_v20 }
 0x111   :  { %v134_v27 = vmul.f32 %v1818_v23, %v120_v13  ;;  %vm140_vm5 = vweird.f32 %v1818_v23  ;;  %vm161_vm12 = vmor %vm159_vm8, %vm160_vm9  ;;  %v148_v50 = vmul.f32 %v1814_v18, %v147_v46 }
 0x112   :  { %v155_v28 = vmul.f32 %v1816_v20, %v154_v24  ;;  %v132_v30 = vsel %vm131_vm4, %v1812_v11, %v128_v25  ;;  %vm141_vm7 = vmor %vm139_vm6, %vm140_vm5 }
 0x113   :  { %v135_v29 = vmul.f32 %v1818_v23, %v134_v27  ;;  %v163_v37 = vmul.f32 %v132_v30, %v2036_v22 }
 0x114   :  { %v156_v35 = vmul.f32 0.5, %v155_v28 }
 0x115   :  { %v136_v34 = vmul.f32 0.5, %v135_v29  ;;  %v170_v44 = vmul.f32 %v1801_v38, %v163_v37 }
 0x116   :  { %v157_v41 = vsub.f32 1.5, %v156_v35 }
 0x117   :  { %v137_v36 = vsub.f32 1.5, %v136_v34  ;;  %v177_v48 = vadd.f32 %v1802_v45, %v170_v44 }
 0x118   :  { %v158_v47 = vmul.f32 %v1816_v20, %v157_v41 }
 0x119   :  { %v138_v40 = vmul.f32 %v1818_v23, %v137_v36 }
 0x11a   :  { %v162_v52 = vsel %vm161_vm12, %v1816_v20, %v158_v47 }
 0x11b   :  { %v142_v42 = vsel %vm141_vm7, %v1818_v23, %v138_v40  ;;  %v166_v53 = vmul.f32 %v162_v52, %v2047_v31  ;;  %v194_v23 = vperm.slane %v191_v60, 1 }
 0x11c   :  { %v164_v43 = vmul.f32 %v142_v42, %v2050_v32  ;;  %v152_v32 = vsel %vm151_vm13, %v1814_v18, %v148_v50 }
 0x11d   :  { %v165_v54 = vmul.f32 %v152_v32, %v2033_v21  ;;  %v173_v55 = vmul.f32 %v1801_v38, %v166_v53 }
 0x11e   :  { %v171_v22 = vmul.f32 %v1801_v38, %v164_v43 }
 0x11f   :  { %v172_v56 = vmul.f32 %v1801_v38, %v165_v54  ;;  %v180_v57 = vadd.f32 %v1802_v45, %v173_v55 }
 0x120   :  { %v178_v49 = vadd.f32 %v1802_v45, %v171_v22  ;;  %v352_v22 = vld [vmem:[%s2521_s5] sm:$0xff] }
 0x121   :  { %v179_v58 = vadd.f32 %v1802_v45, %v172_v56 }
 0x122   :  { %v181_v51 = vpack.c.bf16 %v178_v49, %v177_v48 }
 0x123   :  { %v182_v59 = vpack.c.bf16 %v180_v57, %v179_v58 }
 0x124   :  { %1553 = vmatmul.msk.bf16.vlgmr.msra.gmra.mxu0 %vm71_vm0, %v181_v51  ;;  %1555 = vmatmul.msk.bf16.vlgmr.msra.gmra.mxu1 %vm71_vm0, %v181_v51  ;;  %v353_v51 = vld [vmem:[%s2521_s5 + $0x8] sm:$0xff] }
 0x134   :  { %1554 = vmatmul.msk.bf16.gmra.mxu0 %vm71_vm0, %v182_v59  ;;  %1556 = vmatmul.msk.bf16.gmra.mxu1 %vm71_vm0, %v182_v59 }
 0x1a1   :  { %v252_v61 = vpop.f32.mrf.mxu0  ;;  %v271_v19 = vpop.f32.mrf.mxu1 }
 0x1a2   :  { %v253_v63 = vadd.f32 %v252_v61, %v193_v62  ;;  %v272_v25 = vadd.f32 %v271_v19, %v194_v23 }
 0x1a4   :  { %v289_v31 = vpack.c.bf16 %v253_v63, %v253_v63  ;;  %v459_v27 = vpack.c.bf16 %v272_v25, %v272_v25 }
 0x1a6   :  { %v295_v4 = vunpack.c.l.b16 %v289_v31  ;;  %v470_v29 = vunpack.c.l.b16 %v459_v27 }
 0x1a9   :  { %v254_v0 = vpop.f32.mrf.mxu0  ;;  %v273_v20 = vpop.f32.mrf.mxu1 }
 0x1aa   :  { %v255_v1 = vadd.f32 %v254_v0, %v193_v62  ;;  %v274_v24 = vadd.f32 %v273_v20, %v194_v23 }
 0x1ac   :  { %v290_v21 = vpack.c.bf16 %v255_v1, %v255_v1  ;;  %v460_v26 = vpack.c.bf16 %v274_v24, %v274_v24 }
 0x1ae   :  { %v296_v5 = vunpack.c.l.b16 %v290_v21  ;;  %v471_v28 = vunpack.c.l.b16 %v460_v26 }
 0x1b0   :  { %v2127_v8 = vpack.c.b16 %v296_v5, %v295_v4  ;;  %v2134_v34 = vpack.c.b16 %v471_v28, %v470_v29 }
 0x1b1   :  { %v257_v9 = vpop.f32.mrf.mxu0  ;;  %v276_v35 = vpop.f32.mrf.mxu1 }
 0x1b2   :  { %298 = vrot.lane.b32.xlu2 %v2127_v8, %s1906_s26  ;;  %v258_v10 = vadd.f32 %v257_v9, %v193_v62  ;;  %v277_v38 = vadd.f32 %v276_v35, %v194_v23 }
 0x1b4   :  { %v291_v12 = vpack.c.bf16 %v258_v10, %v258_v10  ;;  %v461_v40 = vpack.c.bf16 %v277_v38, %v277_v38 }
 0x1b6   :  { %v323_v15 = vunpack.c.l.b16 %v291_v12  ;;  %v498_v42 = vunpack.c.l.b16 %v461_v40 }
 0x1b9   :  { %v259_v11 = vpop.f32.mrf.mxu0  ;;  %v278_v36 = vpop.f32.mrf.mxu1 }
 0x1ba   :  { %v260_v13 = vadd.f32 %v259_v11, %v193_v62  ;;  %v279_v37 = vadd.f32 %v278_v36, %v194_v23 }
 0x1bc   :  { %v292_v14 = vpack.c.bf16 %v260_v13, %v260_v13  ;;  %v462_v39 = vpack.c.bf16 %v279_v37, %v279_v37 }
 0x1be   :  { %v324_v17 = vunpack.c.l.b16 %v292_v14  ;;  %v499_v41 = vunpack.c.l.b16 %v462_v39 }
 0x1c0   :  { %v2130_v18 = vpack.c.b16 %v324_v17, %v323_v15  ;;  %v2140_v45 = vpack.c.b16 %v499_v41, %v498_v42 }
 0x1c2   :  { %326 = vrot.lane.b32.xlu0 %v2130_v18, %s1906_s26 }
 0x20c   :  { %v299_v30 = vpop.permute.xlu2 %298 }
 0x20d   :  { %v305_v33 = vsel %vm300_vm14, %v299_v30, 0 }
 0x20e   :  { %314 = vmatpush.bf16.xpose.msra.mxu2 %v305_v33 }
 0x215   :  { %1557 = vmatmul.msk.bf16.vlgmr.msra.gmra.mxu2 %vm300_vm14, %v2127_v8 }
 0x216   :  { %484 = vmatpush.bf16.msrb.mxu2 %v2134_v34 }
 0x234   :  { %v327_v43 = vpop.permute.xlu0 %326 }
 0x235   :  { %v332_v44 = vsel %vm300_vm14, %v327_v43, 0 }
 0x236   :  { %341 = vmatpush.bf16.xpose.msra.mxu3 %v332_v44 }
 0x23d   :  { %1558 = vmatmul.msk.bf16.vlgmr.msra.gmra.mxu3 %vm300_vm14, %v2130_v18 }
 0x23e   :  { %512 = vmatpush.bf16.msrb.mxu3 %v2140_v45 }
 0x298   :  { %v316_v46 = vpop.f32.mrf.mxu2 }
 0x299   :  { %v348_v47 = vmul.f32 0.17677669, %v316_v46 }
 0x29b   :  { %v354_v48 = vadd.f32 %v352_v22, %v348_v47 }
 0x29d   :  { %v359_v49 = vsel %vm358_vm15, %v354_v48, -inf }
 0x29e   :  { %360 = vmax.xlane.f32.xlu1 %v359_v49 }
 0x2a0   :  { %v318_v50 = vpop.f32.mrf.mxu2 }
 0x2a1   :  { %v349_v52 = vmul.f32 0.17677669, %v318_v50 }
 0x2a3   :  { %v355_v32 = vadd.f32 %v353_v51, %v349_v52 }
 0x2a5   :  { %v362_v53 = vsel %vm358_vm15, %v355_v32, -inf }
 0x2a6   :  { %363 = vmax.xlane.f32.xlu1 %v362_v53 }
 0x2c0   :  { %v343_v54 = vpop.f32.mrf.mxu3 }
 0x2c1   :  { %v350_v55 = vmul.f32 0.17677669, %v343_v54 }
 0x2c3   :  { %v356_v56 = vadd.f32 %v352_v22, %v350_v55 }
 0x2c5   :  { %v365_v57 = vsel %vm358_vm15, %v356_v56, -inf }
 0x2c6   :  { %366 = vmax.xlane.f32.xlu1 %v365_v57 }
 0x2c8   :  { %v345_v58 = vpop.f32.mrf.mxu3 }
 0x2c9   :  { %v351_v59 = vmul.f32 0.17677669, %v345_v58 }
 0x2cb   :  { %v357_v60 = vadd.f32 %v353_v51, %v351_v59 }
 0x2cd   :  { %v368_v61 = vsel %vm358_vm15, %v357_v60, -inf }
 0x2ce   :  { %369 = vmax.xlane.f32.xlu2 %v368_v61 }
 0x2df   :  { %523 = vrot.lane.b32.xlu1 %v2127_v8, %s1907_s30 }
 0x2e6   :  { %521 = vrot.lane.b32.xlu2 %v2127_v8, %s1908_s0 }
 0x311   :  { %v361_v62 = vpop.xlane.xlu1 %360 }
 0x312   :  { %v371_v63 = vsub.f32 %v354_v48, %v361_v62 }
 0x314   :  { %v375_v0 = vmul.f32 1.442695, %v371_v63 }
 0x316   :  { %1819 = vpow2.f32 %v375_v0 }
 0x319   :  { %v364_v31 = vpop.xlane.xlu1 %363 }
 0x31a   :  { %v372_v1 = vsub.f32 %v355_v32, %v364_v31 }
 0x31c   :  { %v1820_v21 = vpop.eup %1819  ;;  %v377_v4 = vmul.f32 1.442695, %v372_v1 }
 0x31d   :  { %v383_v5 = vsel %vm358_vm15, %v1820_v21, 0.0 }
 0x31e   :  { %1821 = vpow2.f32 %v377_v4  ;;  %384 = vadd.xlane.f32.xlu0 %v383_v5 }
 0x324   :  { %v1822_v9 = vpop.eup %1821 }
 0x325   :  { %v386_v10 = vsel %vm358_vm15, %v1822_v9, 0.0 }
 0x326   :  { %387 = vadd.xlane.f32.xlu1 %v386_v10 }
 0x332   :  { %547 = vrot.lane.b32.xlu0 %v2130_v18, %s1907_s30 }
 0x339   :  { %v367_v11 = vpop.xlane.xlu1 %366 }
 0x33a   :  { %v373_v8 = vsub.f32 %v356_v56, %v367_v11 }
 0x33c   :  { %v379_v12 = vmul.f32 1.442695, %v373_v8 }
 0x33e   :  { %1823 = vpow2.f32 %v379_v12 }
 0x341   :  { %v370_v13 = vpop.xlane.xlu2 %369 }
 0x342   :  { %v374_v14 = vsub.f32 %v357_v60, %v370_v13 }
 0x344   :  { %v2161_v15 = vpop.eup %1823  ;;  %v381_v17 = vmul.f32 1.442695, %v374_v14 }
 0x345   :  { %v389_v19 = vsel %vm358_vm15, %v2161_v15, 0.0 }
 0x346   :  { %1825 = vpow2.f32 %v381_v17  ;;  %390 = vadd.xlane.f32.xlu1 %v389_v19 }
 0x349   :  { %v522_v62 = vpop.permute.xlu2 %521 }
 0x34c   :  { %v2165_v20 = vpop.eup %1825 }
 0x34d   :  { %v392_v23 = vsel %vm358_vm15, %v2165_v20, 0.0 }
 0x34e   :  { %393 = vadd.xlane.f32.xlu1 %v392_v23 }
 0x351   :  { %v524_v24 = vpop.permute.xlu1 %523 }
 0x352   :  { %v529_v25 = vsel %vm300_vm14, %v524_v24, 0 }
 0x353   :  { %538 = vmatpush.bf16.xpose.msra.mxu2 %v529_v25 }
 0x367   :  { %545 = vrot.lane.b32.xlu1 %v2130_v18, %s1908_s0 }
 0x391   :  { %v385_v26 = vpop.xlane.xlu0 %384 }
 0x392   :  { %1827 = vrcp.f32 %v385_v26  ;;  %v406_v35 = vand.u32 2147483648, %v385_v26  ;;  %vm400_vm2 = vweird.f32 %v385_v26  ;;  %v404_v37 = vand.u32 2147483647, %v385_v26 }
 0x394   :  { %v407_v41 = vor.u32 1.1754944e-38, %v406_v35  ;;  %vm405_vm4 = vcmp.eq.f32.partialorder %v404_v37, 8.507059e+37 }
 0x398   :  { %v1828_v27 = vpop.eup %1827 }
 0x399   :  { %v396_v28 = vmul.f32 %v1828_v27, %v385_v26  ;;  %v388_v29 = vpop.xlane.xlu1 %387  ;;  %vm401_vm1 = vweird.f32 %v1828_v27 }
 0x39a   :  { %1829 = vrcp.f32 %v388_v29  ;;  %vm402_vm3 = vmor %vm400_vm2, %vm401_vm1  ;;  %v421_v43 = vand.u32 2147483648, %v388_v29  ;;  %v419_v22 = vand.u32 2147483647, %v388_v29  ;;  %vm415_vm6 = vweird.f32 %v388_v29 }
 0x39b   :  { %v397_v30 = vsub.f32 1.0, %v396_v28 }
 0x39c   :  { %v422_v50 = vor.u32 1.1754944e-38, %v421_v43  ;;  %vm420_vm8 = vcmp.eq.f32.partialorder %v419_v22, 8.507059e+37 }
 0x39d   :  { %v398_v33 = vmul.f32 %v1828_v27, %v397_v30 }
 0x39f   :  { %v399_v36 = vadd.f32 %v1828_v27, %v398_v33 }
 0x3a0   :  { %v1830_v38 = vpop.eup %1829 }
 0x3a1   :  { %v403_v39 = vsel %vm402_vm3, %v1828_v27, %v399_v36  ;;  %v411_v40 = vmul.f32 %v1830_v38, %v388_v29  ;;  %vm416_vm5 = vweird.f32 %v1830_v38  ;;  %v1746_v36 = vld [vmem:[%s2522_s6] sm:$0xff] }
 0x3a2   :  { %v408_v42 = vsel %vm405_vm4, %v407_v41, %v403_v39  ;;  %vm417_vm7 = vmor %vm415_vm6, %vm416_vm5 }
 0x3a3   :  { %v412_v18 = vsub.f32 1.0, %v411_v40  ;;  %v409_v49 = vmul.f32 %v1820_v21, %v408_v42  ;;  %v1563_v40 = vld [vmem:[%s2521_s5 + $0x10] sm:$0xff] }
 0x3a4   :  { %v548_v44 = vpop.permute.xlu0 %547 }
 0x3a5   :  { %v413_v46 = vmul.f32 %v1830_v38, %v412_v18  ;;  %v553_v47 = vsel %vm300_vm14, %v548_v44, 0  ;;  %v455_v53 = vpack.c.bf16 %v409_v49, %v409_v49  ;;  %v1564_v44 = vld [vmem:[%s2521_s5 + $0x18] sm:$0xff] }
 0x3a6   :  { %562 = vmatpush.bf16.xpose.msra.mxu3 %v553_v47 }
 0x3a7   :  { %v414_v48 = vadd.f32 %v1830_v38, %v413_v46  ;;  %v465_v55 = vunpack.c.l.b16 %v455_v53 }
 0x3a9   :  { %v418_v51 = vsel %vm417_vm7, %v1830_v38, %v414_v48 }
 0x3aa   :  { %v423_v52 = vsel %vm420_vm8, %v422_v50, %v418_v51 }
 0x3ab   :  { %v424_v32 = vmul.f32 %v1822_v9, %v423_v52 }
 0x3ad   :  { %v456_v54 = vpack.c.bf16 %v424_v32, %v424_v32 }
 0x3af   :  { %v466_v56 = vunpack.c.l.b16 %v456_v54 }
 0x3b1   :  { %v467_v57 = vpack.c.b16 %v466_v56, %v465_v55 }
 0x3b3   :  { %1559 = vmatmul.msk.bf16.vlgmr.msrb.gmra.mxu2 %vm358_vm15, %v467_v57 }
 0x3b9   :  { %v391_v58 = vpop.xlane.xlu1 %390 }
 0x3ba   :  { %1831 = vrcp.f32 %v391_v58  ;;  %v436_v31 = vand.u32 2147483648, %v391_v58  ;;  %vm430_vm10 = vweird.f32 %v391_v58  ;;  %v434_v21 = vand.u32 2147483647, %v391_v58 }
 0x3bc   :  { %v437_v10 = vor.u32 1.1754944e-38, %v436_v31  ;;  %vm435_vm12 = vcmp.eq.f32.partialorder %v434_v21, 8.507059e+37 }
 0x3c0   :  { %v1832_v59 = vpop.eup %1831 }
 0x3c1   :  { %v426_v60 = vmul.f32 %v1832_v59, %v391_v58  ;;  %v394_v61 = vpop.xlane.xlu1 %393  ;;  %vm431_vm9 = vweird.f32 %v1832_v59 }
 0x3c2   :  { %1833 = vrcp.f32 %v394_v61  ;;  %vm432_vm11 = vmor %vm430_vm10, %vm431_vm9  ;;  %v451_v12 = vand.u32 2147483648, %v394_v61  ;;  %v449_v14 = vand.u32 2147483647, %v394_v61  ;;  %vm445_vm1 = vweird.f32 %v394_v61 }
 0x3c3   :  { %v427_v63 = vsub.f32 1.0, %v426_v60  ;;  %1561 = vmatmul.msk.bf16.vlgmr.msra.gmra.mxu2 %vm300_vm14, %v522_v62 }
 0x3c4   :  { %v452_v23 = vor.u32 1.1754944e-38, %v451_v12  ;;  %vm450_vm3 = vcmp.eq.f32.partialorder %v449_v14, 8.507059e+37 }
 0x3c5   :  { %v428_v0 = vmul.f32 %v1832_v59, %v427_v63 }
 0x3c7   :  { %v429_v1 = vadd.f32 %v1832_v59, %v428_v0 }
 0x3c8   :  { %v1834_v4 = vpop.eup %1833 }
 0x3c9   :  { %v433_v5 = vsel %vm432_vm11, %v1832_v59, %v429_v1  ;;  %v441_v9 = vmul.f32 %v1834_v4, %v394_v61  ;;  %vm446_vm13 = vweird.f32 %v1834_v4 }
 0x3ca   :  { %v438_v8 = vsel %vm435_vm12, %v437_v10, %v433_v5  ;;  %vm447_vm2 = vmor %vm445_vm1, %vm446_vm13 }
 0x3cb   :  { %v442_v11 = vsub.f32 1.0, %v441_v9  ;;  %v439_v19 = vmul.f32 %v2161_v15, %v438_v8  ;;  %v1747_v15 = vld [vmem:[%s2522_s6 + $0x8] sm:$0xff] }
 0x3cd   :  { %v443_v13 = vmul.f32 %v1834_v4, %v442_v11  ;;  %v457_v27 = vpack.c.bf16 %v439_v19, %v439_v19 }
 0x3cf   :  { %v444_v17 = vadd.f32 %v1834_v4, %v443_v13  ;;  %v493_v29 = vunpack.c.l.b16 %v457_v27 }
 0x3d1   :  { %v448_v24 = vsel %vm447_vm2, %v1834_v4, %v444_v17 }
 0x3d2   :  { %v453_v25 = vsel %vm450_vm3, %v452_v23, %v448_v24 }
 0x3d3   :  { %v454_v26 = vmul.f32 %v2165_v20, %v453_v25 }
 0x3d5   :  { %v458_v28 = vpack.c.bf16 %v454_v26, %v454_v26 }
 0x3d7   :  { %v494_v30 = vunpack.c.l.b16 %v458_v28 }
 0x3d9   :  { %v495_v33 = vpack.c.b16 %v494_v30, %v493_v29  ;;  %v546_v35 = vpop.permute.xlu1 %545 }
 0x3db   :  { %1560 = vmatmul.msk.bf16.vlgmr.msrb.gmra.mxu3 %vm358_vm15, %v495_v33 }
 0x3dc   :  { %793 = vmatpush.bf16.msrb.mxu3 %v1747_v15 }
 0x3e0   :  { %794 = vmatpush.bf16.msrb.mxu3 %v1746_v36 }
 0x3eb   :  { %1562 = vmatmul.msk.bf16.vlgmr.msra.gmra.mxu3 %vm300_vm14, %v546_v35 }
 0x436   :  { %v486_v20 = vpop.f32.mrf.mxu2 }
 0x43e   :  { %v488_v37 = vpop.f32.mrf.mxu2 }
 0x43f   :  { %v519_v38 = vpack.c.bf16 %v488_v37, %v486_v20 }
 0x441   :  { %1585 = vmatmul.msk.bf16.vlgmr.msrb.gmra.mxu3 %vm300_vm14, %v519_v38 }
 0x446   :  { %v540_v39 = vpop.f32.mrf.mxu2 }
 0x447   :  { %v569_v41 = vmul.f32 0.17677669, %v540_v39 }
 0x449   :  { %v576_v18 = vadd.f32 %v1563_v40, %v569_v41 }
 0x44b   :  { %v580_v42 = vsel %vm358_vm15, %v576_v18, -inf }
 0x44c   :  { %581 = vmax.xlane.f32.xlu1 %v580_v42 }
 0x44e   :  { %v542_v43 = vpop.f32.mrf.mxu2 }
 0x44f   :  { %v570_v46 = vmul.f32 0.17677669, %v542_v43 }
 0x451   :  { %v577_v22 = vadd.f32 %v1564_v44, %v570_v46 }
 0x453   :  { %v583_v47 = vsel %vm358_vm15, %v577_v22, -inf }
 0x454   :  { %584 = vmax.xlane.f32.xlu2 %v583_v47 }
 0x45e   :  { %v514_v48 = vpop.f32.mrf.mxu3 }
 0x466   :  { %v516_v49 = vpop.f32.mrf.mxu3 }
 0x467   :  { %v520_v50 = vpack.c.bf16 %v516_v49, %v514_v48 }
 0x469   :  { %1586 = vmatmul.msk.bf16.gmra.mxu3 %vm300_vm14, %v520_v50 }
 0x46e   :  { %v564_v51 = vpop.f32.mrf.mxu3 }
 0x46f   :  { %v571_v52 = vmul.f32 0.17677669, %v564_v51 }
 0x471   :  { %v578_v32 = vadd.f32 %v1563_v40, %v571_v52 }
 0x473   :  { %v586_v53 = vsel %vm358_vm15, %v578_v32, -inf }
 0x474   :  { %587 = vmax.xlane.f32.xlu0 %v586_v53 }
 0x476   :  { %v566_v54 = vpop.f32.mrf.mxu3 }
 0x477   :  { %v572_v55 = vmul.f32 0.17677669, %v566_v54 }
 0x479   :  { %v579_v56 = vadd.f32 %v1564_v44, %v572_v55 }
 0x47b   :  { %v589_v57 = vsel %vm358_vm15, %v579_v56, -inf }
 0x47c   :  { %590 = vmax.xlane.f32.xlu2 %v589_v57 }
 0x4bf   :  { %v582_v58 = vpop.xlane.xlu1 %581 }
 0x4c0   :  { %v592_v59 = vsub.f32 %v576_v18, %v582_v58 }
 0x4c2   :  { %v596_v60 = vmul.f32 1.442695, %v592_v59 }
 0x4c4   :  { %1835 = vpow2.f32 %v596_v60 }
 0x4c7   :  { %v585_v61 = vpop.xlane.xlu2 %584 }
 0x4c8   :  { %v593_v62 = vsub.f32 %v577_v22, %v585_v61 }
 0x4ca   :  { %v1836_v63 = vpop.eup %1835  ;;  %v598_v0 = vmul.f32 1.442695, %v593_v62 }
 0x4cb   :  { %v604_v31 = vsel %vm358_vm15, %v1836_v63, 0.0 }
 0x4cc   :  { %1837 = vpow2.f32 %v598_v0  ;;  %605 = vadd.xlane.f32.xlu1 %v604_v31 }
 0x4d2   :  { %v1838_v1 = vpop.eup %1837 }
 0x4d3   :  { %v607_v21 = vsel %vm358_vm15, %v1838_v1, 0.0 }
 0x4d4   :  { %608 = vadd.xlane.f32.xlu0 %v607_v21 }
 0x4e7   :  { %v588_v4 = vpop.xlane.xlu0 %587 }
 0x4e8   :  { %v594_v5 = vsub.f32 %v578_v32, %v588_v4  ;;  %685 = vrot.lane.b32.xlu0 %v2134_v34, %s1908_s0 }
 0x4ea   :  { %v600_v9 = vmul.f32 1.442695, %v594_v5 }
 0x4ec   :  { %1839 = vpow2.f32 %v600_v9 }
 0x4ef   :  { %v591_v10 = vpop.xlane.xlu2 %590 }
 0x4f0   :  { %v595_v11 = vsub.f32 %v579_v56, %v591_v10 }
 0x4f2   :  { %v2201_v8 = vpop.eup %1839  ;;  %v602_v12 = vmul.f32 1.442695, %v595_v11 }
 0x4f3   :  { %v610_v13 = vsel %vm358_vm15, %v2201_v8, 0.0 }
 0x4f4   :  { %1841 = vpow2.f32 %v602_v12  ;;  %611 = vadd.xlane.f32.xlu2 %v610_v13 }
 0x4fa   :  { %v2205_v14 = vpop.eup %1841 }
 0x4fb   :  { %v613_v17 = vsel %vm358_vm15, %v2205_v14, 0.0 }
 0x4fc   :  { %614 = vadd.xlane.f32.xlu1 %v613_v17 }
 0x50c   :  { %710 = vrot.lane.b32.xlu2 %v2140_v45, %s1908_s0 }
 0x53f   :  { %v606_v34 = vpop.xlane.xlu1 %605 }
 0x540   :  { %1843 = vrcp.f32 %v606_v34  ;;  %v627_v27 = vand.u32 2147483648, %v606_v34  ;;  %vm621_vm5 = vweird.f32 %v606_v34  ;;  %v625_v29 = vand.u32 2147483647, %v606_v34 }
 0x542   :  { %v628_v15 = vor.u32 1.1754944e-38, %v627_v27  ;;  %vm626_vm7 = vcmp.eq.f32.partialorder %v625_v29, 8.507059e+37 }
 0x546   :  { %v1844_v19 = vpop.eup %1843 }
 0x547   :  { %v617_v23 = vmul.f32 %v1844_v19, %v606_v34  ;;  %v609_v24 = vpop.xlane.xlu0 %608  ;;  %vm622_vm4 = vweird.f32 %v1844_v19 }
 0x548   :  { %1845 = vrcp.f32 %v609_v24  ;;  %vm623_vm6 = vmor %vm621_vm5, %vm622_vm4  ;;  %v642_v20 = vand.u32 2147483648, %v609_v24  ;;  %v640_v38 = vand.u32 2147483647, %v609_v24  ;;  %vm636_vm9 = vweird.f32 %v609_v24 }
 0x549   :  { %v618_v25 = vsub.f32 1.0, %v617_v23 }
 0x54a   :  { %v643_v41 = vor.u32 1.1754944e-38, %v642_v20  ;;  %vm641_vm11 = vcmp.eq.f32.partialorder %v640_v38, 8.507059e+37 }
 0x54b   :  { %v619_v26 = vmul.f32 %v1844_v19, %v618_v25 }
 0x54d   :  { %v620_v28 = vadd.f32 %v1844_v19, %v619_v26 }
 0x54e   :  { %v1846_v30 = vpop.eup %1845 }
 0x54f   :  { %v624_v33 = vsel %vm623_vm6, %v1844_v19, %v620_v28  ;;  %v632_v35 = vmul.f32 %v1846_v30, %v609_v24  ;;  %vm637_vm8 = vweird.f32 %v1846_v30  ;;  %v1749_v24 = vld [vmem:[%s2522_s6 + $0x18] sm:$0xff] }
 0x550   :  { %v629_v36 = vsel %vm626_vm7, %v628_v15, %v624_v33  ;;  %vm638_vm10 = vmor %vm636_vm9, %vm637_vm8  ;;  %756 = vmatpush.bf16.msrb.mxu2 %v1749_v24  ;;  %v1803_v33 = vld [vmem:[%s2523_s7] ss:$0 sm:$0xff]  ;;  %v1607_v24 = vld [vmem:[%s2526_s10 + $0x28] sm:$0xf0] }
 0x551   :  { %v633_v45 = vsub.f32 1.0, %v632_v35  ;;  %v630_v40 = vmul.f32 %v1836_v63, %v629_v36 }
 0x553   :  { %v634_v37 = vmul.f32 %v1846_v30, %v633_v45  ;;  %v676_v44 = vpack.c.bf16 %v630_v40, %v630_v40 }
 0x555   :  { %v635_v39 = vadd.f32 %v1846_v30, %v634_v37  ;;  %v682_v47 = vunpack.c.l.b16 %v676_v44 }
 0x557   :  { %v639_v18 = vsel %vm638_vm10, %v1846_v30, %v635_v39  ;;  %v796_v30 = vpop.f32.mrf.mxu3 }
 0x558   :  { %v644_v42 = vsel %vm641_vm11, %v643_v41, %v639_v18 }
 0x559   :  { %v645_v43 = vmul.f32 %v1838_v1, %v644_v42 }
 0x55a   :  { %v686_v46 = vpop.permute.xlu0 %685 }
 0x55b   :  { %698 = vmatpush.bf16.msrb.mxu0 %v686_v46  ;;  %v677_v22 = vpack.c.bf16 %v645_v43, %v645_v43 }
 0x55d   :  { %v683_v48 = vunpack.c.l.b16 %v677_v22 }
 0x55f   :  { %v684_v49 = vpack.c.b16 %v683_v48, %v682_v47  ;;  %v798_v37 = vpop.f32.mrf.mxu3 }
 0x561   :  { %1565 = vmatmul.msk.bf16.vlgmr.msrb.gmra.mxu0 %vm358_vm15, %v684_v49 }
 0x567   :  { %v612_v50 = vpop.xlane.xlu2 %611  ;;  %v801_v42 = vpop.f32.mrf.mxu3 }
 0x568   :  { %1847 = vrcp.f32 %v612_v50  ;;  %v657_v56 = vand.u32 2147483648, %v612_v50  ;;  %vm651_vm13 = vweird.f32 %v612_v50  ;;  %v655_v58 = vand.u32 2147483647, %v612_v50 }
 0x56a   :  { %v658_v62 = vor.u32 1.1754944e-38, %v657_v56  ;;  %vm656_vm2 = vcmp.eq.f32.partialorder %v655_v58, 8.507059e+37 }
 0x56e   :  { %v1848_v51 = vpop.eup %1847 }
 0x56f   :  { %v647_v52 = vmul.f32 %v1848_v51, %v612_v50  ;;  %v615_v32 = vpop.xlane.xlu1 %614  ;;  %v711_v53 = vpop.permute.xlu2 %710  ;;  %vm652_vm12 = vweird.f32 %v1848_v51 }
 0x570   :  { %1849 = vrcp.f32 %v615_v32  ;;  %723 = vmatpush.bf16.msrb.mxu1 %v711_v53  ;;  %vm653_vm1 = vmor %vm651_vm13, %vm652_vm12  ;;  %v672_v31 = vand.u32 2147483648, %v615_v32  ;;  %v670_v21 = vand.u32 2147483647, %v615_v32  ;;  %vm666_vm4 = vweird.f32 %v615_v32  ;;  %v803_v47 = vpop.f32.mrf.mxu3 }
 0x571   :  { %v648_v54 = vsub.f32 1.0, %v647_v52 }
 0x572   :  { %v673_v9 = vor.u32 1.1754944e-38, %v672_v31  ;;  %vm671_vm6 = vcmp.eq.f32.partialorder %v670_v21, 8.507059e+37 }
 0x573   :  { %v649_v55 = vmul.f32 %v1848_v51, %v648_v54 }
 0x575   :  { %v650_v57 = vadd.f32 %v1848_v51, %v649_v55 }
 0x576   :  { %v1850_v59 = vpop.eup %1849 }
 0x577   :  { %v654_v60 = vsel %vm653_vm1, %v1848_v51, %v650_v57  ;;  %v662_v61 = vmul.f32 %v1850_v59, %v615_v32  ;;  %vm667_vm3 = vweird.f32 %v1850_v59 }
 0x578   :  { %v659_v0 = vsel %vm656_vm2, %v658_v62, %v654_v60  ;;  %vm668_vm5 = vmor %vm666_vm4, %vm667_vm3 }
 0x579   :  { %v663_v63 = vsub.f32 1.0, %v662_v61  ;;  %v660_v5 = vmul.f32 %v2201_v8, %v659_v0  ;;  %v1748_v8 = vld [vmem:[%s2522_s6 + $0x10] sm:$0xff] }
 0x57a   :  { %757 = vmatpush.bf16.msrb.mxu2 %v1748_v8 }
 0x57b   :  { %v664_v1 = vmul.f32 %v1850_v59, %v663_v63  ;;  %v678_v13 = vpack.c.bf16 %v660_v5, %v660_v5  ;;  %v1613_v5 = vld [vmem:[%s2526_s10 + $0x30] sm:$0xf] }
 0x57d   :  { %v665_v4 = vadd.f32 %v1850_v59, %v664_v1  ;;  %v707_v34 = vunpack.c.l.b16 %v678_v13 }
 0x57f   :  { %v669_v10 = vsel %vm668_vm5, %v1850_v59, %v665_v4  ;;  %vm1303_vm5 = vcmask 1041409  }
 0x580   :  { %v674_v11 = vsel %vm671_vm6, %v673_v9, %v669_v10  ;;  %v1757_v9 = vld [vmem:[%s2526_s10 + $0x34] sm:$0xf0]  ;;  %v1756_v10 = vld [vmem:[%s2526_s10 + $0x34] sm:$0xf]  ;;  %vm1306_vm6 = vcmask 517120  }
 0x581   :  { %v675_v12 = vmul.f32 %v2205_v14, %v674_v11  ;;  %v1614_v11 = vor.u32 %v1757_v9, %v1613_v5 }
 0x583   :  { %v679_v17 = vpack.c.bf16 %v675_v12, %v675_v12  ;;  %v1615_v12 = vld [vmem:[%s2526_s10 + $0x38] sm:$0xf0]  ;;  %988 = vmatpush.bf16.msra.mxu0 %v1614_v11 }
 0x584   :  { %v1618_v13 = vor.u32 %v1756_v10, %v1615_v12 }
 0x585   :  { %v708_v19 = vunpack.c.l.b16 %v679_v17  ;;  %v1605_v17 = vld [vmem:[%s2526_s10 + $0x20] sm:$0xf] }
 0x586   :  { %1007 = vmatpush.bf16.msra.mxu1 %v1618_v13 }
 0x587   :  { %v709_v23 = vpack.c.b16 %v708_v19, %v707_v34  ;;  %v1755_v34 = vld [vmem:[%s2526_s10 + $0x24] sm:$0xf0]  ;;  %v1754_v19 = vld [vmem:[%s2526_s10 + $0x24] sm:$0xf] }
 0x588   :  { %v1610_v8 = vor.u32 %v1754_v19, %v1607_v24 }
 0x589   :  { %1566 = vmatmul.msk.bf16.vlgmr.msrb.gmra.mxu1 %vm358_vm15, %v709_v23  ;;  %v1606_v23 = vor.u32 %v1755_v34, %v1605_v17 }
 0x58a   :  { %1008 = vmatpush.bf16.msra.mxu1 %v1610_v8 }
 0x58b   :  { %989 = vmatpush.bf16.msra.mxu0 %v1606_v23 }
 0x5de   :  { %v700_v25 = vpop.f32.mrf.mxu0 }
 0x5e6   :  { %v702_v26 = vpop.f32.mrf.mxu0 }
 0x5e7   :  { %v730_v14 = vpack.c.bf16 %v702_v26, %v700_v25  ;;  %v1597_v25 = vld [vmem:[%s2526_s10 + $0x10] sm:$0xf]  ;;  %v1753_v26 = vld [vmem:[%s2526_s10 + $0x14] sm:$0xf0] }
 0x5e9   :  { %1575 = vmatmul.msk.bf16.vlgmr.msrb.gmra.mxu2 %vm300_vm14, %v730_v14  ;;  %v1752_v14 = vld [vmem:[%s2526_s10 + $0x14] sm:$0xf] }
 0x606   :  { %v725_v27 = vpop.f32.mrf.mxu1 }
 0x60e   :  { %v727_v28 = vpop.f32.mrf.mxu1 }
 0x60f   :  { %v731_v29 = vpack.c.bf16 %v727_v28, %v725_v27  ;;  %v1598_v27 = vor.u32 %v1753_v26, %v1597_v25  ;;  %v1599_v28 = vld [vmem:[%s2526_s10 + $0x18] sm:$0xf0] }
 0x611   :  { %1576 = vmatmul.msk.bf16.gmra.mxu2 %vm300_vm14, %v731_v29  ;;  %v1602_v29 = vor.u32 %v1752_v14, %v1599_v28  ;;  %990 = vmatpush.bf16.msra.mxu0 %v1598_v27 }
 0x613   :  { %1009 = vmatpush.bf16.msra.mxu1 %v1602_v29 }
 0x66c   :  { %v759_v35 = vpop.f32.mrf.mxu2 }
 0x66d   :  { %v797_v15 = vadd.f32 %v796_v30, %v759_v35  ;;  %v1589_v35 = vld [vmem:[%s2526_s10] sm:$0xf] }
 0x66f   :  { %v810_v45 = vadd.f32 %v1803_v33, %v797_v15  ;;  %v1751_v15 = vld [vmem:[%s2526_s10 + $0x4] sm:$0xf0] }
 0x671   :  { %v2227_v36 = vadd.f32 %v2014_v3, %v810_v45  ;;  %v1750_v45 = vld [vmem:[%s2526_s10 + $0x4] sm:$0xf] }
 0x673   :  { %v820_v20 = vsel %vm71_vm0, %v2227_v36, 0.0 }
 0x674   :  { %v761_v38 = vpop.f32.mrf.mxu2  ;;  %821 = vadd.xlane.f32.xlu1 %v820_v20  ;;  %v1590_v20 = vor.u32 %v1751_v15, %v1589_v35 }
 0x675   :  { %v799_v39 = vadd.f32 %v798_v37, %v761_v38  ;;  %v1591_v37 = vld [vmem:[%s2526_s10 + $0x8] sm:$0xf0] }
 0x676   :  { %991 = vmatpush.bf16.msra.mxu0 %v1590_v20  ;;  %v1765_v20 = vld [vmem:[%s2528_s12 + $0x38] sm:$0xff] }
 0x677   :  { %v811_v40 = vadd.f32 %v1803_v33, %v799_v39  ;;  %v1594_v39 = vor.u32 %v1750_v45, %v1591_v37  ;;  %1230 = vmatpush.bf16.msra.mxu2 %v1765_v20  ;;  %v1772_v37 = vld [vmem:[%s2528_s12 + $0x70] sm:$0xff] }
 0x679   :  { %v2232_v41 = vadd.f32 %v2022_v7, %v811_v40  ;;  %1010 = vmatpush.bf16.msra.mxu1 %v1594_v39  ;;  %v1771_v39 = vld [vmem:[%s2528_s12 + $0x68] sm:$0xff] }
 0x67b   :  { %v823_v18 = vsel %vm71_vm0, %v2232_v41, 0.0 }
 0x67c   :  { %824 = vadd.xlane.f32.xlu1 %v823_v18 }
 0x694   :  { %v764_v43 = vpop.f32.mrf.mxu2 }
 0x695   :  { %v802_v44 = vadd.f32 %v801_v42, %v764_v43 }
 0x697   :  { %v812_v3 = vadd.f32 %v1803_v33, %v802_v44 }
 0x699   :  { %v2237_v46 = vadd.f32 %v2012_v2, %v812_v3 }
 0x69b   :  { %v826_v22 = vsel %vm71_vm0, %v2237_v46, 0.0 }
 0x69c   :  { %827 = vadd.xlane.f32.xlu0 %v826_v22  ;;  %v766_v48 = vpop.f32.mrf.mxu2 }
 0x69d   :  { %v804_v49 = vadd.f32 %v803_v47, %v766_v48 }
 0x69f   :  { %v813_v7 = vadd.f32 %v1803_v33, %v804_v49 }
 0x6a1   :  { %v2242_v50 = vadd.f32 %v2020_v6, %v813_v7 }
 0x6a3   :  { %v829_v51 = vsel %vm71_vm0, %v2242_v50, 0.0 }
 0x6a4   :  { %830 = vadd.xlane.f32.xlu1 %v829_v51 }
 0x6e7   :  { %v822_v52 = vpop.xlane.xlu1 %821 }
 0x6e8   :  { %v832_v32 = vmul.f32 %v822_v52, %v2028_v16 }
 0x6ea   :  { %v2248_v2 = vsub.f32 %v2227_v36, %v832_v32 }
 0x6ec   :  { %v840_v53 = vmul.f32 %v2248_v2, %v2248_v2 }
 0x6ee   :  { %v844_v54 = vsel %vm71_vm0, %v840_v53, 0.0 }
 0x6ef   :  { %845 = vadd.xlane.f32.xlu2 %v844_v54  ;;  %v825_v55 = vpop.xlane.xlu1 %824  ;;  %v1804_v54 = vld [vmem:[%s2524_s8] ss:$0 sm:$0xff] }
 0x6f0   :  { %v833_v6 = vmul.f32 %v825_v55, %v2028_v16 }
 0x6f2   :  { %v2255_v56 = vsub.f32 %v2232_v41, %v833_v6 }
 0x6f4   :  { %v841_v57 = vmul.f32 %v2255_v56, %v2255_v56 }
 0x6f6   :  { %v847_v58 = vsel %vm71_vm0, %v841_v57, 0.0 }
 0x6f7   :  { %848 = vadd.xlane.f32.xlu1 %v847_v58  ;;  %v1805_v58 = vld [vmem:[%s2525_s9] ss:$0 sm:$0xff] }
 0x70f   :  { %v828_v59 = vpop.xlane.xlu0 %827 }
 0x710   :  { %v834_v60 = vmul.f32 %v828_v59, %v2028_v16 }
 0x712   :  { %v2262_v61 = vsub.f32 %v2237_v46, %v834_v60 }
 0x714   :  { %v842_v62 = vmul.f32 %v2262_v61, %v2262_v61 }
 0x716   :  { %v850_v63 = vsel %vm71_vm0, %v842_v62, 0.0 }
 0x717   :  { %851 = vadd.xlane.f32.xlu1 %v850_v63  ;;  %v831_v0 = vpop.xlane.xlu1 %830 }
 0x718   :  { %v835_v31 = vmul.f32 %v831_v0, %v2028_v16 }
 0x71a   :  { %v2269_v1 = vsub.f32 %v2242_v50, %v835_v31 }
 0x71c   :  { %v843_v21 = vmul.f32 %v2269_v1, %v2269_v1 }
 0x71e   :  { %v853_v4 = vsel %vm71_vm0, %v843_v21, 0.0 }
 0x71f   :  { %854 = vadd.xlane.f32.xlu1 %v853_v4 }
 0x762   :  { %v846_v30 = vpop.xlane.xlu2 %845 }
 0x763   :  { %v856_v33 = vmul.f32 %v846_v30, %v2028_v16 }
 0x765   :  { %v860_v38 = vadd.f32 1e-05, %v856_v33 }
 0x767   :  { %1851 = vrsqrt.f32 %v860_v38  ;;  %vm870_vm15 = vweird.f32 %v860_v38 }
 0x76a   :  { %v849_v40 = vpop.xlane.xlu1 %848 }
 0x76b   :  { %v857_v18 = vmul.f32 %v849_v40, %v2028_v16  ;;  %v1762_v40 = vld [vmem:[%s2528_s12 + $0x20] sm:$0xff] }
 0x76d   :  { %v1852_v42 = vpop.eup %1851  ;;  %v861_v43 = vadd.f32 1e-05, %v857_v18  ;;  %v1770_v18 = vld [vmem:[%s2528_s12 + $0x60] sm:$0xff] }
 0x76e   :  { %v865_v44 = vmul.f32 %v1852_v42, %v860_v38  ;;  %vm871_vm14 = vweird.f32 %v1852_v42  ;;  %v1763_v38 = vld [vmem:[%s2528_s12 + $0x28] sm:$0xff] }
 0x76f   :  { %1853 = vrsqrt.f32 %v861_v43  ;;  %vm872_vm7 = vmor %vm870_vm15, %vm871_vm14  ;;  %vm880_vm9 = vweird.f32 %v861_v43 }
 0x770   :  { %v866_v3 = vmul.f32 %v1852_v42, %v865_v44  ;;  %v1760_v44 = vld [vmem:[%s2528_s12 + $0x10] sm:$0xff] }
 0x772   :  { %v867_v22 = vmul.f32 0.5, %v866_v3  ;;  %v1768_v3 = vld [vmem:[%s2528_s12 + $0x50] sm:$0xff] }
 0x774   :  { %v868_v47 = vsub.f32 1.5, %v867_v22  ;;  %v932_v22 = vld [vmem:[%s2527_s11] sm:$0x3] }
 0x775   :  { %v1854_v48 = vpop.eup %1853 }
 0x776   :  { %v869_v49 = vmul.f32 %v1852_v42, %v868_v47  ;;  %v875_v7 = vmul.f32 %v1854_v48, %v861_v43  ;;  %vm881_vm8 = vweird.f32 %v1854_v48  ;;  %v1769_v43 = vld [vmem:[%s2528_s12 + $0x58] sm:$0xff]  ;;  %v1759_v47 = vld [vmem:[%s2528_s12 + $0x8] sm:$0xff] }
 0x777   :  { %vm882_vm10 = vmor %vm880_vm9, %vm881_vm8  ;;  %vm1499_vm8 = vcmask 1041408  }
 0x778   :  { %v876_v51 = vmul.f32 %v1854_v48, %v875_v7  ;;  %v873_v52 = vsel %vm872_vm7, %v1852_v42, %v869_v49  ;;  %v1761_v42 = vld [vmem:[%s2528_s12 + $0x18] sm:$0xff]  ;;  %v2385_v49 = vperm.slane %v932_v22, 0  ;;  %v2387_v7 = vperm.slane %v932_v22, 1 }
 0x779   :  { %v904_v55 = vmul.f32 %v873_v52, %v2248_v2 }
 0x77a   :  { %v877_v32 = vmul.f32 0.5, %v876_v51 }
 0x77b   :  { %v911_v59 = vmul.f32 %v1804_v54, %v904_v55 }
 0x77c   :  { %v878_v53 = vsub.f32 1.5, %v877_v32  ;;  %v1758_v32 = vld [vmem:[%s2528_s12] sm:$0xff] }
 0x77d   :  { %v918_v63 = vadd.f32 %v1805_v58, %v911_v59 }
 0x77e   :  { %v879_v6 = vmul.f32 %v1854_v48, %v878_v53  ;;  %v1766_v53 = vld [vmem:[%s2528_s12 + $0x40] sm:$0xff] }
 0x780   :  { %v883_v57 = vsel %vm882_vm10, %v1854_v48, %v879_v6  ;;  %v1767_v48 = vld [vmem:[%s2528_s12 + $0x48] sm:$0xff] }
 0x781   :  { %v905_v60 = vmul.f32 %v883_v57, %v2255_v56 }
 0x783   :  { %v912_v62 = vmul.f32 %v1804_v54, %v905_v60 }
 0x785   :  { %v919_v0 = vadd.f32 %v1805_v58, %v912_v62 }
 0x787   :  { %v922_v31 = vpack.c.bf16 %v919_v0, %v918_v63 }
 0x789   :  { %1619 = vmatmul.msk.bf16.vlgmr.msra.gmra.mxu0 %vm71_vm0, %v922_v31  ;;  %1621 = vmatmul.msk.bf16.vlgmr.msra.gmra.mxu1 %vm71_vm0, %v922_v31 }
 0x78a   :  { %v852_v2 = vpop.xlane.xlu1 %851 }
 0x78b   :  { %v858_v21 = vmul.f32 %v852_v2, %v2028_v16 }
 0x78d   :  { %v862_v4 = vadd.f32 1e-05, %v858_v21 }
 0x78f   :  { %1855 = vrsqrt.f32 %v862_v4  ;;  %vm890_vm12 = vweird.f32 %v862_v4 }
 0x792   :  { %v855_v5 = vpop.xlane.xlu1 %854 }
 0x793   :  { %v859_v9 = vmul.f32 %v855_v5, %v2028_v16 }
 0x795   :  { %v1856_v10 = vpop.eup %1855  ;;  %v863_v11 = vadd.f32 1e-05, %v859_v9 }
 0x796   :  { %v885_v12 = vmul.f32 %v1856_v10, %v862_v4  ;;  %vm891_vm11 = vweird.f32 %v1856_v10 }
 0x797   :  { %1857 = vrsqrt.f32 %v863_v11  ;;  %vm892_vm13 = vmor %vm890_vm12, %vm891_vm11  ;;  %vm900_vm2 = vweird.f32 %v863_v11 }
 0x798   :  { %v886_v56 = vmul.f32 %v1856_v10, %v885_v12 }
 0x79a   :  { %v887_v13 = vmul.f32 0.5, %v886_v56 }
 0x79c   :  { %v888_v17 = vsub.f32 1.5, %v887_v13 }
 0x79d   :  { %v1858_v34 = vpop.eup %1857 }
 0x79e   :  { %v889_v19 = vmul.f32 %v1856_v10, %v888_v17  ;;  %v895_v23 = vmul.f32 %v1858_v34, %v863_v11  ;;  %vm901_vm1 = vweird.f32 %v1858_v34 }
 0x79f   :  { %vm902_vm3 = vmor %vm900_vm2, %vm901_vm1 }
 0x7a0   :  { %v896_v24 = vmul.f32 %v1858_v34, %v895_v23  ;;  %v893_v8 = vsel %vm892_vm13, %v1856_v10, %v889_v19 }
 0x7a1   :  { %v906_v14 = vmul.f32 %v893_v8, %v2262_v61  ;;  %v1773_v61 = vld [vmem:[%s2528_s12 + $0x78] sm:$0xff] }
 0x7a2   :  { %v897_v25 = vmul.f32 0.5, %v896_v24  ;;  %1249 = vmatpush.bf16.msra.mxu3 %v1773_v61 }
 0x7a3   :  { %v913_v30 = vmul.f32 %v1804_v54, %v906_v14 }
 0x7a4   :  { %v898_v26 = vsub.f32 1.5, %v897_v25 }
 0x7a5   :  { %v920_v35 = vadd.f32 %v1805_v58, %v913_v30 }
 0x7a6   :  { %v899_v27 = vmul.f32 %v1858_v34, %v898_v26  ;;  %1250 = vmatpush.bf16.msra.mxu3 %v1772_v37 }
 0x7a8   :  { %v903_v28 = vsel %vm902_vm3, %v1858_v34, %v899_v27 }
 0x7a9   :  { %v907_v29 = vmul.f32 %v903_v28, %v2269_v1  ;;  %v1764_v1 = vld [vmem:[%s2528_s12 + $0x30] sm:$0xff] }
 0x7aa   :  { %1231 = vmatpush.bf16.msra.mxu2 %v1764_v1  ;;  %1251 = vmatpush.bf16.msra.mxu3 %v1771_v39 }
 0x7ab   :  { %v914_v33 = vmul.f32 %v1804_v54, %v907_v29 }
 0x7ad   :  { %v921_v15 = vadd.f32 %v1805_v58, %v914_v33 }
 0x7ae   :  { %1232 = vmatpush.bf16.msra.mxu2 %v1763_v38  ;;  %1252 = vmatpush.bf16.msra.mxu3 %v1770_v18 }
 0x7af   :  { %v923_v45 = vpack.c.bf16 %v921_v15, %v920_v35 }
 0x7b1   :  { %1620 = vmatmul.msk.bf16.gmra.mxu0 %vm71_vm0, %v923_v45  ;;  %1622 = vmatmul.msk.bf16.gmra.mxu1 %vm71_vm0, %v923_v45 }
 0x7b2   :  { %1233 = vmatpush.bf16.msra.mxu2 %v1762_v40  ;;  %1253 = vmatpush.bf16.msra.mxu3 %v1769_v43 }
 0x7b6   :  { %1234 = vmatpush.bf16.msra.mxu2 %v1761_v42  ;;  %1254 = vmatpush.bf16.msra.mxu3 %v1768_v3 }
 0x7ba   :  { %1235 = vmatpush.bf16.msra.mxu2 %v1760_v44  ;;  %1255 = vmatpush.bf16.msra.mxu3 %v1767_v48 }
 0x7be   :  { %1236 = vmatpush.bf16.msra.mxu2 %v1759_v47  ;;  %1256 = vmatpush.bf16.msra.mxu3 %v1766_v53 }
 0x7c2   :  { %1237 = vmatpush.bf16.msra.mxu2 %v1758_v32 }
 0x806   :  { %v993_v51 = vpop.f32.mrf.mxu0  ;;  %v1012_v52 = vpop.f32.mrf.mxu1 }
 0x807   :  { %v994_v54 = vadd.f32 %v993_v51, %v2385_v49  ;;  %v1013_v55 = vadd.f32 %v1012_v52, %v2387_v7 }
 0x809   :  { %v1022_v6 = vmul.f32 %v994_v54, %v994_v54  ;;  %v1023_v57 = vmul.f32 %v1013_v55, %v1013_v55 }
 0x80b   :  { %v1030_v58 = vmul.f32 %v1022_v6, %v994_v54  ;;  %v1031_v59 = vmul.f32 %v1023_v57, %v1013_v55 }
 0x80d   :  { %v1038_v60 = vmul.f32 0.044715, %v1030_v58  ;;  %v1039_v62 = vmul.f32 0.044715, %v1031_v59 }
 0x80e   :  { %v995_v63 = vpop.f32.mrf.mxu0  ;;  %v1014_v0 = vpop.f32.mrf.mxu1 }
 0x80f   :  { %v1046_v31 = vadd.f32 %v1038_v60, %v994_v54  ;;  %v1047_v2 = vadd.f32 %v1039_v62, %v1013_v55  ;;  %v996_v21 = vadd.f32 %v995_v63, %v2385_v49  ;;  %v1015_v4 = vadd.f32 %v1014_v0, %v2387_v7 }
 0x811   :  { %v1054_v5 = vmul.f32 0.7978846, %v1046_v31  ;;  %v1024_v9 = vmul.f32 %v996_v21, %v996_v21  ;;  %v1025_v10 = vmul.f32 %v1015_v4, %v1015_v4  ;;  %v1055_v11 = vmul.f32 0.7978846, %v1047_v2 }
 0x813   :  { %v1032_v12 = vmul.f32 %v1024_v9, %v996_v21  ;;  %v1033_v56 = vmul.f32 %v1025_v10, %v1015_v4  ;;  %1859 = vtanh.f32 %v1054_v5 }
 0x814   :  { %1861 = vtanh.f32 %v1055_v11 }
 0x815   :  { %v1040_v13 = vmul.f32 0.044715, %v1032_v12  ;;  %v1041_v17 = vmul.f32 0.044715, %v1033_v56 }
 0x817   :  { %v1048_v34 = vadd.f32 %v1040_v13, %v996_v21  ;;  %v1049_v19 = vadd.f32 %v1041_v17, %v1015_v4 }
 0x819   :  { %v1056_v23 = vmul.f32 0.7978846, %v1048_v34  ;;  %v1057_v24 = vmul.f32 0.7978846, %v1049_v19  ;;  %v1860_v8 = vpop.eup %1859 }
 0x81a   :  { %v1862_v25 = vpop.eup %1861  ;;  %v1070_v26 = vadd.f32 1.0, %v1860_v8 }
 0x81b   :  { %1863 = vtanh.f32 %v1056_v23  ;;  %v1071_v14 = vadd.f32 1.0, %v1862_v25 }
 0x81c   :  { %1865 = vtanh.f32 %v1057_v24  ;;  %v1078_v29 = vmul.f32 0.5, %v1070_v26 }
 0x81d   :  { %v1079_v33 = vmul.f32 0.5, %v1071_v14 }
 0x81e   :  { %v1086_v20 = vmul.f32 %v1078_v29, %v994_v54 }
 0x81f   :  { %v1087_v1 = vmul.f32 %v1079_v33, %v1013_v55  ;;  %v1806_v33 = vld [vmem:[%s2529_s13] ss:$0 sm:$0xff] }
 0x821   :  { %v1864_v27 = vpop.eup %1863 }
 0x822   :  { %v1866_v28 = vpop.eup %1865  ;;  %v1072_v30 = vadd.f32 1.0, %v1864_v27 }
 0x823   :  { %v1073_v35 = vadd.f32 1.0, %v1866_v28 }
 0x824   :  { %v1080_v15 = vmul.f32 0.5, %v1072_v30 }
 0x825   :  { %v1081_v45 = vmul.f32 0.5, %v1073_v35 }
 0x826   :  { %v1088_v61 = vmul.f32 %v1080_v15, %v996_v21 }
 0x827   :  { %v1089_v37 = vmul.f32 %v1081_v45, %v1015_v4 }
 0x828   :  { %v1094_v38 = vpack.c.bf16 %v1088_v61, %v1086_v20 }
 0x829   :  { %v1095_v39 = vpack.c.bf16 %v1089_v37, %v1087_v1 }
 0x82a   :  { %1238 = vmatmul.bf16.vlgmr.msra.gmra.mxu2 %v1094_v38 }
 0x82b   :  { %1257 = vmatmul.bf16.vlgmr.msra.gmra.mxu3 %v1095_v39 }
 0x82e   :  { %v998_v40 = vpop.f32.mrf.mxu0  ;;  %v1017_v18 = vpop.f32.mrf.mxu1 }
 0x82f   :  { %v999_v42 = vadd.f32 %v998_v40, %v2385_v49  ;;  %v1018_v43 = vadd.f32 %v1017_v18, %v2387_v7 }
 0x831   :  { %v1026_v44 = vmul.f32 %v999_v42, %v999_v42  ;;  %v1027_v3 = vmul.f32 %v1018_v43, %v1018_v43 }
 0x833   :  { %v1034_v22 = vmul.f32 %v1026_v44, %v999_v42  ;;  %v1035_v47 = vmul.f32 %v1027_v3, %v1018_v43 }
 0x835   :  { %v1042_v48 = vmul.f32 0.044715, %v1034_v22  ;;  %v1043_v51 = vmul.f32 0.044715, %v1035_v47 }
 0x836   :  { %v1000_v52 = vpop.f32.mrf.mxu0  ;;  %v1019_v32 = vpop.f32.mrf.mxu1 }
 0x837   :  { %v1050_v53 = vadd.f32 %v1042_v48, %v999_v42  ;;  %v1051_v54 = vadd.f32 %v1043_v51, %v1018_v43  ;;  %v1001_v55 = vadd.f32 %v1000_v52, %v2385_v49  ;;  %v1020_v6 = vadd.f32 %v1019_v32, %v2387_v7 }
 0x839   :  { %v1028_v57 = vmul.f32 %v1001_v55, %v1001_v55  ;;  %v1029_v58 = vmul.f32 %v1020_v6, %v1020_v6  ;;  %v1058_v59 = vmul.f32 0.7978846, %v1050_v53  ;;  %v1059_v60 = vmul.f32 0.7978846, %v1051_v54 }
 0x83b   :  { %v1036_v62 = vmul.f32 %v1028_v57, %v1001_v55  ;;  %v1037_v63 = vmul.f32 %v1029_v58, %v1020_v6  ;;  %1867 = vtanh.f32 %v1058_v59 }
 0x83c   :  { %1869 = vtanh.f32 %v1059_v60 }
 0x83d   :  { %v1044_v0 = vmul.f32 0.044715, %v1036_v62  ;;  %v1045_v31 = vmul.f32 0.044715, %v1037_v63 }
 0x83f   :  { %v1052_v2 = vadd.f32 %v1044_v0, %v1001_v55  ;;  %v1053_v21 = vadd.f32 %v1045_v31, %v1020_v6 }
 0x841   :  { %v1060_v4 = vmul.f32 0.7978846, %v1052_v2  ;;  %v1061_v5 = vmul.f32 0.7978846, %v1053_v21  ;;  %v1868_v9 = vpop.eup %1867 }
 0x842   :  { %v1870_v10 = vpop.eup %1869  ;;  %v1074_v49 = vadd.f32 1.0, %v1868_v9 }
 0x843   :  { %1871 = vtanh.f32 %v1060_v4  ;;  %v1075_v7 = vadd.f32 1.0, %v1870_v10 }
 0x844   :  { %1873 = vtanh.f32 %v1061_v5  ;;  %v1082_v13 = vmul.f32 0.5, %v1074_v49 }
 0x845   :  { %v1083_v34 = vmul.f32 0.5, %v1075_v7 }
 0x846   :  { %v1090_v24 = vmul.f32 %v1082_v13, %v999_v42 }
 0x847   :  { %v1091_v25 = vmul.f32 %v1083_v34, %v1018_v43  ;;  %v1909_v43 = vmov 16.0  }
 0x848   :  { %1875 = vrcp.f32 %v1909_v43 }
 0x849   :  { %v1872_v11 = vpop.eup %1871 }
 0x84a   :  { %v1874_v12 = vpop.eup %1873  ;;  %v1076_v56 = vadd.f32 1.0, %v1872_v11 }
 0x84b   :  { %v1077_v17 = vadd.f32 1.0, %v1874_v12 }
 0x84c   :  { %v1084_v19 = vmul.f32 0.5, %v1076_v56 }
 0x84d   :  { %v1085_v23 = vmul.f32 0.5, %v1077_v17 }
 0x84e   :  { %v1092_v8 = vmul.f32 %v1084_v19, %v1001_v55  ;;  %v1876_v47 = vpop.eup %1875 }
 0x84f   :  { %v1093_v26 = vmul.f32 %v1085_v23, %v1020_v6  ;;  %v1291_v53 = vmul.f32 16.0, %v1876_v47  ;;  %vm1295_vm4 = vweird.f32 %v1876_v47 }
 0x850   :  { %v1096_v14 = vpack.c.bf16 %v1092_v8, %v1090_v24 }
 0x851   :  { %v1097_v27 = vpack.c.bf16 %v1093_v26, %v1091_v25  ;;  %v1292_v58 = vsub.f32 1.0, %v1291_v53  ;;  %v1725_v26 = vld [vmem:[%s2532_s16 + $0x48] sm:$0xf]  ;;  %v1782_v53 = vld [vmem:[%s2532_s16 + $0x40] sm:$0xf0] }
 0x852   :  { %1243 = vmatmul.bf16.gmra.mxu2 %v1096_v14  ;;  %v1784_v14 = vld [vmem:[%s2532_s16 + $0x50] sm:$0xf0] }
 0x853   :  { %1262 = vmatmul.bf16.gmra.mxu3 %v1097_v27  ;;  %v1293_v63 = vmul.f32 %v1876_v47, %v1292_v58  ;;  %v1783_v27 = vld [vmem:[%s2532_s16 + $0x4c] sm:$0xf] }
 0x855   :  { %v1294_v21 = vadd.f32 %v1876_v47, %v1293_v63  ;;  %v1776_v63 = vld [vmem:[%s2532_s16 + $0x10] sm:$0xf0] }
 0x857   :  { %v1296_v9 = vsel %vm1295_vm4, %v1876_v47, %v1294_v21 }
 0x8ad   :  { %v1239_v28 = vpop.f32.mrf.mxu2 }
 0x8ae   :  { %v1258_v29 = vpop.f32.mrf.mxu3  ;;  %v1240_v15 = vadd.f32 %v1806_v33, %v1239_v28  ;;  %v1726_v28 = vor.u32 %v1784_v14, %v1725_v26  ;;  %v1373_v26 = vld [vmem:[%s2533_s17] sm:$0x7] }
 0x8af   :  { %v1376_v14 = vperm.slane %v1373_v26, 1 }
 0x8b0   :  { %v1259_v61 = vadd.f32 %v1258_v29, %v1240_v15  ;;  %v1727_v29 = vld [vmem:[%s2532_s16 + $0x54] sm:$0xf0]  ;;  %1459 = vmatpush.bf16.msrb.mxu0 %v1726_v28  ;;  %v1780_v15 = vld [vmem:[%s2532_s16 + $0x34] sm:$0xf] }
 0x8b2   :  { %v1268_v37 = vadd.f32 %v1259_v61, %v2227_v36 }
 0x8b4   :  { %v1272_v40 = vsel %vm71_vm0, %v1268_v37, 0.0  ;;  %v1778_v37 = vld [vmem:[%s2532_s16 + $0x20] sm:$0xf0] }
 0x8b5   :  { %v1241_v30 = vpop.f32.mrf.mxu2 }
 0x8b6   :  { %v1242_v35 = vadd.f32 %v1806_v33, %v1241_v30  ;;  %v1260_v45 = vpop.f32.mrf.mxu3  ;;  %v1730_v30 = vor.u32 %v1783_v27, %v1727_v29 }
 0x8b8   :  { %v1261_v20 = vadd.f32 %v1260_v45, %v1242_v35  ;;  %v1781_v35 = vld [vmem:[%s2532_s16 + $0x38] sm:$0xf0]  ;;  %1472 = vmatpush.bf16.msrb.mxu1 %v1730_v30  ;;  %v1377_v30 = vperm.slane %v1373_v26, 2 }
 0x8ba   :  { %v1269_v1 = vadd.f32 %v1261_v20, %v2232_v41  ;;  %v1715_v20 = vld [vmem:[%s2532_s16 + $0x3c] sm:$0xf0] }
 0x8bb   :  { %v1718_v61 = vor.u32 %v1780_v15, %v1715_v20 }
 0x8bc   :  { %v1273_v38 = vsel %vm71_vm0, %v1269_v1, 0.0  ;;  %v1701_v1 = vld [vmem:[%s2532_s16 + $0x18] sm:$0xf] }
 0x8bd   :  { %v1274_v42 = vadd.f32 %v1273_v38, %v1272_v40  ;;  %1473 = vmatpush.bf16.msrb.mxu1 %v1718_v61  ;;  %v1777_v38 = vld [vmem:[%s2532_s16 + $0x1c] sm:$0xf]  ;;  %v1702_v40 = vor.u32 %v1778_v37, %v1701_v1 }
 0x8bf   :  { %v1275_v3 = vrot.slane %v1274_v42, 4 }
 0x8c1   :  { %v1276_v52 = vadd.f32 %v1275_v3, %v1274_v42  ;;  %v1775_v3 = vld [vmem:[%s2532_s16 + $0x8] sm:$0xf0] }
 0x8c3   :  { %v1277_v55 = vrot.slane %v1276_v52, 2 }
 0x8c5   :  { %v1278_v60 = vadd.f32 %v1277_v55, %v1276_v52  ;;  %v1733_v52 = vld [vmem:[%s2532_s16 + $0x50] sm:$0xf] }
 0x8c7   :  { %v1279_v2 = vrot.slane %v1278_v60, 1 }
 0x8d5   :  { %v1244_v39 = vpop.f32.mrf.mxu2 }
 0x8d6   :  { %v1263_v18 = vpop.f32.mrf.mxu3  ;;  %v1245_v44 = vadd.f32 %v1806_v33, %v1244_v39 }
 0x8d8   :  { %v1264_v22 = vadd.f32 %v1263_v18, %v1245_v44  ;;  %v1703_v18 = vld [vmem:[%s2532_s16 + $0x24] sm:$0xf0]  ;;  %v1689_v44 = vld [vmem:[%s2532_s16] sm:$0xf] }
 0x8d9   :  { %v1706_v43 = vor.u32 %v1777_v38, %v1703_v18  ;;  %v1690_v47 = vor.u32 %v1775_v3, %v1689_v44 }
 0x8da   :  { %v1270_v41 = vadd.f32 %v1264_v22, %v2237_v46  ;;  %v1280_v46 = vadd.f32 %v1279_v2, %v1278_v60  ;;  %v1774_v22 = vld [vmem:[%s2532_s16 + $0x4] sm:$0xf] }
 0x8db   :  { %1474 = vmatpush.bf16.msrb.mxu1 %v1706_v43 }
 0x8dc   :  { %v1281_v6 = vsel %vm71_vm0, %v1270_v41, 0.0  ;;  %v1297_v10 = vmul.f32 %v1296_v9, %v1280_v46 }
 0x8dd   :  { %v1246_v48 = vpop.f32.mrf.mxu2 }
 0x8de   :  { %v1247_v51 = vadd.f32 %v1806_v33, %v1246_v48  ;;  %v1265_v32 = vpop.f32.mrf.mxu3  ;;  %v1713_v33 = vld [vmem:[%s2532_s16 + $0x30] sm:$0xf] }
 0x8df   :  { %v1714_v45 = vor.u32 %v1781_v35, %v1713_v33  ;;  %v1691_v48 = vld [vmem:[%s2532_s16 + $0xc] sm:$0xf0]  ;;  %v1375_v33 = vperm.slane %v1373_v26, 0 }
 0x8e0   :  { %v1266_v36 = vadd.f32 %v1265_v32, %v1247_v51  ;;  %v1694_v51 = vor.u32 %v1774_v22, %v1691_v48  ;;  %v1785_v32 = vld [vmem:[%s2532_s16 + $0x58] sm:$0xf0] }
 0x8e1   :  { %1460 = vmatpush.bf16.msrb.mxu0 %v1714_v45  ;;  %v1734_v41 = vor.u32 %v1785_v32, %v1733_v52 }
 0x8e2   :  { %v1271_v54 = vadd.f32 %v1266_v36, %v2242_v50  ;;  %1475 = vmatpush.bf16.msrb.mxu1 %v1694_v51  ;;  %v1721_v36 = vld [vmem:[%s2532_s16 + $0x38] sm:$0xf] }
 0x8e4   :  { %v1282_v57 = vsel %vm71_vm0, %v1271_v54, 0.0  ;;  %v1722_v54 = vor.u32 %v1782_v53, %v1721_v36 }
 0x8e5   :  { %v1283_v59 = vadd.f32 %v1282_v57, %v1281_v6  ;;  %1461 = vmatpush.bf16.msrb.mxu0 %v1702_v40  ;;  %v1709_v6 = vld [vmem:[%s2532_s16 + $0x20] sm:$0xf]  ;;  %v1779_v57 = vld [vmem:[%s2532_s16 + $0x28] sm:$0xf0] }
 0x8e6   :  { %v1710_v60 = vor.u32 %v1779_v57, %v1709_v6 }
 0x8e7   :  { %v1284_v62 = vrot.slane %v1283_v59, 4 }
 0x8e9   :  { %v1285_v0 = vadd.f32 %v1284_v62, %v1283_v59  ;;  %1462 = vmatpush.bf16.msrb.mxu0 %v1690_v47  ;;  %v1697_v62 = vld [vmem:[%s2532_s16 + $0x8] sm:$0xf]  ;;  %s1910_s16 = smov [#allocation2]  }
 0x8ea   :  { %v1698_v2 = vor.u32 %v1776_v63, %v1697_v62  ;;  %s1510_s13 = sshll.u32 %s1910_s16, 4  ;;  %s1511_s13 = int_to_ptr.vmem [resolvable:$true] %s1510_s13 }
 0x8eb   :  { %v1286_v31 = vrot.slane %v1285_v0, 2 }
 0x8ed   :  { %v1287_v4 = vadd.f32 %v1286_v31, %v1285_v0  ;;  %1485 = vmatpush.bf16.msra.mxu0 %v1734_v41 }
 0x8ef   :  { %v1288_v5 = vrot.slane %v1287_v4, 1 }
 0x8f1   :  { %v1289_v50 = vadd.f32 %v1288_v5, %v1287_v4  ;;  %1486 = vmatpush.bf16.msra.mxu0 %v1722_v54  ;;  %v1807_v4 = vld [vmem:[%s2530_s14] ss:$0 sm:$0xff] }
 0x8f2   :  { %v1808_v5 = vld [vmem:[%s2531_s15] ss:$0 sm:$0xff] }
 0x8f3   :  { %v1298_v49 = vmul.f32 %v1296_v9, %v1289_v50 }
 0x8f5   :  { %v1304_v7 = vsel %vm1303_vm5, %v1298_v49, %v1297_v10  ;;  %1487 = vmatpush.bf16.msra.mxu0 %v1710_v60 }
 0x8f6   :  { %v1307_v11 = vsel %vm1306_vm6, %v1304_v7, 0.0 }
 0x8f7   :  { %1308 = vadd.xlane.f32.xlu1 %v1307_v11 }
 0x8f9   :  { %1488 = vmatpush.bf16.msra.mxu0 %v1698_v2 }
 0x96a   :  { %v1309_v12 = vpop.xlane.xlu1 %1308 }
 0x96b   :  { %v1310_v56 = vmul.f32 %v1309_v12, %v2028_v16 }
 0x96d   :  { %v1312_v13 = vrot.slane %v1310_v56, 1  ;;  %v2416_v17 = vsub.f32 %v1297_v10, %v1310_v56 }
 0x96f   :  { %v2418_v34 = vsub.f32 %v1298_v49, %v1312_v13  ;;  %v1317_v23 = vmul.f32 %v2416_v17, %v2416_v17 }
 0x971   :  { %v1318_v19 = vmul.f32 %v2418_v34, %v2418_v34 }
 0x973   :  { %v1321_v24 = vrot.slane %v1318_v19, 7 }
 0x975   :  { %v1322_v8 = vsel %vm1303_vm5, %v1321_v24, %v1317_v23 }
 0x976   :  { %v1324_v25 = vsel %vm1306_vm6, %v1322_v8, 0.0 }
 0x977   :  { %1325 = vadd.xlane.f32.xlu0 %v1324_v25 }
 0x9ea   :  { %v1326_v39 = vpop.xlane.xlu0 %1325 }
 0x9eb   :  { %v1327_v42 = vmul.f32 %v1326_v39, %v2028_v16 }
 0x9ed   :  { %v1328_v16 = vadd.f32 1e-05, %v1327_v42 }
 0x9ef   :  { %1877 = vrsqrt.f32 %v1328_v16  ;;  %vm1335_vm15 = vweird.f32 %v1328_v16 }
 0x9f5   :  { %v1878_v55 = vpop.eup %1877 }
 0x9f6   :  { %v1330_v58 = vmul.f32 %v1878_v55, %v1328_v16  ;;  %vm1336_vm14 = vweird.f32 %v1878_v55 }
 0x9f7   :  { %vm1337_vm7 = vmor %vm1335_vm15, %vm1336_vm14 }
 0x9f8   :  { %v1331_v59 = vmul.f32 %v1878_v55, %v1330_v58 }
 0x9fa   :  { %v1332_v0 = vmul.f32 0.5, %v1331_v59 }
 0x9fc   :  { %v1333_v31 = vsub.f32 1.5, %v1332_v0 }
 0x9fe   :  { %v1334_v21 = vmul.f32 %v1878_v55, %v1333_v31 }
 0xa00   :  { %v1338_v46 = vsel %vm1337_vm7, %v1878_v55, %v1334_v21 }
 0xa01   :  { %v1340_v9 = vrot.slane %v1338_v46, 1  ;;  %v1343_v50 = vmul.f32 %v1338_v46, %v2416_v17 }
 0xa03   :  { %v1344_v10 = vmul.f32 %v1340_v9, %v2418_v34  ;;  %v1348_v49 = vmul.f32 %v1807_v4, %v1343_v50 }
 0xa05   :  { %v1349_v7 = vmul.f32 %v1807_v4, %v1344_v10  ;;  %v1353_v11 = vadd.f32 %v1808_v5, %v1348_v49 }
 0xa07   :  { %v1354_v12 = vadd.f32 %v1808_v5, %v1349_v7  ;;  %v1355_v56 = vpack.c.bf16 %v1353_v11, %v1353_v11 }
 0xa09   :  { %v1356_v13 = vpack.c.bf16 %v1354_v12, %v1354_v12  ;;  %v1383_v23 = vunpack.c.l.b16 %v1355_v56 }
 0xa0b   :  { %v1384_v19 = vunpack.c.l.b16 %v1356_v13 }
 0xa0d   :  { %v1385_v24 = vrot.slane %v1384_v19, 7 }
 0xa0f   :  { %v1386_v8 = vsel %vm1303_vm5, %v1385_v24, %v1383_v23 }
 0xa10   :  { %v1387_v25 = vpack.c.b16 %v1386_v8, %v1386_v8 }
 0xa12   :  { %1735 = vmatmul.msk.bf16.vlgmr.msrb.gmra.mxu0 %vm71_vm0, %v1387_v25  ;;  %1736 = vmatmul.msk.bf16.vlgmr.msrb.gmra.mxu1 %vm71_vm0, %v1387_v25 }
 0xa22   :  { %1737 = vmatmul.msk.bf16.vlgmr.msra.gmra.mxu0 %vm71_vm0, %v1387_v25  ;;  %vm1501_vm0 = vcmask 1043456  }
 0xa8f   :  { %v1464_v17 = vpop.f32.mrf.mxu0  ;;  %v1477_v34 = vpop.f32.mrf.mxu1 }
 0xa90   :  { %v1478_v29 = vadd.f32 %v1477_v34, %v1376_v14  ;;  %v1465_v20 = vadd.f32 %v1464_v17, %v1375_v33 }
 0xa92   :  { %v1497_v35 = vrot.slane %v1478_v29, 6 }
 0xa94   :  { %v1500_v1 = vsel %vm1499_vm8, %v1465_v20, %v1497_v35 }
 0xa97   :  { %v1466_v27 = vpop.f32.mrf.mxu0  ;;  %v1479_v28 = vpop.f32.mrf.mxu1 }
 0xa9f   :  { %v1490_v15 = vpop.f32.mrf.mxu0 }
 0xaa0   :  { %v1491_v45 = vadd.f32 %v1490_v15, %v1377_v30 }
 0xaa2   :  { %v1498_v61 = vrot.slane %v1491_v45, 4 }
 0xaa4   :  { %v1502_v37 = vsel %vm1501_vm0, %v1500_v1, %v1498_v61 }
 0xaa5   :  { %1504 = vst [vmem:[#allocation2] sm:$0x3f] %v1502_v37 }
 0xaa6   :  { %1515 = dma.vmem_to_hbm [thread:$0]  %s1511_s13, 96, %s1513_s19, [#allocation3]  }
 0xaa7   :  { %v1492_v38 = vpop.f32.mrf.mxu0 }
 0xaa8   :  { %1903 = dma.done.wait [#allocation3], 96  }
 0xaa9   :  { %1904 = vsyncadd [#allocation3], 4294967200 }
 0xaaa   :  { %1520 = vsyncpa [#allocation3], 1 }

</bundles_post_ra>
